<compile_context>
chip_gen: v5e
topology: v5e:2x2
jax: 0.10.0
libtpu: 0.0.40
codegen_flags: <defaults>
</compile_context>

<pallas_src>
import functools

import jax
import jax.numpy as jnp
from jax.experimental import pallas as pl
from jax.experimental.pallas import tpu as pltpu


def _round_up(x, m):
    return ((x + m - 1) // m) * m


def _wavenet_kernel(x_ref, w_in_ref, b_in_ref,
                    w_gate_ref, b_fg_ref, w_out_ref, b_out_ref,
                    wp1_ref, bp1_ref, wp2_ref, bp2_ref,
                    out_ref, *, kernel_size, dilations, hp, sp, seq_len):
    rows = x_ref.shape[0]          # b_tile * T rows (whole batch elements)
    K = kernel_size
    Hp = hp                        # lane-padded hidden width (multiple of 128)
    Sp = sp                        # lane-padded skip width (multiple of 128)

    # Time index within each batch element (rows are b-major within the tile).
    t_idx = jax.lax.broadcasted_iota(jnp.int32, (rows, 1), 0) % seq_len

    def causal_shift(v, s):
        # result[t] = v[t - s] within a batch element, 0 for t < s.
        # roll uses the XLU slot; the mask select is one cheap VPU op.
        # Rows that wrap across batch boundaries satisfy t < s and are masked.
        rolled = pltpu.roll(v, shift=s, axis=0)
        return jnp.where(t_idx >= s, rolled, 0.0)

    def mm(a, w):
        # bf16 MXU operands, f32 accumulation.
        return jnp.dot(a.astype(jnp.bfloat16), w,
                       preferred_element_type=jnp.float32)

    # input 1x1 conv: cin_pad -> Hp   (padded lanes stay exactly 0)
    h = mm(x_ref[...], w_in_ref[...]) + b_in_ref[0]

    skip = None
    for l, d in enumerate(dilations):
        # One wide matmul for all K taps of both gates: (rows,Hp) @ (Hp, K*2Hp).
        y = mm(h, w_gate_ref[l])
        # Tap k = K-1 has shift 0: use it directly (no zeros + add broadcast).
        fg = y[:, (K - 1) * 2 * Hp:]
        for k in range(K - 1):
            s = (K - 1 - k) * d
            fg = fg + causal_shift(y[:, k * 2 * Hp:(k + 1) * 2 * Hp], s)
        fg = fg + b_fg_ref[l]
        # Lane-aligned split: [0:Hp] = filter gate, [Hp:2Hp] = gate gate.
        z = jnp.tanh(fg[:, :Hp]) * jax.nn.sigmoid(fg[:, Hp:])
        # Fused skip | residual projection: (rows,Hp) @ (Hp, Sp+Hp).
        zo = mm(z, w_out_ref[l]) + b_out_ref[l]
        skip = zo[:, :Sp] if skip is None else skip + zo[:, :Sp]
        h = h + zo[:, Sp:]

    # PostDilationLayer: ReLU -> 1x1 conv -> ReLU -> 1x1 conv (lane-padded).
    p = jnp.maximum(skip, 0.0)
    p = mm(p, wp1_ref[...]) + bp1_ref[0]
    p = jnp.maximum(p, 0.0)
    p = mm(p, wp2_ref[...]) + bp2_ref[0]
    out_ref[...] = p.astype(out_ref.dtype)


def wavenet_forward(x_ncw, params, *, kernel_size, dilations):
    B, cin, T = x_ncw.shape
    K = kernel_size
    L = len(dilations)
    assert L >= 1
    H = params["w_in"].shape[1]
    S = params["ws"].shape[-1]
    P1 = params["wp1"].shape[-1]
    pout = params["wp2"].shape[-1]
    assert (K - 1) * max(dilations) < T, "receptive field exceeds time tile"

    LANE = 128
    Hp = _round_up(H, LANE)
    Sp = _round_up(S, LANE)
    P1p = _round_up(P1, LANE)
    pout_pad = _round_up(pout, LANE)
    cin_pad = max(8, cin)
    bf16, f32 = jnp.bfloat16, jnp.float32

    # ---- wrapper-side weight fusion / lane-aligned padding (plain XLA) ----
    w_in = jnp.zeros((cin_pad, Hp), f32).at[:cin, :H].set(
        params["w_in"]).astype(bf16)
    b_in = jnp.zeros((1, Hp), f32).at[:, :H].set(params["b_in"])

    # gate weights: (L, Hp, K*2*Hp); tap-k block = [wf[l,k] pad128 | wg[l,k] pad128]
    w_gate = jnp.zeros((L, Hp, K * 2 * Hp), f32)
    for k in range(K):
        base = k * 2 * Hp
        w_gate = w_gate.at[:, :H, base:base + H].set(params["wf"][:, k])
        w_gate = w_gate.at[:, :H, base + Hp:base + Hp + H].set(params["wg"][:, k])
    w_gate = w_gate.astype(bf16)
    b_fg = jnp.zeros((L, 2 * Hp), f32)
    b_fg = b_fg.at[:, :H].set(params["bf"]).at[:, Hp:Hp + H].set(params["bg"])

    # fused skip | residual projection: (L, Hp, Sp + Hp)
    w_out = jnp.zeros((L, Hp, Sp + Hp), f32)
    w_out = w_out.at[:, :H, :S].set(params["ws"])
    w_out = w_out.at[:, :H, Sp:Sp + H].set(params["wr"])
    w_out = w_out.astype(bf16)
    b_out = jnp.zeros((L, Sp + Hp), f32)
    b_out = b_out.at[:, :S].set(params["bs"]).at[:, Sp:Sp + H].set(params["br"])

    wp1 = jnp.zeros((Sp, P1p), f32).at[:S, :P1].set(params["wp1"]).astype(bf16)
    bp1 = jnp.zeros((1, P1p), f32).at[:, :P1].set(params["bp1"])
    wp2 = jnp.zeros((P1p, pout_pad), f32).at[:P1, :pout].set(
        params["wp2"]).astype(bf16)
    bp2 = jnp.zeros((1, pout_pad), f32).at[:, :pout].set(params["bp2"])

    # ---- input: NCW -> flattened (B*T, cin_pad), bf16 for half the DMA ----
    x_btc = jnp.transpose(x_ncw, (0, 2, 1)).astype(f32)            # (B,T,cin)
    x_flat = jnp.zeros((B * T, cin_pad), f32).at[:, :cin].set(
        x_btc.reshape(B * T, cin)).astype(bf16)

    weights = (w_in, b_in, w_gate, b_fg, w_out, b_out, wp1, bp1, wp2, bp2)
    weight_bytes = sum(int(a.size) * a.dtype.itemsize for a in weights)

    # ---- per-generation VMEM budgeting & batch-major row tiling ----
    try:
        vmem_cap = int(pltpu.get_tpu_info().vmem_capacity_bytes)
    except Exception:
        vmem_cap = 64 * 1024 * 1024        # v7x (smallest) as conservative default

    # Rough f32 bytes of live intermediates per row + bf16 input + f32 output.
    act_row_bytes = (4 * (Hp + K * 2 * Hp + 2 * Hp + Hp + (Sp + Hp)
                          + Sp + P1p + pout_pad)
                     + 2 * cin_pad + 4 * pout_pad)
    act_budget = max(int(0.5 * vmem_cap) - 2 * weight_bytes, T * act_row_bytes)
    rows_budget = max(T, act_budget // act_row_bytes)
    b_tile = max(1, min(B, rows_budget // T))
    if B >= 2:
        b_tile = min(b_tile, max(1, B // 2))   # >=2 grid steps: pipelining + megacore
    while B % b_tile:
        b_tile -= 1
    grid = (B // b_tile,)
    rows = b_tile * T

    est_bytes = 2 * weight_bytes + 2 * rows * act_row_bytes
    vmem_limit = min(int(0.75 * vmem_cap), max(32 * 1024 * 1024, 2 * est_bytes))

    matmul_cols = (cin_pad * Hp
                   + L * (Hp * K * 2 * Hp + Hp * (Sp + Hp))
                   + Sp * P1p + P1p * pout_pad)
    cost = pl.CostEstimate(
        flops=2 * B * T * matmul_cols,
        transcendentals=2 * L * B * T * Hp,
        bytes_accessed=(int(x_flat.size) * x_flat.dtype.itemsize
                        + weight_bytes + B * T * pout_pad * 4))

    kernel = functools.partial(
        _wavenet_kernel, kernel_size=K, dilations=tuple(dilations),
        hp=Hp, sp=Sp, seq_len=T)

    def _const_spec(arr):
        nd = arr.ndim
        return pl.BlockSpec(arr.shape, lambda i, _nd=nd: (0,) * _nd)

    in_specs = [pl.BlockSpec((rows, cin_pad), lambda i: (i, 0))]
    in_specs += [_const_spec(w) for w in weights]
    out_spec = pl.BlockSpec((rows, pout_pad), lambda i: (i, 0))

    out_flat = pl.pallas_call(
        kernel,
        out_shape=jax.ShapeDtypeStruct((B * T, pout_pad), f32),
        grid=grid,
        in_specs=in_specs,
        out_specs=out_spec,
        compiler_params=pltpu.CompilerParams(
            dimension_semantics=("parallel",),
            vmem_limit_bytes=int(vmem_limit)),
        cost_estimate=cost,
    )(x_flat, *weights)

    out = out_flat[:, :pout].reshape(B, T, pout)
    return jnp.transpose(out, (0, 2, 1))               # NCW: (B, pout, T)


def reference_forward(x_ncw, params, *, kernel_size, dilations):
    """Pure-JAX reference in the per-tap / shift-the-input form, mirroring the
    kernel's numerics (bf16 MXU operands, f32 accumulation)."""
    bf16 = jnp.bfloat16

    def mm(a, w):
        return jnp.einsum("btc,cd->btd", a.astype(bf16), w.astype(bf16),
                          preferred_element_type=jnp.float32)

    x = jnp.transpose(x_ncw, (0, 2, 1)).astype(jnp.float32)
    B, T, _ = x.shape
    K = kernel_size

    def shift_right(v, s):
        if s == 0:
            return v
        pad = jnp.zeros((B, s, v.shape[-1]), v.dtype)
        return jnp.concatenate([pad, v[:, :-s, :]], axis=1)

    h = mm(x, params["w_in"]) + params["b_in"][0]
    skip = jnp.zeros((B, T, params["ws"].shape[-1]), jnp.float32)
    for l, d in enumerate(dilations):
        f = jnp.zeros((B, T, h.shape[-1]), jnp.float32)
        g = jnp.zeros_like(f)
        for k in range(K):
            s = (K - 1 - k) * d
            h_s = shift_right(h, s)
            f = f + mm(h_s, params["wf"][l, k])
            g = g + mm(h_s, params["wg"][l, k])
        f = f + params["bf"][l]
        g = g + params["bg"][l]
        z = jnp.tanh(f) * jax.nn.sigmoid(g)
        skip = skip + mm(z, params["ws"][l]) + params["bs"][l]
        h = h + mm(z, params["wr"][l]) + params["br"][l]
    p = jnp.maximum(skip, 0.0)
    p = mm(p, params["wp1"]) + params["bp1"][0]
    p = jnp.maximum(p, 0.0)
    p = mm(p, params["wp2"]) + params["bp2"][0]
    return jnp.transpose(p, (0, 2, 1))


def init_params(key, *, dconv_in, dconv_hid, dconv_out,
                pconv_in, pconv_hid, pconv_out, kernel_size, dilations):
    assert pconv_in == dconv_out, "post-conv input must match dconv output"
    L = len(dilations)
    keys = jax.random.split(key, 14)

    def w(k, shape, scale=0.1):
        return (scale * jax.random.normal(k, shape)).astype(jnp.float32)

    return {
        "w_in": w(keys[0], (dconv_in, dconv_hid)),
        "b_in": w(keys[1], (1, dconv_hid)),
        "wf":   w(keys[2], (L, kernel_size, dconv_hid, dconv_hid)),
        "bf":   w(keys[3], (L, dconv_hid)),
        "wg":   w(keys[4], (L, kernel_size, dconv_hid, dconv_hid)),
        "bg":   w(keys[5], (L, dconv_hid)),
        "wr":   w(keys[6], (L, dconv_hid, dconv_hid)),
        "br":   w(keys[7], (L, dconv_hid)),
        "ws":   w(keys[8], (L, dconv_hid, dconv_out)),
        "bs":   w(keys[9], (L, dconv_out)),
        "wp1":  w(keys[10], (pconv_in, pconv_hid)),
        "bp1":  w(keys[11], (1, pconv_hid)),
        "wp2":  w(keys[12], (pconv_hid, pconv_out)),
        "bp2":  w(keys[13], (1, pconv_out)),
    }


if __name__ == "__main__":
    # Small, WaveNet-consistent shapes.
    B, T = 2, 128
    DCONV_IN, DCONV_HID, DCONV_OUT = 4, 16, 32
    PCONV_IN, PCONV_HID, PCONV_OUT = 32, 32, 64
    KERNEL_SIZE = 2
    DILATIONS = (1, 2, 4, 8)

    key = jax.random.PRNGKey(0)
    k_params, k_x = jax.random.split(key)

    params = init_params(
        k_params,
        dconv_in=DCONV_IN, dconv_hid=DCONV_HID, dconv_out=DCONV_OUT,
        pconv_in=PCONV_IN, pconv_hid=PCONV_HID, pconv_out=PCONV_OUT,
        kernel_size=KERNEL_SIZE, dilations=DILATIONS)

    # PyTorch-style NCW input: (batch, channels, time)
    x = jax.random.normal(k_x, (B, DCONV_IN, T), dtype=jnp.float32)

    out = wavenet_forward(x, params, kernel_size=KERNEL_SIZE,
                          dilations=DILATIONS)
    out = jax.block_until_ready(out)

    ref = jax.block_until_ready(
        reference_forward(x, params, kernel_size=KERNEL_SIZE,
                          dilations=DILATIONS))

    assert out.shape == (B, PCONV_OUT, T), out.shape
    # bf16-operand matmuls in both kernel and reference; differences are only
    # accumulation order / transcendental rounding.
    assert jnp.allclose(out, ref, rtol=2e-3, atol=2e-3), "mismatch vs reference"
    print("KERNEL_OK")
</pallas_src>

<mosaic_0001>
module attributes {stable_mosaic.version = 11 : i64} {
  func.func @_wavenet_kernel(%arg0: i32, %arg1: memref<128x8xbf16, #tpu.memory_space<vmem>>, %arg2: memref<8x128xbf16, #tpu.memory_space<vmem>>, %arg3: memref<1x128xf32, #tpu.memory_space<vmem>>, %arg4: memref<4x128x512xbf16, #tpu.memory_space<vmem>>, %arg5: memref<4x256xf32, #tpu.memory_space<vmem>>, %arg6: memref<4x128x256xbf16, #tpu.memory_space<vmem>>, %arg7: memref<4x256xf32, #tpu.memory_space<vmem>>, %arg8: memref<128x128xbf16, #tpu.memory_space<vmem>>, %arg9: memref<1x128xf32, #tpu.memory_space<vmem>>, %arg10: memref<128x128xbf16, #tpu.memory_space<vmem>>, %arg11: memref<1x128xf32, #tpu.memory_space<vmem>>, %arg12: memref<128x128xf32, #tpu.memory_space<vmem>>) attributes {dimension_semantics = [#tpu.dimension_semantics<parallel>], iteration_bounds = array<i64: 2>, scalar_prefetch = 0 : i64, scratch_operands = 0 : i64, tpu.core_type = #tpu.core_type<tc>, window_params = [{transform_indices = @transform_0, window_bounds = array<i64: 128, 8>}, {pipeline_mode = #tpu.pipeline_mode<synchronous>, transform_indices = @transform_1, window_bounds = array<i64: 8, 128>}, {pipeline_mode = #tpu.pipeline_mode<synchronous>, transform_indices = @transform_2, window_bounds = array<i64: 1, 128>}, {pipeline_mode = #tpu.pipeline_mode<synchronous>, transform_indices = @transform_3, window_bounds = array<i64: 4, 128, 512>}, {pipeline_mode = #tpu.pipeline_mode<synchronous>, transform_indices = @transform_4, window_bounds = array<i64: 4, 256>}, {pipeline_mode = #tpu.pipeline_mode<synchronous>, transform_indices = @transform_5, window_bounds = array<i64: 4, 128, 256>}, {pipeline_mode = #tpu.pipeline_mode<synchronous>, transform_indices = @transform_6, window_bounds = array<i64: 4, 256>}, {pipeline_mode = #tpu.pipeline_mode<synchronous>, transform_indices = @transform_7, window_bounds = array<i64: 128, 128>}, {pipeline_mode = #tpu.pipeline_mode<synchronous>, transform_indices = @transform_8, window_bounds = array<i64: 1, 128>}, {pipeline_mode = #tpu.pipeline_mode<synchronous>, transform_indices = @transform_9, window_bounds = array<i64: 128, 128>}, {pipeline_mode = #tpu.pipeline_mode<synchronous>, transform_indices = @transform_10, window_bounds = array<i64: 1, 128>}, {transform_indices = @transform_11, window_bounds = array<i64: 128, 128>}]} {
    %0 = tpu.iota {dimensions = array<i32: 0>} : vector<128x1xi32>
    %c128_i32 = arith.constant 128 : i32
    %c0_i32 = arith.constant 0 : i32
    %1 = arith.cmpi eq, %c128_i32, %c0_i32 : i32
    %c1_i32 = arith.constant 1 : i32
    %2 = arith.select %1, %c1_i32, %c128_i32 : i32
    %3 = vector.broadcast %2 : i32 to vector<128x1xi32>
    %4 = arith.remsi %0, %3 : vector<128x1xi32>
    %c0_i32_0 = arith.constant 0 : i32
    %5 = vector.broadcast %c0_i32_0 : i32 to vector<128x1xi32>
    %6 = arith.cmpi ne, %4, %5 : vector<128x1xi32>
    %c0_i32_1 = arith.constant 0 : i32
    %7 = vector.broadcast %c0_i32_1 : i32 to vector<128x1xi32>
    %8 = arith.cmpi slt, %4, %7 : vector<128x1xi32>
    %c0_i32_2 = arith.constant 0 : i32
    %9 = arith.cmpi slt, %2, %c0_i32_2 : i32
    %10 = vector.broadcast %9 : i1 to vector<128x1xi1>
    %11 = vector.broadcast %10 : vector<128x1xi1> to vector<128x1xi1>
    %12 = arith.xori %8, %11 : vector<128x1xi1>
    %13 = arith.andi %12, %6 : vector<128x1xi1>
    %14 = vector.broadcast %2 : i32 to vector<128x1xi32>
    %15 = arith.addi %4, %14 : vector<128x1xi32>
    %16 = arith.select %13, %15, %4 : vector<128x1xi1>, vector<128x1xi32>
    %c0 = arith.constant 0 : index
    %c0_3 = arith.constant 0 : index
    %17 = vector.load %arg1[%c0, %c0_3] : memref<128x8xbf16, #tpu.memory_space<vmem>>, vector<128x8xbf16>
    %c0_4 = arith.constant 0 : index
    %c0_5 = arith.constant 0 : index
    %18 = vector.load %arg2[%c0_4, %c0_5] : memref<8x128xbf16, #tpu.memory_space<vmem>>, vector<8x128xbf16>
    %cst = arith.constant dense<0.000000e+00> : vector<128x128xf32>
    %19 = tpu.matmul %17, %18, %cst {dimension_numbers = #tpu.dot_dimension_numbers<[1], [0], [0], [1], [0, 0, 1, 1], [], []>} : vector<128x8xbf16>, vector<8x128xbf16>, vector<128x128xf32> -> vector<128x128xf32>
    %c0_6 = arith.constant 0 : index
    %c0_7 = arith.constant 0 : index
    %20 = vector.load %arg3[%c0_6, %c0_7] : memref<1x128xf32, #tpu.memory_space<vmem>>, vector<1x128xf32>
    %21 = vector.shape_cast %20 : vector<1x128xf32> to vector<128xf32>
    %22 = vector.shape_cast %21 : vector<128xf32> to vector<1x128xf32>
    %23 = vector.broadcast %22 : vector<1x128xf32> to vector<128x128xf32>
    %24 = arith.addf %19, %23 : vector<128x128xf32>
    %c0_8 = arith.constant 0 : index
    %c0_9 = arith.constant 0 : index
    %c0_10 = arith.constant 0 : index
    %25 = vector.load %arg4[%c0_8, %c0_9, %c0_10] : memref<4x128x512xbf16, #tpu.memory_space<vmem>>, vector<1x128x512xbf16>
    %26 = vector.shape_cast %25 : vector<1x128x512xbf16> to vector<128x512xbf16>
    %27 = arith.truncf %24 : vector<128x128xf32> to vector<128x128xbf16>
    %cst_11 = arith.constant dense<0.000000e+00> : vector<128x512xf32>
    %28 = tpu.matmul %27, %26, %cst_11 {dimension_numbers = #tpu.dot_dimension_numbers<[1], [0], [0], [1], [0, 0, 1, 1], [], []>} : vector<128x128xbf16>, vector<128x512xbf16>, vector<128x512xf32> -> vector<128x512xf32>
    %29 = vector.extract_strided_slice %28 {offsets = [0, 256], sizes = [128, 256], strides = [1, 1]} : vector<128x512xf32> to vector<128x256xf32>
    %30 = vector.extract_strided_slice %28 {offsets = [0, 0], sizes = [128, 256], strides = [1, 1]} : vector<128x512xf32> to vector<128x256xf32>
    %c1_i32_12 = arith.constant 1 : i32
    %31 = tpu.dynamic_rotate %30 by %c1_i32_12 dim 0 : vector<128x256xf32>, i32 -> vector<128x256xf32>
    %c1_i32_13 = arith.constant 1 : i32
    %32 = vector.broadcast %c1_i32_13 : i32 to vector<128x1xi32>
    %33 = arith.cmpi sge, %16, %32 : vector<128x1xi32>
    %cst_14 = arith.constant 0.000000e+00 : f32
    %34 = vector.shape_cast %33 : vector<128x1xi1> to vector<128x1xi1>
    %35 = vector.broadcast %34 : vector<128x1xi1> to vector<128x256xi1>
    %36 = vector.broadcast %cst_14 : f32 to vector<128x256xf32>
    %37 = arith.select %35, %31, %36 : vector<128x256xi1>, vector<128x256xf32>
    %38 = arith.addf %29, %37 : vector<128x256xf32>
    %c0_15 = arith.constant 0 : index
    %c0_16 = arith.constant 0 : index
    %39 = vector.load %arg5[%c0_15, %c0_16] : memref<4x256xf32, #tpu.memory_space<vmem>>, vector<1x256xf32>
    %40 = vector.shape_cast %39 : vector<1x256xf32> to vector<256xf32>
    %41 = vector.shape_cast %40 : vector<256xf32> to vector<1x256xf32>
    %42 = vector.broadcast %41 : vector<1x256xf32> to vector<128x256xf32>
    %43 = arith.addf %38, %42 : vector<128x256xf32>
    %44 = vector.extract_strided_slice %43 {offsets = [0, 0], sizes = [128, 128], strides = [1, 1]} : vector<128x256xf32> to vector<128x128xf32>
    %45 = math.tanh %44 : vector<128x128xf32>
    %46 = vector.extract_strided_slice %43 {offsets = [0, 128], sizes = [128, 128], strides = [1, 1]} : vector<128x256xf32> to vector<128x128xf32>
    %47 = arith.negf %46 : vector<128x128xf32>
    %48 = math.exp %47 : vector<128x128xf32>
    %cst_17 = arith.constant 1.000000e+00 : f32
    %49 = vector.broadcast %cst_17 : f32 to vector<128x128xf32>
    %50 = arith.addf %49, %48 : vector<128x128xf32>
    %51 = arith.divf %49, %50 : vector<128x128xf32>
    %52 = arith.mulf %45, %51 : vector<128x128xf32>
    %c0_18 = arith.constant 0 : index
    %c0_19 = arith.constant 0 : index
    %c0_20 = arith.constant 0 : index
    %53 = vector.load %arg6[%c0_18, %c0_19, %c0_20] : memref<4x128x256xbf16, #tpu.memory_space<vmem>>, vector<1x128x256xbf16>
    %54 = vector.shape_cast %53 : vector<1x128x256xbf16> to vector<128x256xbf16>
    %55 = arith.truncf %52 : vector<128x128xf32> to vector<128x128xbf16>
    %cst_21 = arith.constant dense<0.000000e+00> : vector<128x256xf32>
    %56 = tpu.matmul %55, %54, %cst_21 {dimension_numbers = #tpu.dot_dimension_numbers<[1], [0], [0], [1], [0, 0, 1, 1], [], []>} : vector<128x128xbf16>, vector<128x256xbf16>, vector<128x256xf32> -> vector<128x256xf32>
    %c0_22 = arith.constant 0 : index
    %c0_23 = arith.constant 0 : index
    %57 = vector.load %arg7[%c0_22, %c0_23] : memref<4x256xf32, #tpu.memory_space<vmem>>, vector<1x256xf32>
    %58 = vector.shape_cast %57 : vector<1x256xf32> to vector<256xf32>
    %59 = vector.shape_cast %58 : vector<256xf32> to vector<1x256xf32>
    %60 = vector.broadcast %59 : vector<1x256xf32> to vector<128x256xf32>
    %61 = arith.addf %56, %60 : vector<128x256xf32>
    %62 = vector.extract_strided_slice %61 {offsets = [0, 0], sizes = [128, 128], strides = [1, 1]} : vector<128x256xf32> to vector<128x128xf32>
    %63 = vector.extract_strided_slice %61 {offsets = [0, 128], sizes = [128, 128], strides = [1, 1]} : vector<128x256xf32> to vector<128x128xf32>
    %64 = arith.addf %24, %63 : vector<128x128xf32>
    %c1 = arith.constant 1 : index
    %c0_24 = arith.constant 0 : index
    %c0_25 = arith.constant 0 : index
    %65 = vector.load %arg4[%c1, %c0_24, %c0_25] : memref<4x128x512xbf16, #tpu.memory_space<vmem>>, vector<1x128x512xbf16>
    %66 = vector.shape_cast %65 : vector<1x128x512xbf16> to vector<128x512xbf16>
    %67 = arith.truncf %64 : vector<128x128xf32> to vector<128x128xbf16>
    %cst_26 = arith.constant dense<0.000000e+00> : vector<128x512xf32>
    %68 = tpu.matmul %67, %66, %cst_26 {dimension_numbers = #tpu.dot_dimension_numbers<[1], [0], [0], [1], [0, 0, 1, 1], [], []>} : vector<128x128xbf16>, vector<128x512xbf16>, vector<128x512xf32> -> vector<128x512xf32>
    %69 = vector.extract_strided_slice %68 {offsets = [0, 256], sizes = [128, 256], strides = [1, 1]} : vector<128x512xf32> to vector<128x256xf32>
    %70 = vector.extract_strided_slice %68 {offsets = [0, 0], sizes = [128, 256], strides = [1, 1]} : vector<128x512xf32> to vector<128x256xf32>
    %c2_i32 = arith.constant 2 : i32
    %71 = tpu.dynamic_rotate %70 by %c2_i32 dim 0 : vector<128x256xf32>, i32 -> vector<128x256xf32>
    %c2_i32_27 = arith.constant 2 : i32
    %72 = vector.broadcast %c2_i32_27 : i32 to vector<128x1xi32>
    %73 = arith.cmpi sge, %16, %72 : vector<128x1xi32>
    %cst_28 = arith.constant 0.000000e+00 : f32
    %74 = vector.shape_cast %73 : vector<128x1xi1> to vector<128x1xi1>
    %75 = vector.broadcast %74 : vector<128x1xi1> to vector<128x256xi1>
    %76 = vector.broadcast %cst_28 : f32 to vector<128x256xf32>
    %77 = arith.select %75, %71, %76 : vector<128x256xi1>, vector<128x256xf32>
    %78 = arith.addf %69, %77 : vector<128x256xf32>
    %c1_29 = arith.constant 1 : index
    %c0_30 = arith.constant 0 : index
    %79 = vector.load %arg5[%c1_29, %c0_30] : memref<4x256xf32, #tpu.memory_space<vmem>>, vector<1x256xf32>
    %80 = vector.shape_cast %79 : vector<1x256xf32> to vector<256xf32>
    %81 = vector.shape_cast %80 : vector<256xf32> to vector<1x256xf32>
    %82 = vector.broadcast %81 : vector<1x256xf32> to vector<128x256xf32>
    %83 = arith.addf %78, %82 : vector<128x256xf32>
    %84 = vector.extract_strided_slice %83 {offsets = [0, 0], sizes = [128, 128], strides = [1, 1]} : vector<128x256xf32> to vector<128x128xf32>
    %85 = math.tanh %84 : vector<128x128xf32>
    %86 = vector.extract_strided_slice %83 {offsets = [0, 128], sizes = [128, 128], strides = [1, 1]} : vector<128x256xf32> to vector<128x128xf32>
    %87 = arith.negf %86 : vector<128x128xf32>
    %88 = math.exp %87 : vector<128x128xf32>
    %cst_31 = arith.constant 1.000000e+00 : f32
    %89 = vector.broadcast %cst_31 : f32 to vector<128x128xf32>
    %90 = arith.addf %89, %88 : vector<128x128xf32>
    %91 = arith.divf %89, %90 : vector<128x128xf32>
    %92 = arith.mulf %85, %91 : vector<128x128xf32>
    %c1_32 = arith.constant 1 : index
    %c0_33 = arith.constant 0 : index
    %c0_34 = arith.constant 0 : index
    %93 = vector.load %arg6[%c1_32, %c0_33, %c0_34] : memref<4x128x256xbf16, #tpu.memory_space<vmem>>, vector<1x128x256xbf16>
    %94 = vector.shape_cast %93 : vector<1x128x256xbf16> to vector<128x256xbf16>
    %95 = arith.truncf %92 : vector<128x128xf32> to vector<128x128xbf16>
    %cst_35 = arith.constant dense<0.000000e+00> : vector<128x256xf32>
    %96 = tpu.matmul %95, %94, %cst_35 {dimension_numbers = #tpu.dot_dimension_numbers<[1], [0], [0], [1], [0, 0, 1, 1], [], []>} : vector<128x128xbf16>, vector<128x256xbf16>, vector<128x256xf32> -> vector<128x256xf32>
    %c1_36 = arith.constant 1 : index
    %c0_37 = arith.constant 0 : index
    %97 = vector.load %arg7[%c1_36, %c0_37] : memref<4x256xf32, #tpu.memory_space<vmem>>, vector<1x256xf32>
    %98 = vector.shape_cast %97 : vector<1x256xf32> to vector<256xf32>
    %99 = vector.shape_cast %98 : vector<256xf32> to vector<1x256xf32>
    %100 = vector.broadcast %99 : vector<1x256xf32> to vector<128x256xf32>
    %101 = arith.addf %96, %100 : vector<128x256xf32>
    %102 = vector.extract_strided_slice %101 {offsets = [0, 0], sizes = [128, 128], strides = [1, 1]} : vector<128x256xf32> to vector<128x128xf32>
    %103 = arith.addf %62, %102 : vector<128x128xf32>
    %104 = vector.extract_strided_slice %101 {offsets = [0, 128], sizes = [128, 128], strides = [1, 1]} : vector<128x256xf32> to vector<128x128xf32>
    %105 = arith.addf %64, %104 : vector<128x128xf32>
    %c2 = arith.constant 2 : index
    %c0_38 = arith.constant 0 : index
    %c0_39 = arith.constant 0 : index
    %106 = vector.load %arg4[%c2, %c0_38, %c0_39] : memref<4x128x512xbf16, #tpu.memory_space<vmem>>, vector<1x128x512xbf16>
    %107 = vector.shape_cast %106 : vector<1x128x512xbf16> to vector<128x512xbf16>
    %108 = arith.truncf %105 : vector<128x128xf32> to vector<128x128xbf16>
    %cst_40 = arith.constant dense<0.000000e+00> : vector<128x512xf32>
    %109 = tpu.matmul %108, %107, %cst_40 {dimension_numbers = #tpu.dot_dimension_numbers<[1], [0], [0], [1], [0, 0, 1, 1], [], []>} : vector<128x128xbf16>, vector<128x512xbf16>, vector<128x512xf32> -> vector<128x512xf32>
    %110 = vector.extract_strided_slice %109 {offsets = [0, 256], sizes = [128, 256], strides = [1, 1]} : vector<128x512xf32> to vector<128x256xf32>
    %111 = vector.extract_strided_slice %109 {offsets = [0, 0], sizes = [128, 256], strides = [1, 1]} : vector<128x512xf32> to vector<128x256xf32>
    %c4_i32 = arith.constant 4 : i32
    %112 = tpu.dynamic_rotate %111 by %c4_i32 dim 0 : vector<128x256xf32>, i32 -> vector<128x256xf32>
    %c4_i32_41 = arith.constant 4 : i32
    %113 = vector.broadcast %c4_i32_41 : i32 to vector<128x1xi32>
    %114 = arith.cmpi sge, %16, %113 : vector<128x1xi32>
    %cst_42 = arith.constant 0.000000e+00 : f32
    %115 = vector.shape_cast %114 : vector<128x1xi1> to vector<128x1xi1>
    %116 = vector.broadcast %115 : vector<128x1xi1> to vector<128x256xi1>
    %117 = vector.broadcast %cst_42 : f32 to vector<128x256xf32>
    %118 = arith.select %116, %112, %117 : vector<128x256xi1>, vector<128x256xf32>
    %119 = arith.addf %110, %118 : vector<128x256xf32>
    %c2_43 = arith.constant 2 : index
    %c0_44 = arith.constant 0 : index
    %120 = vector.load %arg5[%c2_43, %c0_44] : memref<4x256xf32, #tpu.memory_space<vmem>>, vector<1x256xf32>
    %121 = vector.shape_cast %120 : vector<1x256xf32> to vector<256xf32>
    %122 = vector.shape_cast %121 : vector<256xf32> to vector<1x256xf32>
    %123 = vector.broadcast %122 : vector<1x256xf32> to vector<128x256xf32>
    %124 = arith.addf %119, %123 : vector<128x256xf32>
    %125 = vector.extract_strided_slice %124 {offsets = [0, 0], sizes = [128, 128], strides = [1, 1]} : vector<128x256xf32> to vector<128x128xf32>
    %126 = math.tanh %125 : vector<128x128xf32>
    %127 = vector.extract_strided_slice %124 {offsets = [0, 128], sizes = [128, 128], strides = [1, 1]} : vector<128x256xf32> to vector<128x128xf32>
    %128 = arith.negf %127 : vector<128x128xf32>
    %129 = math.exp %128 : vector<128x128xf32>
    %cst_45 = arith.constant 1.000000e+00 : f32
    %130 = vector.broadcast %cst_45 : f32 to vector<128x128xf32>
    %131 = arith.addf %130, %129 : vector<128x128xf32>
    %132 = arith.divf %130, %131 : vector<128x128xf32>
    %133 = arith.mulf %126, %132 : vector<128x128xf32>
    %c2_46 = arith.constant 2 : index
    %c0_47 = arith.constant 0 : index
    %c0_48 = arith.constant 0 : index
    %134 = vector.load %arg6[%c2_46, %c0_47, %c0_48] : memref<4x128x256xbf16, #tpu.memory_space<vmem>>, vector<1x128x256xbf16>
    %135 = vector.shape_cast %134 : vector<1x128x256xbf16> to vector<128x256xbf16>
    %136 = arith.truncf %133 : vector<128x128xf32> to vector<128x128xbf16>
    %cst_49 = arith.constant dense<0.000000e+00> : vector<128x256xf32>
    %137 = tpu.matmul %136, %135, %cst_49 {dimension_numbers = #tpu.dot_dimension_numbers<[1], [0], [0], [1], [0, 0, 1, 1], [], []>} : vector<128x128xbf16>, vector<128x256xbf16>, vector<128x256xf32> -> vector<128x256xf32>
    %c2_50 = arith.constant 2 : index
    %c0_51 = arith.constant 0 : index
    %138 = vector.load %arg7[%c2_50, %c0_51] : memref<4x256xf32, #tpu.memory_space<vmem>>, vector<1x256xf32>
    %139 = vector.shape_cast %138 : vector<1x256xf32> to vector<256xf32>
    %140 = vector.shape_cast %139 : vector<256xf32> to vector<1x256xf32>
    %141 = vector.broadcast %140 : vector<1x256xf32> to vector<128x256xf32>
    %142 = arith.addf %137, %141 : vector<128x256xf32>
    %143 = vector.extract_strided_slice %142 {offsets = [0, 0], sizes = [128, 128], strides = [1, 1]} : vector<128x256xf32> to vector<128x128xf32>
    %144 = arith.addf %103, %143 : vector<128x128xf32>
    %145 = vector.extract_strided_slice %142 {offsets = [0, 128], sizes = [128, 128], strides = [1, 1]} : vector<128x256xf32> to vector<128x128xf32>
    %146 = arith.addf %105, %145 : vector<128x128xf32>
    %c3 = arith.constant 3 : index
    %c0_52 = arith.constant 0 : index
    %c0_53 = arith.constant 0 : index
    %147 = vector.load %arg4[%c3, %c0_52, %c0_53] : memref<4x128x512xbf16, #tpu.memory_space<vmem>>, vector<1x128x512xbf16>
    %148 = vector.shape_cast %147 : vector<1x128x512xbf16> to vector<128x512xbf16>
    %149 = arith.truncf %146 : vector<128x128xf32> to vector<128x128xbf16>
    %cst_54 = arith.constant dense<0.000000e+00> : vector<128x512xf32>
    %150 = tpu.matmul %149, %148, %cst_54 {dimension_numbers = #tpu.dot_dimension_numbers<[1], [0], [0], [1], [0, 0, 1, 1], [], []>} : vector<128x128xbf16>, vector<128x512xbf16>, vector<128x512xf32> -> vector<128x512xf32>
    %151 = vector.extract_strided_slice %150 {offsets = [0, 256], sizes = [128, 256], strides = [1, 1]} : vector<128x512xf32> to vector<128x256xf32>
    %152 = vector.extract_strided_slice %150 {offsets = [0, 0], sizes = [128, 256], strides = [1, 1]} : vector<128x512xf32> to vector<128x256xf32>
    %c8_i32 = arith.constant 8 : i32
    %153 = tpu.dynamic_rotate %152 by %c8_i32 dim 0 : vector<128x256xf32>, i32 -> vector<128x256xf32>
    %c8_i32_55 = arith.constant 8 : i32
    %154 = vector.broadcast %c8_i32_55 : i32 to vector<128x1xi32>
    %155 = arith.cmpi sge, %16, %154 : vector<128x1xi32>
    %cst_56 = arith.constant 0.000000e+00 : f32
    %156 = vector.shape_cast %155 : vector<128x1xi1> to vector<128x1xi1>
    %157 = vector.broadcast %156 : vector<128x1xi1> to vector<128x256xi1>
    %158 = vector.broadcast %cst_56 : f32 to vector<128x256xf32>
    %159 = arith.select %157, %153, %158 : vector<128x256xi1>, vector<128x256xf32>
    %160 = arith.addf %151, %159 : vector<128x256xf32>
    %c3_57 = arith.constant 3 : index
    %c0_58 = arith.constant 0 : index
    %161 = vector.load %arg5[%c3_57, %c0_58] : memref<4x256xf32, #tpu.memory_space<vmem>>, vector<1x256xf32>
    %162 = vector.shape_cast %161 : vector<1x256xf32> to vector<256xf32>
    %163 = vector.shape_cast %162 : vector<256xf32> to vector<1x256xf32>
    %164 = vector.broadcast %163 : vector<1x256xf32> to vector<128x256xf32>
    %165 = arith.addf %160, %164 : vector<128x256xf32>
    %166 = vector.extract_strided_slice %165 {offsets = [0, 0], sizes = [128, 128], strides = [1, 1]} : vector<128x256xf32> to vector<128x128xf32>
    %167 = math.tanh %166 : vector<128x128xf32>
    %168 = vector.extract_strided_slice %165 {offsets = [0, 128], sizes = [128, 128], strides = [1, 1]} : vector<128x256xf32> to vector<128x128xf32>
    %169 = arith.negf %168 : vector<128x128xf32>
    %170 = math.exp %169 : vector<128x128xf32>
    %cst_59 = arith.constant 1.000000e+00 : f32
    %171 = vector.broadcast %cst_59 : f32 to vector<128x128xf32>
    %172 = arith.addf %171, %170 : vector<128x128xf32>
    %173 = arith.divf %171, %172 : vector<128x128xf32>
    %174 = arith.mulf %167, %173 : vector<128x128xf32>
    %c3_60 = arith.constant 3 : index
    %c0_61 = arith.constant 0 : index
    %c0_62 = arith.constant 0 : index
    %175 = vector.load %arg6[%c3_60, %c0_61, %c0_62] : memref<4x128x256xbf16, #tpu.memory_space<vmem>>, vector<1x128x256xbf16>
    %176 = vector.shape_cast %175 : vector<1x128x256xbf16> to vector<128x256xbf16>
    %177 = arith.truncf %174 : vector<128x128xf32> to vector<128x128xbf16>
    %cst_63 = arith.constant dense<0.000000e+00> : vector<128x256xf32>
    %178 = tpu.matmul %177, %176, %cst_63 {dimension_numbers = #tpu.dot_dimension_numbers<[1], [0], [0], [1], [0, 0, 1, 1], [], []>} : vector<128x128xbf16>, vector<128x256xbf16>, vector<128x256xf32> -> vector<128x256xf32>
    %c3_64 = arith.constant 3 : index
    %c0_65 = arith.constant 0 : index
    %179 = vector.load %arg7[%c3_64, %c0_65] : memref<4x256xf32, #tpu.memory_space<vmem>>, vector<1x256xf32>
    %180 = vector.shape_cast %179 : vector<1x256xf32> to vector<256xf32>
    %181 = vector.shape_cast %180 : vector<256xf32> to vector<1x256xf32>
    %182 = vector.broadcast %181 : vector<1x256xf32> to vector<128x256xf32>
    %183 = arith.addf %178, %182 : vector<128x256xf32>
    %184 = vector.extract_strided_slice %183 {offsets = [0, 0], sizes = [128, 128], strides = [1, 1]} : vector<128x256xf32> to vector<128x128xf32>
    %185 = arith.addf %144, %184 : vector<128x128xf32>
    %cst_66 = arith.constant 0.000000e+00 : f32
    %186 = vector.broadcast %cst_66 : f32 to vector<128x128xf32>
    %187 = arith.maximumf %185, %186 : vector<128x128xf32>
    %c0_67 = arith.constant 0 : index
    %c0_68 = arith.constant 0 : index
    %188 = vector.load %arg8[%c0_67, %c0_68] : memref<128x128xbf16, #tpu.memory_space<vmem>>, vector<128x128xbf16>
    %189 = arith.truncf %187 : vector<128x128xf32> to vector<128x128xbf16>
    %cst_69 = arith.constant dense<0.000000e+00> : vector<128x128xf32>
    %190 = tpu.matmul %189, %188, %cst_69 {dimension_numbers = #tpu.dot_dimension_numbers<[1], [0], [0], [1], [0, 0, 1, 1], [], []>} : vector<128x128xbf16>, vector<128x128xbf16>, vector<128x128xf32> -> vector<128x128xf32>
    %c0_70 = arith.constant 0 : index
    %c0_71 = arith.constant 0 : index
    %191 = vector.load %arg9[%c0_70, %c0_71] : memref<1x128xf32, #tpu.memory_space<vmem>>, vector<1x128xf32>
    %192 = vector.shape_cast %191 : vector<1x128xf32> to vector<128xf32>
    %193 = vector.shape_cast %192 : vector<128xf32> to vector<1x128xf32>
    %194 = vector.broadcast %193 : vector<1x128xf32> to vector<128x128xf32>
    %195 = arith.addf %190, %194 : vector<128x128xf32>
    %cst_72 = arith.constant 0.000000e+00 : f32
    %196 = vector.broadcast %cst_72 : f32 to vector<128x128xf32>
    %197 = arith.maximumf %195, %196 : vector<128x128xf32>
    %c0_73 = arith.constant 0 : index
    %c0_74 = arith.constant 0 : index
    %198 = vector.load %arg10[%c0_73, %c0_74] : memref<128x128xbf16, #tpu.memory_space<vmem>>, vector<128x128xbf16>
    %199 = arith.truncf %197 : vector<128x128xf32> to vector<128x128xbf16>
    %cst_75 = arith.constant dense<0.000000e+00> : vector<128x128xf32>
    %200 = tpu.matmul %199, %198, %cst_75 {dimension_numbers = #tpu.dot_dimension_numbers<[1], [0], [0], [1], [0, 0, 1, 1], [], []>} : vector<128x128xbf16>, vector<128x128xbf16>, vector<128x128xf32> -> vector<128x128xf32>
    %c0_76 = arith.constant 0 : index
    %c0_77 = arith.constant 0 : index
    %201 = vector.load %arg11[%c0_76, %c0_77] : memref<1x128xf32, #tpu.memory_space<vmem>>, vector<1x128xf32>
    %202 = vector.shape_cast %201 : vector<1x128xf32> to vector<128xf32>
    %203 = vector.shape_cast %202 : vector<128xf32> to vector<1x128xf32>
    %204 = vector.broadcast %203 : vector<1x128xf32> to vector<128x128xf32>
    %205 = arith.addf %200, %204 : vector<128x128xf32>
    %c0_78 = arith.constant 0 : index
    %c0_79 = arith.constant 0 : index
    %206 = vector.load %arg12[%c0_78, %c0_79] : memref<128x128xf32, #tpu.memory_space<vmem>>, vector<128x128xf32>
    tpu.vector_store %arg12[%c0_78, %c0_79], %205 {strides = array<i32>} : memref<128x128xf32, #tpu.memory_space<vmem>>, vector<128x128xf32>,
    return
  }
  func.func @transform_0(%arg0: i32) -> (i32, i32) {
    %c0_i32 = arith.constant 0 : i32
    %c0_i32_0 = arith.constant 0 : i32
    return %arg0, %c0_i32 : i32, i32
  }
  func.func @transform_1(%arg0: i32) -> (i32, i32) {
    %c0_i32 = arith.constant 0 : i32
    %c0_i32_0 = arith.constant 0 : i32
    %c0_i32_1 = arith.constant 0 : i32
    return %c0_i32, %c0_i32_0 : i32, i32
  }
  func.func @transform_2(%arg0: i32) -> (i32, i32) {
    %c0_i32 = arith.constant 0 : i32
    %c0_i32_0 = arith.constant 0 : i32
    %c0_i32_1 = arith.constant 0 : i32
    return %c0_i32, %c0_i32_0 : i32, i32
  }
  func.func @transform_3(%arg0: i32) -> (i32, i32, i32) {
    %c0_i32 = arith.constant 0 : i32
    %c0_i32_0 = arith.constant 0 : i32
    %c0_i32_1 = arith.constant 0 : i32
    %c0_i32_2 = arith.constant 0 : i32
    return %c0_i32, %c0_i32_0, %c0_i32_1 : i32, i32, i32
  }
  func.func @transform_4(%arg0: i32) -> (i32, i32) {
    %c0_i32 = arith.constant 0 : i32
    %c0_i32_0 = arith.constant 0 : i32
    %c0_i32_1 = arith.constant 0 : i32
    return %c0_i32, %c0_i32_0 : i32, i32
  }
  func.func @transform_5(%arg0: i32) -> (i32, i32, i32) {
    %c0_i32 = arith.constant 0 : i32
    %c0_i32_0 = arith.constant 0 : i32
    %c0_i32_1 = arith.constant 0 : i32
    %c0_i32_2 = arith.constant 0 : i32
    return %c0_i32, %c0_i32_0, %c0_i32_1 : i32, i32, i32
  }
  func.func @transform_6(%arg0: i32) -> (i32, i32) {
    %c0_i32 = arith.constant 0 : i32
    %c0_i32_0 = arith.constant 0 : i32
    %c0_i32_1 = arith.constant 0 : i32
    return %c0_i32, %c0_i32_0 : i32, i32
  }
  func.func @transform_7(%arg0: i32) -> (i32, i32) {
    %c0_i32 = arith.constant 0 : i32
    %c0_i32_0 = arith.constant 0 : i32
    %c0_i32_1 = arith.constant 0 : i32
    return %c0_i32, %c0_i32_0 : i32, i32
  }
  func.func @transform_8(%arg0: i32) -> (i32, i32) {
    %c0_i32 = arith.constant 0 : i32
    %c0_i32_0 = arith.constant 0 : i32
    %c0_i32_1 = arith.constant 0 : i32
    return %c0_i32, %c0_i32_0 : i32, i32
  }
  func.func @transform_9(%arg0: i32) -> (i32, i32) {
    %c0_i32 = arith.constant 0 : i32
    %c0_i32_0 = arith.constant 0 : i32
    %c0_i32_1 = arith.constant 0 : i32
    return %c0_i32, %c0_i32_0 : i32, i32
  }
  func.func @transform_10(%arg0: i32) -> (i32, i32) {
    %c0_i32 = arith.constant 0 : i32
    %c0_i32_0 = arith.constant 0 : i32
    %c0_i32_1 = arith.constant 0 : i32
    return %c0_i32, %c0_i32_0 : i32, i32
  }
  func.func @transform_11(%arg0: i32) -> (i32, i32) {
    %c0_i32 = arith.constant 0 : i32
    %c0_i32_0 = arith.constant 0 : i32
    return %arg0, %c0_i32 : i32, i32
  }
}

</mosaic_0001>

<bundles_post_ra>
// kernel: tpu_custom_call.1
= control target key start
LH: loop header
LB: loop body
LE: loop exit
PB: predicated region body
PF: predicated region fallthrough
CT: control target
= control target key end

     0   :  { %s10056_s0 = inlined_call_operand.vmem [shape: bf16[256,8], index: 0, kind: input, shape index: {}]   ;;  %s10057_s1 = inlined_call_operand.hbm [shape: bf16[8,128], index: 1, kind: input, shape index: {}]   ;;  %s10058_s2 = inlined_call_operand.vmem [shape: f32[1,128], index: 2, kind: input, shape index: {}]   ;;  %s10059_s3 = inlined_call_operand.hbm [shape: bf16[4,128,512], index: 3, kind: input, shape index: {}]   ;;  %s10060_s4 = inlined_call_operand.vmem [shape: f32[4,256], index: 4, kind: input, shape index: {}]   ;;  %s10061_s5 = inlined_call_operand.hbm [shape: bf16[4,128,256], index: 5, kind: input, shape index: {}]   ;;  %s10062_s6 = inlined_call_operand.hbm [shape: f32[4,256], index: 6, kind: input, shape index: {}]   ;;  %s10063_s7 = inlined_call_operand.vmem [shape: bf16[128,128], index: 7, kind: input, shape index: {}]   ;;  %s10064_s8 = inlined_call_operand.vmem [shape: f32[1,128], index: 8, kind: input, shape index: {}]   ;;  %s10065_s9 = inlined_call_operand.vmem [shape: bf16[128,128], index: 9, kind: input, shape index: {}]   ;;  %s10066_s10 = inlined_call_operand.vmem [shape: f32[1,128], index: 10, kind: input, shape index: {}]   ;;  %s10067_s11 = inlined_call_operand.hbm [shape: f32[256,128], index: 11, kind: output, shape index: {}]  }
   0x1   :  { %10111 = sst [smem:[#allocation44_spill]] %s10057_s1 }
   0x2   :  { %10112 = sst [smem:[#allocation45_spill]] %s10059_s3 }
   0x3   :  { %16 = vsyncpa [#allocation3], 0 }
   0x4   :  { %17 = vsyncpa [#allocation6], 0 }
   0x5   :  { %18 = vsyncpa [#allocation9], 0 }
   0x6   :  { %19 = vsyncpa [#allocation4], 0 }
   0x7   :  { %21 = vsyncpa [#allocation4 + $0x1], 0  ;;  %s7690_s17 = smov 0   ;;  %s7692_s18 = smov 0  }
   0x8   :  { %s7694_s19 = smov 0   ;;  %s7696_s20 = smov 0  }
   0x9 LB: > { %10113 = sst [smem:[#allocation15_spill]] %s7606_s17  ;;  %s7711_s21 = sadd.s32 4294967295, %s7618_s20   ;;  %s7618_s20 = sphi %s7696_s20, %s10252_s20   ;;  %s7614_s19 = sphi %s7694_s19, %s10254_s19   ;;  %s7610_s18 = sphi %s7692_s18, %s10256_s18   ;;  %s7606_s17 = sphi %s7690_s17, %s10255_s17  }
   0xa   : > { %10114 = sst [smem:[#allocation16_spill]] %s7614_s19  ;;  %s5797_s22 = sadd.s32 4294967294, %s7618_s20  }
   0xb   : > { %10115 = sst [smem:[#allocation17_spill]] %s7618_s20  ;;  %s7715_s23 = sadd.s32 1, %s7618_s20  }
   0xc   : > { %10116 = sst [smem:[#allocation18_spill]] %s7715_s23  ;;  %s270_s24 = sadd.s32 1, %s7614_s19 }
   0xd   : > { %s267_s25 = ssub.s32 %s7618_s20, %s7715_s23  ;;  %p280_p0 = scmp.ne.s32.totalorder %s7614_s19, %s7610_s18 }
   0xe   : > { %p268_p1 = scmp.eq.s32.totalorder %s267_s25, 0  ;;  %p281_p2 = scmp.eq.s32.totalorder %s7711_s21, 1 }
   0xf   : > { %p286_p3 = scmp.ne.s32.totalorder %s7610_s18, %s7606_s17  ;;  %p287_p4 = scmp.eq.s32.totalorder %s5797_s22, 1 }
  0x10   : > { %s7726_s26 = scalar_select %p268_p1, %s7614_s19, %s270_s24  }
  0x11   : > { %p7728_p5 = por %p281_p2, %p280_p0  ;;  %p7732_p6 = por %p287_p4, %p286_p3 }
  0x12   : > { %10117 = sst [smem:[#allocation19_spill]] %s7726_s26  ;;  %p5798_p7 = scmp.ge.s32.totalorder %s7618_s20, 1 }
  0x13   : > { %s10119_s28 = scalar_select %p7732_p6, 1, 0 }
  0x14   : > { %p294_p8 = scmp.lt.s32.totalorder %s7618_s20, 3  ;;  %p6985_p9 = scmp.eq.s32.totalorder %s7711_s21, 0 }
  0x15   : > { %10120 = sst [smem:[#allocation20_spill]] %s10119_s28  ;;  %s7620_s14 = smov [#allocation5]  }
  0x16   : > { %p7739_p10 = pnand %p5798_p7, %p294_p8  ;;  %s10122_s3 = sld [smem:[#allocation45_spill]] }
  0x17   : > { %s322_s15 = sshll.u32 %s7620_s14, 4  ;;  %s10124_s1 = sld [smem:[#allocation44_spill]]  ;;  %s323_s15 = int_to_ptr.vmem [resolvable:$true] %s322_s15 }
  0x18   : > { %p6968_p11 = pneg %p7739_p10  ;;  %s7621_s30 = smov 256  }
  0x19   : > { %s7622_s12 = smov 16   ;;  %s337_s23 = sshll.u32 %s10061_s5, 4  ;;  %s338_s23 = int_to_ptr.hbm [resolvable:$true] %s337_s23 }
  0x1a   : > { %p7750_p12 = pnand %p6985_p9, %p6968_p11  ;;  %s7624_s22 = smov [#allocation7]  }
  0x1b   : > { %s339_s24 = sshll.u32 %s7624_s22, 4  ;;  %s352_s17 = sshll.u32 %s10062_s6, 4  ;;  %s340_s24 = int_to_ptr.vmem [resolvable:$true] %s339_s24  ;;  %s353_s17 = int_to_ptr.hbm [resolvable:$true] %s352_s17 }
  0x1c   : > { %s320_s13 = sshll.u32 %s10122_s3, 4  ;;  %s7623_s3 = smov [#allocation2]   ;;  %s321_s13 = int_to_ptr.hbm [resolvable:$true] %s320_s13 }
  0x1d   : > { %s306_s25 = sshll.u32 %s10124_s1, 4  ;;  %s308_s14 = sshll.u32 %s7623_s3, 4  ;;  %s307_s25 = int_to_ptr.hbm [resolvable:$true] %s306_s25  ;;  %s309_s14 = int_to_ptr.vmem [resolvable:$true] %s308_s14 }
  0x1e   : > { %6974 = dma.hbm_to_vmem [thread:$0]  (!%p7750_p12), %s321_s13, 16384, %s323_s15, [#allocation6], %s7621_s30, %s7621_s30, %s7622_s12  }
  0x1f   : > { %6971 = dma.hbm_to_vmem [thread:$0]  (!%p7750_p12), %s307_s25, 64, %s309_s14, [#allocation3]  }
  0x20   : > { %s7625_s20 = smov 128   ;;  %s7626_s13 = smov 8  }
  0x21   : > { %6977 = dma.hbm_to_vmem [thread:$0]  (!%p7750_p12), %s338_s23, 8192, %s340_s24, [#allocation6], %s7625_s20, %s7625_s20, %s7626_s13  }
  0x22   : > { %s7627_s3 = smov [#allocation8]   ;;  %388 = sbr.rel (%p7739_p10) target bundleno = 2306 (0x902), region = 64 }
  0x23   : > { %s354_s19 = sshll.u32 %s7627_s3, 4  ;;  %s355_s19 = int_to_ptr.vmem [resolvable:$true] %s354_s19 }
  0x24   : > { %6980 = dma.hbm_to_vmem [thread:$0]  (!%p7750_p12), %s353_s17, 128, %s355_s19, [#allocation9]  }
  0x27   : > { %7589 = dma.done.wait (%p6985_p9), [#allocation3], 64  }
  0x28   : > { %7591 = vsyncadd (%p6985_p9), [#allocation3], 4294967232 }
  0x29   : > { %7593 = dma.done.wait (%p6985_p9), [#allocation6], 24576  }
  0x2a   : > { %7595 = vsyncadd (%p6985_p9), [#allocation6], 4294942720 }
  0x2b   : > { %7597 = dma.done.wait (%p6985_p9), [#allocation9], 128  }
  0x2c   : > { %7599 = vsyncadd (%p6985_p9), [#allocation9], 4294967168  ;;  %s5810_s1 = sshll.u32 %s7711_s21, 4  ;;  %vm747_vm0 = vcmask 1043456   ;;  %v677_v0 = vld [vmem:[#allocation2] sm:$0xf] }
  0x2d   : > { %p445_p13 = scmp.lt.s32.totalorder %s5810_s1, 31  ;;  %v749_v1 = vsel %vm747_vm0, %v677_v0, 0  ;;  %vm722_vm1 = vcmask 64512   ;;  %v5966_v8 = vld [vmem:[#allocation5 + $0xe0] sm:$0xf]  ;;  %s441_s22 = sand.u32 1, %s7610_s18  }
  0x2e   : > { %758 = vmatpush.bf16.msra.mxu0 %v749_v1  ;;  %6933 = vmatpush.bf16.msra.mxu3 %v749_v1  ;;  %v6762_v9 = vld [vmem:[#allocation5 + $0xec] sm:$0xf0]  ;;  %v6761_v10 = vld [vmem:[#allocation5 + $0xec] sm:$0xf]  ;;  %v5976_v12 = vld [vmem:[#allocation5 + $0xf8] sm:$0xf0] }
  0x2f   : > { %s10258_s1 = smov (!%p445_p13, %s5810_s1), 31  ;;  %v5967_v11 = vor.u32 %v6762_v9, %v5966_v8  ;;  %v5950_v13 = vld [vmem:[#allocation5 + $0xc0] sm:$0xf]  ;;  %v6758_v14 = vld [vmem:[#allocation5 + $0xcc] sm:$0xf0]  ;;  %v5979_v15 = vor.u32 %v6761_v10, %v5976_v12  ;;  %s5809_s24 = sshll.u32 %s441_s22, 7 }
  0x30   : > { %s5811_s17 = sshll.u32 %s10258_s1, 2  ;;  %v6757_v16 = vld [vmem:[#allocation5 + $0xcc] sm:$0xf]  ;;  %v5960_v17 = vld [vmem:[#allocation5 + $0xd8] sm:$0xf0]  ;;  %v5951_v18 = vor.u32 %v6758_v14, %v5950_v13  ;;  %s10004_s19 = scalar_lea.vmem [#allocation10], %s5809_s24 }
  0x31   : > { %s7789_s26 = scalar_lea.vmem %s10056_s0, %s5811_s17  ;;  %1000 = vmatpush.bf16.msra.mxu1 %v5967_v11  ;;  %v5963_v19 = vor.u32 %v6757_v16, %v5960_v17  ;;  %v5934_v20 = vld [vmem:[#allocation5 + $0xa0] sm:$0xf]  ;;  %v6754_v21 = vld [vmem:[#allocation5 + $0xac] sm:$0xf0]  ;;  %6934 = vmatpush.bf16.msra.mxu2 %v5967_v11  ;;  %v6753_v22 = vld [vmem:[#allocation5 + $0xac] sm:$0xf] }
  0x32   : > { %v6724_v2 = vld [vmem:[%s7789_s26] sm:$0xff]  ;;  %v6729_v3 = vld [vmem:[%s7789_s26 + $0x28] sm:$0xff]  ;;  %v6730_v5 = vld [vmem:[%s7789_s26 + $0x30] sm:$0xff]  ;;  %6935 = vmatpush.bf16.msrb.mxu3 %v5967_v11  ;;  %1147 = vmatpush.bf16.msrb.mxu0 %v5979_v15  ;;  %v5935_v24 = vor.u32 %v6754_v21, %v5934_v20  ;;  %s6932_s1 = sshll.u32 %s7711_s21, 7  ;;  %s5679_s29 = scalar_lea.sflag [#allocation4], %s441_s22 }
  0x33   : > { %5844 = vmatmul.msk.bf16.vlgmr.msra.gmra.mxu0 %vm722_vm1, %v6724_v2  ;;  %5849 = vmatmul.msk.bf16.vlgmr.msra.gmra.mxu3 %vm722_vm1, %v6729_v3  ;;  %v6725_v4 = vld [vmem:[%s7789_s26 + $0x8] sm:$0xff]  ;;  %v6726_v6 = vld [vmem:[%s7789_s26 + $0x10] sm:$0xff]  ;;  %v6731_v7 = vld [vmem:[%s7789_s26 + $0x38] sm:$0xff]  ;;  %s5690_s23 = scalar_lea.hbm %s10067_s11, %s6932_s1  ;;  %s7564_s30 = scalar_lea.hbm %s10067_s11, 256 }
  0x34   : > { %v5944_v23 = vld [vmem:[#allocation5 + $0xb8] sm:$0xf0]  ;;  %v5918_v26 = vld [vmem:[#allocation5 + $0x80] sm:$0xf]  ;;  %v6750_v27 = vld [vmem:[#allocation5 + $0x8c] sm:$0xf0] }
  0x35   : > { %1001 = vmatpush.bf16.msra.mxu1 %v5951_v18  ;;  %v5947_v25 = vor.u32 %v6753_v22, %v5944_v23  ;;  %6936 = vmatpush.bf16.msra.mxu2 %v5951_v18  ;;  %v6749_v28 = vld [vmem:[#allocation5 + $0x8c] sm:$0xf]  ;;  %v5928_v29 = vld [vmem:[#allocation5 + $0x98] sm:$0xf0]  ;;  %v5919_v30 = vor.u32 %v6750_v27, %v5918_v26  ;;  %v6727_v31 = vld [vmem:[%s7789_s26 + $0x18] sm:$0xff]  ;;  %s5693_s28 = sshll.u32 %s5690_s23, 4  ;;  %s5694_s28 = int_to_ptr.hbm [resolvable:$true] %s5693_s28 }
  0x36   : > { %6937 = vmatpush.bf16.msrb.mxu3 %v5951_v18  ;;  %1148 = vmatpush.bf16.msrb.mxu0 %v5963_v19  ;;  %v5902_v32 = vld [vmem:[#allocation5 + $0x60] sm:$0xf]  ;;  %v6746_v33 = vld [vmem:[#allocation5 + $0x6c] sm:$0xf0]  ;;  %v5931_v34 = vor.u32 %v6749_v28, %v5928_v29  ;;  %v6745_v35 = vld [vmem:[#allocation5 + $0x6c] sm:$0xf] }
  0x37   : > { %v5912_v36 = vld [vmem:[#allocation5 + $0x78] sm:$0xf0]  ;;  %v5903_v37 = vor.u32 %v6746_v33, %v5902_v32  ;;  %v5886_v40 = vld [vmem:[#allocation5 + $0x40] sm:$0xf]  ;;  %v6742_v41 = vld [vmem:[#allocation5 + $0x4c] sm:$0xf0] }
  0x38   : > { %v5915_v38 = vor.u32 %v6745_v35, %v5912_v36  ;;  %v6728_v39 = vld [vmem:[%s7789_s26 + $0x20] sm:$0xff]  ;;  %v6741_v42 = vld [vmem:[#allocation5 + $0x4c] sm:$0xf]  ;;  %v5887_v43 = vor.u32 %v6742_v41, %v5886_v40  ;;  %v6738_v47 = vld [vmem:[#allocation5 + $0x2c] sm:$0xf0]  ;;  %s5691_s26 = sshll.u32 %s10004_s19, 4  ;;  %s5692_s26 = int_to_ptr.vmem [resolvable:$true] %s5691_s26 }
  0x39   : > { %1002 = vmatpush.bf16.msra.mxu1 %v5935_v24  ;;  %6938 = vmatpush.bf16.msra.mxu2 %v5935_v24  ;;  %v5896_v44 = vld [vmem:[#allocation5 + $0x58] sm:$0xf0]  ;;  %v5870_v46 = vld [vmem:[#allocation5 + $0x20] sm:$0xf]  ;;  %v6737_v48 = vld [vmem:[#allocation5 + $0x2c] sm:$0xf] }
  0x3a   : > { %6939 = vmatpush.bf16.msrb.mxu3 %v5935_v24  ;;  %1149 = vmatpush.bf16.msrb.mxu0 %v5947_v25  ;;  %v5899_v45 = vor.u32 %v6741_v42, %v5896_v44  ;;  %v5871_v49 = vor.u32 %v6738_v47, %v5870_v46  ;;  %v5880_v50 = vld [vmem:[#allocation5 + $0x38] sm:$0xf0]  ;;  %v5854_v52 = vld [vmem:[#allocation5] sm:$0xf]  ;;  %v6734_v53 = vld [vmem:[#allocation5 + $0xc] sm:$0xf0] }
  0x3b   : > { %v5883_v51 = vor.u32 %v6737_v48, %v5880_v50  ;;  %v6733_v54 = vld [vmem:[#allocation5 + $0xc] sm:$0xf]  ;;  %v5855_v55 = vor.u32 %v6734_v53, %v5854_v52  ;;  %v5864_v56 = vld [vmem:[#allocation5 + $0x18] sm:$0xf0]  ;;  %v5974_v59 = vld [vmem:[#allocation5 + $0xe8] sm:$0xf] }
  0x3c   : > { %v5867_v57 = vor.u32 %v6733_v54, %v5864_v56  ;;  %v6763_v60 = vld [vmem:[#allocation5 + $0xf4] sm:$0xf0]  ;;  %v7810_v62 = vld [vmem:[%s10058_s2] ss:$0 sm:$0xff]  ;;  %v5958_v63 = vld [vmem:[#allocation5 + $0xc8] sm:$0xf] }
  0x3d   : > { %1003 = vmatpush.bf16.msra.mxu1 %v5919_v30  ;;  %6940 = vmatpush.bf16.msra.mxu2 %v5919_v30  ;;  %v5975_v61 = vor.u32 %v6763_v60, %v5974_v59  ;;  %v6759_v0 = vld [vmem:[#allocation5 + $0xd4] sm:$0xf0]  ;;  %v6760_v10 = vld [vmem:[#allocation5 + $0xe4] sm:$0xf]  ;;  %v5968_v11 = vld [vmem:[#allocation5 + $0xf0] sm:$0xf0] }
  0x3e   : > { %6941 = vmatpush.bf16.msrb.mxu3 %v5919_v30  ;;  %1150 = vmatpush.bf16.msrb.mxu0 %v5931_v34  ;;  %v5959_v2 = vor.u32 %v6759_v0, %v5958_v63  ;;  %v5926_v12 = vld [vmem:[#allocation5 + $0x88] sm:$0xf]  ;;  %v5971_v14 = vor.u32 %v6760_v10, %v5968_v11  ;;  %v6751_v15 = vld [vmem:[#allocation5 + $0x94] sm:$0xf0]  ;;  %v6756_v21 = vld [vmem:[#allocation5 + $0xc4] sm:$0xf] }
  0x3f   : > { %v5927_v16 = vor.u32 %v6751_v15, %v5926_v12  ;;  %v5910_v18 = vld [vmem:[#allocation5 + $0x68] sm:$0xf]  ;;  %v6747_v19 = vld [vmem:[#allocation5 + $0x74] sm:$0xf0]  ;;  %v5952_v22 = vld [vmem:[#allocation5 + $0xd0] sm:$0xf0] }
  0x40   : > { %v5911_v20 = vor.u32 %v6747_v19, %v5910_v18  ;;  %v5955_v23 = vor.u32 %v6756_v21, %v5952_v22  ;;  %v5894_v24 = vld [vmem:[#allocation5 + $0x48] sm:$0xf]  ;;  %v6743_v25 = vld [vmem:[#allocation5 + $0x54] sm:$0xf0]  ;;  %v6752_v36 = vld [vmem:[#allocation5 + $0xa4] sm:$0xf] }
  0x41   : > { %1004 = vmatpush.bf16.msra.mxu1 %v5903_v37  ;;  %6942 = vmatpush.bf16.msra.mxu2 %v5903_v37  ;;  %v5895_v27 = vor.u32 %v6743_v25, %v5894_v24  ;;  %v6739_v32 = vld [vmem:[#allocation5 + $0x34] sm:$0xf0]  ;;  %v6748_v46 = vld [vmem:[#allocation5 + $0x84] sm:$0xf]  ;;  %v5920_v47 = vld [vmem:[#allocation5 + $0x90] sm:$0xf0] }
  0x42   : > { %6943 = vmatpush.bf16.msrb.mxu3 %v5903_v37  ;;  %1151 = vmatpush.bf16.msrb.mxu0 %v5915_v38  ;;  %v5936_v37 = vld [vmem:[#allocation5 + $0xb0] sm:$0xf0]  ;;  %v5862_v38 = vld [vmem:[#allocation5 + $0x8] sm:$0xf]  ;;  %v6735_v41 = vld [vmem:[#allocation5 + $0x14] sm:$0xf0]  ;;  %v5923_v48 = vor.u32 %v6748_v46, %v5920_v47 }
  0x43   : > { %5845 = vmatmul.msk.bf16.gmra.mxu0 %vm722_vm1, %v6725_v4  ;;  %5850 = vmatmul.msk.bf16.gmra.mxu3 %vm722_vm1, %v6730_v5  ;;  %v5939_v40 = vor.u32 %v6752_v36, %v5936_v37  ;;  %v5904_v56 = vld [vmem:[#allocation5 + $0x70] sm:$0xf0]  ;;  %v6740_v63 = vld [vmem:[#allocation5 + $0x44] sm:$0xf]  ;;  %s7558_s15 = sshra.s32 %s5694_s28, 4  ;;  %s7559_s15 = int_to_ptr.hbm [resolvable:$true] %s7558_s15 }
  0x44   : > { %v5888_v0 = vld [vmem:[#allocation5 + $0x50] sm:$0xf0]  ;;  %v6736_v10 = vld [vmem:[#allocation5 + $0x24] sm:$0xf]  ;;  %s7560_s16 = scalar_lea.hbm %s7559_s15, 128  ;;  %p7565_p3 = scmp.lt.s32.totalorder %s7559_s15, %s10067_s11 }
  0x45   : > { %1005 = vmatpush.bf16.msra.mxu1 %v5887_v43  ;;  %6944 = vmatpush.bf16.msra.mxu2 %v5887_v43  ;;  %v5872_v11 = vld [vmem:[#allocation5 + $0x30] sm:$0xf0]  ;;  %v6732_v15 = vld [vmem:[#allocation5 + $0x4] sm:$0xf]  ;;  %p7561_p0 = scmp.ne.s32.totalorder %s7559_s15, %s7560_s16  ;;  %p7566_p4 = scmp.lt.s32.totalorder %s7564_s30, %s7560_s16 }
  0x46   : > { %6945 = vmatpush.bf16.msrb.mxu3 %v5887_v43  ;;  %1152 = vmatpush.bf16.msrb.mxu0 %v5899_v45  ;;  %v5863_v43 = vor.u32 %v6735_v41, %v5862_v38  ;;  %v5875_v12 = vor.u32 %v6736_v10, %v5872_v11 }
  0x47   : > { %p7562_p1 = pnand %p7561_p0, %p7728_p5  ;;  %p7567_p7 = por %p7566_p4, %p7565_p3 }
  0x49   : > { %1006 = vmatpush.bf16.msra.mxu1 %v5871_v49  ;;  %6946 = vmatpush.bf16.msra.mxu2 %v5871_v49  ;;  %p7563_p2 = pneg %p7562_p1 }
  0x4a   : > { %6947 = vmatpush.bf16.msrb.mxu3 %v5871_v49  ;;  %1153 = vmatpush.bf16.msrb.mxu0 %v5883_v51 }
  0x4b   : > { %p7568_p8 = pnand %p7567_p7, %p7563_p2 }
  0x4d   : > { %1007 = vmatpush.bf16.msra.mxu1 %v5855_v55  ;;  %6948 = vmatpush.bf16.msra.mxu2 %v5855_v55 }
  0x4e   : > { %6949 = vmatpush.bf16.msrb.mxu3 %v5855_v55  ;;  %1154 = vmatpush.bf16.msrb.mxu0 %v5867_v57  ;;  %v6744_v55 = vld [vmem:[#allocation5 + $0x64] sm:$0xf] }
  0x51   : > { %1049 = vmatpush.bf16.msrb.mxu2 %v5971_v14 }
  0x52   : > { %1098 = vmatpush.bf16.msra.mxu3 %v5975_v61 }
  0x53   : > { %5846 = vmatmul.msk.bf16.gmra.mxu0 %vm722_vm1, %v6726_v6  ;;  %5851 = vmatmul.msk.bf16.gmra.mxu3 %vm722_vm1, %v6731_v7  ;;  %v5942_v6 = vld [vmem:[#allocation5 + $0xa8] sm:$0xf]  ;;  %v6755_v7 = vld [vmem:[#allocation5 + $0xb4] sm:$0xf0] }
  0x54   : > { %v5943_v8 = vor.u32 %v6755_v7, %v5942_v6 }
  0x55   : > { %1050 = vmatpush.bf16.msrb.mxu2 %v5955_v23 }
  0x56   : > { %1099 = vmatpush.bf16.msra.mxu3 %v5959_v2  ;;  %v5891_v2 = vor.u32 %v6740_v63, %v5888_v0 }
  0x59   : > { %1051 = vmatpush.bf16.msrb.mxu2 %v5939_v40 }
  0x5a   : > { %1100 = vmatpush.bf16.msra.mxu3 %v5943_v8 }
  0x5d   : > { %1052 = vmatpush.bf16.msrb.mxu2 %v5923_v48 }
  0x5e   : > { %1101 = vmatpush.bf16.msra.mxu3 %v5927_v16  ;;  %v5856_v16 = vld [vmem:[#allocation5 + $0x10] sm:$0xf0] }
  0x62   : > { %1102 = vmatpush.bf16.msra.mxu3 %v5911_v20 }
  0x63   : > { %5847 = vmatmul.msk.bf16.gmra.mxu0 %vm722_vm1, %v6727_v31  ;;  %v5878_v31 = vld [vmem:[#allocation5 + $0x28] sm:$0xf] }
  0x64   : > { %v5879_v33 = vor.u32 %v6739_v32, %v5878_v31 }
  0x66   : > { %1103 = vmatpush.bf16.msra.mxu3 %v5895_v27 }
  0x6a   : > { %1104 = vmatpush.bf16.msra.mxu3 %v5879_v33 }
  0x6e   : > { %1105 = vmatpush.bf16.msra.mxu3 %v5863_v43 }
  0x73   : > { %5848 = vmatmul.msk.bf16.gmra.mxu0 %vm722_vm1, %v6728_v39 }
  0xb0   : > { %v760_v58 = vpop.f32.mrf.mxu0 }
  0xb1   : > { %v7815_v4 = vadd.f32 %v7810_v62, %v760_v58  ;;  %v5907_v58 = vor.u32 %v6744_v55, %v5904_v56 }
  0xb3   : > { %1053 = vmatpush.bf16.msrb.mxu2 %v5907_v58  ;;  %v452_v58 = vlaneseq }
  0xb5   : > { %v7952_v63 = vshrl.u32 %v452_v58, 7 }
  0xb6   : > { %v7812_v1 = vpop.f32.mrf.mxu3 }
  0xb7   : > { %1054 = vmatpush.bf16.msrb.mxu2 %v5891_v2  ;;  %v7887_v22 = vadd.f32 %v7810_v62, %v7812_v1  ;;  %vm1228_vm2 = vcmp.lt.s32.totalorder %v7952_v63, 1 }
  0xb8   : > { %v762_v3 = vpop.f32.mrf.mxu0 }
  0xb9   : > { %v7818_v5 = vadd.f32 %v7810_v62, %v762_v3  ;;  %10134 = vst [vmem:[#allocation30_spill] sm:$0xff] %v7887_v22 }
  0xbb   : > { %v7822_v9 = vpack.c.bf16 %v7818_v5, %v7815_v4  ;;  %1055 = vmatpush.bf16.msrb.mxu2 %v5875_v12  ;;  %v6776_v12 = vld [vmem:[#allocation7 + $0x64] sm:$0xf] }
  0xbd   : > { %1008 = vmatmul.bf16.vlgmr.msra.gmra.mxu1 %v7822_v9  ;;  %1155 = vmatmul.bf16.vlgmr.msrb.gmra.mxu0 %v7822_v9 }
  0xbe   : > { %v7826_v13 = vpop.f32.mrf.mxu3 }
  0xbf   : > { %v7891_v23 = vadd.f32 %v7810_v62, %v7826_v13 }
  0xc0   : > { %v765_v17 = vpop.f32.mrf.mxu0 }
  0xc1   : > { %v7829_v29 = vadd.f32 %v7810_v62, %v765_v17  ;;  %v5859_v17 = vor.u32 %v6732_v15, %v5856_v16  ;;  %10135 = vst [vmem:[#allocation31_spill] sm:$0xff] %v7891_v23  ;;  %v837_v24 = vpack.c.bf16 %v7891_v23, %v7887_v22 }
  0xc3   : > { %1056 = vmatpush.bf16.msrb.mxu2 %v5859_v17 }
  0xc6   : > { %v790_v26 = vpop.f32.mrf.mxu3 }
  0xc7   : > { %v7839_v35 = vadd.f32 %v7810_v62, %v790_v26 }
  0xc8   : > { %v767_v28 = vpop.f32.mrf.mxu0 }
  0xc9   : > { %v7832_v30 = vadd.f32 %v7810_v62, %v767_v28  ;;  %10125 = vst [vmem:[#allocation21_spill] sm:$0xff] %v7839_v35 }
  0xcb   : > { %v7836_v34 = vpack.c.bf16 %v7832_v30, %v7829_v29 }
  0xcd   : > { %1013 = vmatmul.bf16.gmra.mxu1 %v7836_v34  ;;  %1160 = vmatmul.bf16.gmra.mxu0 %v7836_v34 }
  0xce   : > { %v792_v39 = vpop.f32.mrf.mxu3 }
  0xcf   : > { %v7844_v42 = vadd.f32 %v7810_v62, %v792_v39 }
  0xd0   : > { %v770_v44 = vpop.f32.mrf.mxu0 }
  0xd1   : > { %10126 = vst [vmem:[#allocation22_spill] sm:$0xff] %v7844_v42  ;;  %v7848_v45 = vpack.c.bf16 %v7844_v42, %v7839_v35  ;;  %v7852_v51 = vadd.f32 %v7810_v62, %v770_v44 }
  0xd3   : > { %1038 = vmatmul.bf16.vlgmr.msrb.gmra.mxu3 %v7848_v45 }
  0xd6   : > { %v795_v49 = vpop.f32.mrf.mxu3 }
  0xd7   : > { %v7860_v54 = vadd.f32 %v7810_v62, %v795_v49 }
  0xd8   : > { %v772_v50 = vpop.f32.mrf.mxu0 }
  0xd9   : > { %v7855_v52 = vadd.f32 %v7810_v62, %v772_v50  ;;  %10128 = vst [vmem:[#allocation24_spill] sm:$0xff] %v7860_v54  ;;  %v6778_v50 = vld [vmem:[#allocation7 + $0x74] sm:$0xf] }
  0xdb   : > { %10127 = vst [vmem:[#allocation23_spill] sm:$0xff] %v7855_v52  ;;  %v834_v53 = vpack.c.bf16 %v7855_v52, %v7852_v51  ;;  %v8026_v52 = vand.u32 127, %v7952_v63 }
  0xdd   : > { %1018 = vmatmul.bf16.vlgmr.msra.gmra.mxu2 %v834_v53  ;;  %1165 = vmatmul.bf16.gmra.mxu0 %v834_v53 }
  0xde   : > { %v797_v57 = vpop.f32.mrf.mxu3 }
  0xdf   : > { %v7863_v59 = vadd.f32 %v7810_v62, %v797_v57 }
  0xe0   : > { %v775_v60 = vpop.f32.mrf.mxu0 }
  0xe1   : > { %10129 = vst [vmem:[#allocation25_spill] sm:$0xff] %v7863_v59  ;;  %v839_v61 = vpack.c.bf16 %v7863_v59, %v7860_v54  ;;  %v7868_v6 = vadd.f32 %v7810_v62, %v775_v60 }
  0xe3   : > { %1043 = vmatmul.bf16.gmra.mxu3 %v839_v61  ;;  %10130 = vst [vmem:[#allocation26_spill] sm:$0xff] %v7868_v6 }
  0xe8   : > { %v777_v3 = vpop.f32.mrf.mxu0 }
  0xe9   : > { %v7871_v7 = vadd.f32 %v7810_v62, %v777_v3 }
  0xeb   : > { %10131 = vst [vmem:[#allocation27_spill] sm:$0xff] %v7871_v7  ;;  %v835_v8 = vpack.c.bf16 %v7871_v7, %v7868_v6 }
  0xed   : > { %1023 = vmatmul.bf16.gmra.mxu2 %v835_v8  ;;  %1170 = vmatmul.bf16.gmra.mxu0 %v835_v8 }
  0xf0   : > { %v780_v14 = vpop.f32.mrf.mxu0 }
  0xf1   : > { %v7877_v19 = vadd.f32 %v7810_v62, %v780_v14  ;;  %v6048_v14 = vld [vmem:[#allocation7 + $0x68] sm:$0xf0] }
  0xf2   : > { %v6051_v17 = vor.u32 %v6776_v12, %v6048_v14 }
  0xf3   : > { %1106 = vmatmul.bf16.vlgmr.msra.gmra.mxu3 %v7822_v9  ;;  %10132 = vst [vmem:[#allocation28_spill] sm:$0xff] %v7877_v19 }
  0xf8   : > { %v782_v18 = vpop.f32.mrf.mxu0 }
  0xf9   : > { %v7880_v20 = vadd.f32 %v7810_v62, %v782_v18 }
  0xfb   : > { %10133 = vst [vmem:[#allocation29_spill] sm:$0xff] %v7880_v20  ;;  %v836_v21 = vpack.c.bf16 %v7880_v20, %v7877_v19 }
  0xfd   : > { %1028 = vmatmul.bf16.gmra.mxu2 %v836_v21  ;;  %1175 = vmatmul.bf16.gmra.mxu0 %v836_v21 }
 0x103   : > { %1111 = vmatmul.bf16.gmra.mxu3 %v7836_v34 }
 0x10d   : > { %1033 = vmatmul.bf16.gmra.mxu2 %v837_v24  ;;  %1180 = vmatmul.bf16.gmra.mxu0 %v837_v24 }
 0x113   : > { %1116 = vmatmul.bf16.gmra.mxu3 %v834_v53 }
 0x11d   : > { %1057 = vmatmul.bf16.vlgmr.msrb.gmra.mxu2 %v7822_v9  ;;  %1185 = vmatmul.bf16.gmra.mxu0 %v7848_v45 }
 0x123   : > { %1121 = vmatmul.bf16.gmra.mxu3 %v835_v8 }
 0x12d   : > { %1062 = vmatmul.bf16.gmra.mxu2 %v7836_v34  ;;  %1190 = vmatmul.bf16.gmra.mxu0 %v839_v61 }
 0x133   : > { %1126 = vmatmul.bf16.gmra.mxu3 %v836_v21 }
 0x13a   : > { %v7916_v31 = vpop.f32.mrf.mxu0  ;;  %v7944_v48 = vpop.f32.mrf.mxu1 }
 0x13d   : > { %1067 = vmatmul.bf16.gmra.mxu2 %v834_v53  ;;  %v6056_v53 = vld [vmem:[#allocation7 + $0x78] sm:$0xf0] }
 0x13e   : > { %v6059_v55 = vor.u32 %v6778_v50, %v6056_v53 }
 0x140   : > { %1906 = vmatpush.bf16.msra.mxu2 %v6059_v55 }
 0x142   : > { %v7924_v36 = vpop.f32.mrf.mxu0  ;;  %v7950_v60 = vpop.f32.mrf.mxu1 }
 0x143   : > { %1131 = vmatmul.bf16.gmra.mxu3 %v837_v24 }
 0x144   : > { %1907 = vmatpush.bf16.msra.mxu2 %v6051_v17 }
 0x14a   : > { %v7930_v39 = vpop.f32.mrf.mxu0  ;;  %v7965_v18 = vpop.f32.mrf.mxu1 }
 0x14d   : > { %1072 = vmatmul.bf16.gmra.mxu2 %v835_v8  ;;  %v1373_v8 = vld [vmem:[%s10060_s4] ss:$4 sm:$0x3] }
 0x14e   : > { %v7963_v15 = vperm.slane %v1373_v8, 1  ;;  %v7988_v35 = vperm.slane %v1373_v8, 0 }
 0x152   : > { %v7936_v43 = vpop.f32.mrf.mxu0  ;;  %v7971_v54 = vpop.f32.mrf.mxu1 }
 0x153   : > { %1136 = vmatmul.bf16.gmra.mxu3 %v7848_v45 }
 0x156   : > { %v7903_v13 = vpop.f32.mrf.mxu3 }
 0x15a   : > { %v1166_v46 = vpop.f32.mrf.mxu0 }
 0x15d   : > { %1077 = vmatmul.bf16.gmra.mxu2 %v836_v21 }
 0x15e   : > { %v7907_v25 = vpop.f32.mrf.mxu3 }
 0x160   : > { %v7899_v62 = vpop.f32.mrf.mxu2 }
 0x162   : > { %v1168_v57 = vpop.f32.mrf.mxu0 }
 0x163   : > { %1141 = vmatmul.bf16.gmra.mxu3 %v839_v61 }
 0x166   : > { %v7912_v27 = vpop.f32.mrf.mxu3 }
 0x168   : > { %v7901_v1 = vpop.f32.mrf.mxu2 }
 0x16a   : > { %v1171_v10 = vpop.f32.mrf.mxu0 }
 0x16d   : > { %1082 = vmatmul.bf16.gmra.mxu2 %v837_v24 }
 0x16e   : > { %v7920_v33 = vpop.f32.mrf.mxu3 }
 0x170   : > { %v7905_v9 = vpop.f32.mrf.mxu2 }
 0x176   : > { %v7926_v37 = vpop.f32.mrf.mxu3 }
 0x178   : > { %v7909_v26 = vpop.f32.mrf.mxu2 }
 0x17d   : > { %1087 = vmatmul.bf16.gmra.mxu2 %v7848_v45 }
 0x17e   : > { %v7932_v40 = vpop.f32.mrf.mxu3 }
 0x180   : > { %v7914_v28 = vpop.f32.mrf.mxu2 }
 0x186   : > { %v7938_v44 = vpop.f32.mrf.mxu3 }
 0x188   : > { %v7918_v32 = vpop.f32.mrf.mxu2 }
 0x18d   : > { %1092 = vmatmul.bf16.gmra.mxu2 %v839_v61 }
 0x18e   : > { %v7946_v49 = vpop.f32.mrf.mxu3 }
 0x190   : > { %v7922_v34 = vpop.f32.mrf.mxu2 }
 0x196   : > { %v1117_v61 = vpop.f32.mrf.mxu3 }
 0x198   : > { %v7928_v38 = vpop.f32.mrf.mxu2 }
 0x19e   : > { %v1119_v21 = vpop.f32.mrf.mxu3 }
 0x1a0   : > { %v7934_v41 = vpop.f32.mrf.mxu2 }
 0x1a8   : > { %v7940_v45 = vpop.f32.mrf.mxu2 }
 0x1b0   : > { %v7942_v47 = vpop.f32.mrf.mxu2 }
 0x1b8   : > { %v7948_v56 = vpop.f32.mrf.mxu2 }
 0x1b9   : > { %v10074_v2 = vrot.slane %v7948_v56, 7 }
 0x1c0   : > { %v1068_v0 = vpop.f32.mrf.mxu2 }
 0x1c1   : > { %v1205_v3 = vrot.slane %v1068_v0, 7 }
 0x1c3   : > { %v1252_v11 = vsel %vm1228_vm2, %v10074_v2, %v1205_v3  ;;  %v1173_v2 = vpop.f32.mrf.mxu0 }
 0x1c4   : > { %v1350_v16 = vadd.f32 %v1252_v11, %v1166_v46  ;;  %v7973_v11 = vpop.f32.mrf.mxu3 }
 0x1c6   : > { %v1388_v24 = vadd.f32 %v7963_v15, %v1350_v16  ;;  %v1204_v16 = vrot.slane %v7899_v62, 7 }
 0x1c8   : > { %v5984_v50 = vmul.f32 -1.442695, %v1388_v24  ;;  %v1070_v53 = vpop.f32.mrf.mxu2 }
 0x1c9   : > { %v1207_v55 = vrot.slane %v1070_v53, 7  ;;  %v6040_v53 = vld [vmem:[#allocation7 + $0x58] sm:$0xf0] }
 0x1ca   : > { %7039 = vpow2.f32 %v5984_v50  ;;  %v10081_v50 = vrot.slane %v7971_v54, 7 }
 0x1cb   : > { %v1250_v58 = vsel %vm1228_vm2, %v1205_v3, %v1207_v55  ;;  %v6774_v3 = vld [vmem:[#allocation7 + $0x54] sm:$0xf] }
 0x1cc   : > { %v1352_v0 = vadd.f32 %v1250_v58, %v1168_v57 }
 0x1ce   : > { %v1390_v59 = vadd.f32 %v7963_v15, %v1352_v0  ;;  %v6043_v0 = vor.u32 %v6774_v3, %v6040_v53  ;;  %v7993_v53 = vpop.f32.mrf.mxu3 }
 0x1d0   : > { %v7040_v46 = vpop.eup %7039  ;;  %v5985_v12 = vmul.f32 -1.442695, %v1390_v59  ;;  %v1073_v14 = vpop.f32.mrf.mxu2  ;;  %v1251_v59 = vsel %vm1228_vm2, %v10081_v50, %v1204_v16  ;;  %1908 = vmatpush.bf16.msra.mxu2 %v6043_v0 }
 0x1d1   : > { %v7976_v17 = vadd.f32 1.0, %v7040_v46  ;;  %v1209_v24 = vrot.slane %v1073_v14, 7  ;;  %v1349_v62 = vadd.f32 %v1251_v59, %v1117_v61  ;;  %v1176_v14 = vpop.f32.mrf.mxu0 }
 0x1d2   : > { %7041 = vpow2.f32 %v5985_v12  ;;  %v1206_v12 = vrot.slane %v7901_v1, 7 }
 0x1d3   : > { %7043 = vrcp.f32 %v7976_v17  ;;  %v1248_v57 = vsel %vm1228_vm2, %v1207_v55, %v1209_v24  ;;  %v1387_v3 = vadd.f32 %v7988_v35, %v1349_v62  ;;  %v1562_v62 = vand.u32 2147483648, %v7976_v17 }
 0x1d4   : > { %v1354_v58 = vadd.f32 %v1248_v57, %v1171_v10  ;;  %v1249_v1 = vsel %vm1228_vm2, %v1204_v16, %v1206_v12  ;;  %vm1556_vm4 = vweird.f32 %v7976_v17 }
 0x1d6   : > { %v1392_v46 = vadd.f32 %v7963_v15, %v1354_v58  ;;  %v1208_v58 = vrot.slane %v7905_v9, 7  ;;  %v8022_v50 = vpop.f32.mrf.mxu3 }
 0x1d8   : > { %v7042_v42 = vpop.eup %7041  ;;  %v5986_v55 = vmul.f32 -1.442695, %v1392_v46  ;;  %v1075_v23 = vpop.f32.mrf.mxu2  ;;  %v1247_v9 = vsel %vm1228_vm2, %v1206_v12, %v1208_v58 }
 0x1d9   : > { %v7044_v22 = vpop.eup %7043  ;;  %v7990_v10 = vadd.f32 1.0, %v7042_v42  ;;  %v1211_v57 = vrot.slane %v1075_v23, 7  ;;  %v1351_v42 = vadd.f32 %v1249_v1, %v1119_v21  ;;  %v1353_v19 = vadd.f32 %v1247_v9, %v7973_v11 }
 0x1da   : > { %7045 = vpow2.f32 %v5986_v55  ;;  %v1552_v61 = vmul.f32 %v7044_v22, %v7976_v17  ;;  %vm1557_vm3 = vweird.f32 %v7044_v22  ;;  %v1560_v55 = vand.u32 2147483647, %v7976_v17 }
 0x1db   : > { %7047 = vrcp.f32 %v7990_v10  ;;  %v1246_v8 = vsel %vm1228_vm2, %v1209_v24, %v1211_v57  ;;  %v1389_v20 = vadd.f32 %v7988_v35, %v1351_v42  ;;  %vm1558_vm5 = vmor %vm1556_vm4, %vm1557_vm3  ;;  %v1563_v42 = vor.u32 1.1754944e-38, %v1562_v62 }
 0x1dc   : > { %v1356_v0 = vadd.f32 %v1246_v8, %v1173_v2  ;;  %v1553_v23 = vsub.f32 1.0, %v1552_v61  ;;  %7049 = vtanh.f32 %v1387_v3  ;;  %v1178_v3 = vpop.f32.mrf.mxu0  ;;  %vm1561_vm6 = vcmp.eq.f32.partialorder %v1560_v55, 8.507059e+37 }
 0x1dd   : > { %v10087_v17 = vrot.slane %v7934_v41, 7  ;;  %vm1571_vm8 = vweird.f32 %v7990_v10 }
 0x1de   : > { %v1394_v59 = vadd.f32 %v7963_v15, %v1356_v0  ;;  %v1554_v46 = vmul.f32 %v7044_v22, %v1553_v23 }
 0x1e0   : > { %v7046_v16 = vpop.eup %7045  ;;  %v5987_v21 = vmul.f32 -1.442695, %v1394_v59  ;;  %v1078_v2 = vpop.f32.mrf.mxu2  ;;  %v1555_v8 = vadd.f32 %v7044_v22, %v1554_v46  ;;  %v6772_v59 = vld [vmem:[#allocation7 + $0x44] sm:$0xf] }
 0x1e1   : > { %v8009_v24 = vpop.eup %7047  ;;  %v8011_v61 = vadd.f32 1.0, %v7046_v16  ;;  %v1213_v1 = vrot.slane %v1078_v2, 7  ;;  %v6032_v16 = vld [vmem:[#allocation7 + $0x48] sm:$0xf0] }
 0x1e2   : > { %7051 = vpow2.f32 %v5987_v21  ;;  %v1567_v12 = vmul.f32 %v8009_v24, %v7990_v10  ;;  %v1559_v2 = vsel %vm1558_vm5, %v7044_v22, %v1555_v8  ;;  %v7050_v46 = vpop.eup %7049  ;;  %v6035_v0 = vor.u32 %v6772_v59, %v6032_v16 }
 0x1e3   : > { %7053 = vrcp.f32 %v8011_v61  ;;  %v1244_v23 = vsel %vm1228_vm2, %v1211_v57, %v1213_v1  ;;  %v1564_v62 = vsel %vm1561_vm6, %v1563_v42, %v1559_v2  ;;  %v10136_v57 = vrot.slane %v7940_v45, 7 }
 0x1e4   : > { %v1358_v21 = vadd.f32 %v1244_v23, %v1176_v14  ;;  %v1568_v7 = vsub.f32 1.0, %v1567_v12  ;;  %v1735_v6 = vmul.f32 %v7050_v46, %v1564_v62  ;;  %1909 = vmatpush.bf16.msra.mxu2 %v6035_v0  ;;  %7055 = vtanh.f32 %v1389_v20  ;;  %v1181_v62 = vpop.f32.mrf.mxu0 }
 0x1e5   : > { %v1258_v22 = vsel %vm1228_vm2, %v10087_v17, %v10136_v57  ;;  %v10137_v14 = vrot.slane %v7909_v26, 7  ;;  %v1577_v8 = vand.u32 2147483648, %v7990_v10  ;;  %v1212_v12 = vrot.slane %v7914_v28, 7 }
 0x1e6   : > { %v1396_v55 = vadd.f32 %v7963_v15, %v1358_v21  ;;  %v1569_v9 = vmul.f32 %v8009_v24, %v1568_v7  ;;  %vm1572_vm7 = vweird.f32 %v8009_v24  ;;  %v1575_v16 = vand.u32 2147483647, %v7990_v10 }
 0x1e7   : > { %v1245_v11 = vsel %vm1228_vm2, %v1208_v58, %v10137_v14  ;;  %v1391_v20 = vadd.f32 %v7988_v35, %v1353_v19  ;;  %v1344_v2 = vadd.f32 %v1258_v22, %v7924_v36  ;;  %vm1573_vm9 = vmor %vm1571_vm8, %vm1572_vm7  ;;  %v1578_v36 = vor.u32 1.1754944e-38, %v1577_v8 }
 0x1e8   : > { %v7052_v42 = vpop.eup %7051  ;;  %v5988_v23 = vmul.f32 -1.442695, %v1396_v55  ;;  %v1080_v59 = vpop.f32.mrf.mxu2  ;;  %v1570_v7 = vadd.f32 %v8009_v24, %v1569_v9  ;;  %v1355_v57 = vadd.f32 %v1245_v11, %v7993_v53  ;;  %vm1576_vm10 = vcmp.eq.f32.partialorder %v1575_v16, 8.507059e+37 }
 0x1e9   : > { %v7054_v0 = vpop.eup %7053  ;;  %v8046_v46 = vadd.f32 1.0, %v7052_v42  ;;  %v1215_v58 = vrot.slane %v1080_v59, 7  ;;  %v1590_v42 = vand.u32 2147483647, %v8011_v61  ;;  %v1592_v53 = vand.u32 2147483648, %v8011_v61  ;;  %v8060_v11 = vpop.f32.mrf.mxu3 }
 0x1ea   : > { %7057 = vpow2.f32 %v5988_v23  ;;  %v1582_v21 = vmul.f32 %v7054_v0, %v8011_v61  ;;  %v1574_v55 = vsel %vm1573_vm9, %v8009_v24, %v1570_v7  ;;  %v7056_v10 = vpop.eup %7055  ;;  %vm1587_vm11 = vweird.f32 %v7054_v0 }
 0x1eb   : > { %7059 = vrcp.f32 %v8046_v46  ;;  %v1242_v19 = vsel %vm1228_vm2, %v1213_v1, %v1215_v58  ;;  %v1579_v9 = vsel %vm1576_vm10, %v1578_v36, %v1574_v55  ;;  %v1382_v24 = vadd.f32 %v7963_v15, %v1344_v2 }
 0x1ec   : > { %v1360_v22 = vadd.f32 %v1242_v19, %v1178_v3  ;;  %v1583_v14 = vsub.f32 1.0, %v1582_v21  ;;  %7061 = vtanh.f32 %v1391_v20  ;;  %v1736_v23 = vmul.f32 %v7056_v10, %v1579_v9 }
 0x1ed   : > { %v1214_v3 = vrot.slane %v7918_v32, 7  ;;  %v1393_v8 = vadd.f32 %v7988_v35, %v1355_v57  ;;  %v10138_v16 = vrot.slane %v7909_v26, 7  ;;  %vm1586_vm12 = vweird.f32 %v8011_v61 }
 0x1ee   : > { %v1398_v1 = vadd.f32 %v7963_v15, %v1360_v22  ;;  %v1584_v59 = vmul.f32 %v7054_v0, %v1583_v14  ;;  %v8072_v36 = vpack.c.bf16 %v1736_v23, %v1735_v6  ;;  %v1201_v2 = vrot.slane %v7942_v47, 7  ;;  %vm1588_vm13 = vmor %vm1586_vm12, %vm1587_vm11  ;;  %v6770_v23 = vld [vmem:[#allocation7 + $0x34] sm:$0xf]  ;;  %v6024_v47 = vld [vmem:[#allocation7 + $0x38] sm:$0xf0] }
 0x1ef   : > { %v1243_v20 = vsel %vm1228_vm2, %v10138_v16, %v1212_v12  ;;  %v1593_v26 = vor.u32 1.1754944e-38, %v1592_v53  ;;  %vm1591_vm14 = vcmp.eq.f32.partialorder %v1590_v42, 8.507059e+37  ;;  %v5981_v6 = vmul.f32 -1.442695, %v1382_v24  ;;  %v1183_v53 = vpop.f32.mrf.mxu0 }
 0x1f0   : > { %v7058_v7 = vpop.eup %7057  ;;  %v5989_v21 = vmul.f32 -1.442695, %v1398_v1  ;;  %v1083_v19 = vpop.f32.mrf.mxu2  ;;  %v1585_v22 = vadd.f32 %v7054_v0, %v1584_v59  ;;  %v1357_v24 = vadd.f32 %v1243_v20, %v8022_v50  ;;  %vm1601_vm0 = vweird.f32 %v8046_v46 }
 0x1f1   : > { %v7060_v55 = vpop.eup %7059  ;;  %v8076_v14 = vadd.f32 1.0, %v7058_v7  ;;  %v1217_v57 = vrot.slane %v1083_v19, 7  ;;  %v6027_v7 = vor.u32 %v6770_v23, %v6024_v47 }
 0x1f2   : > { %7063 = vpow2.f32 %v5989_v21  ;;  %v1589_v10 = vsel %vm1588_vm13, %v7054_v0, %v1585_v22  ;;  %v1597_v9 = vmul.f32 %v7060_v55, %v8046_v46  ;;  %v7062_v1 = vpop.eup %7061  ;;  %v10139_v0 = vrot.slane %v7940_v45, 7 }
 0x1f3   : > { %7065 = vrcp.f32 %v8076_v14  ;;  %v1240_v61 = vsel %vm1228_vm2, %v1215_v58, %v1217_v57  ;;  %v1594_v59 = vsel %vm1591_vm14, %v1593_v26, %v1589_v10  ;;  %v1607_v21 = vand.u32 2147483648, %v8046_v46  ;;  %1910 = vmatpush.bf16.msra.mxu2 %v6027_v7  ;;  %v1132_v10 = vpop.f32.mrf.mxu3 }
 0x1f4   : > { %7067 = vtanh.f32 %v1393_v8  ;;  %v1362_v16 = vadd.f32 %v1240_v61, %v1181_v62  ;;  %v1598_v19 = vsub.f32 1.0, %v1597_v9  ;;  %v1256_v42 = vsel %vm1228_vm2, %v10139_v0, %v1201_v2 }
 0x1f5   : > { %v1737_v22 = vmul.f32 %v7062_v1, %v1594_v59  ;;  %vm1602_vm15 = vweird.f32 %v7060_v55  ;;  %v1605_v62 = vand.u32 2147483647, %v8046_v46  ;;  %v1220_v8 = vrot.slane %v7903_v13, 7 }
 0x1f6   : > { %v1400_v58 = vadd.f32 %v7963_v15, %v1362_v16  ;;  %v1599_v17 = vmul.f32 %v7060_v55, %v1598_v19  ;;  %v1216_v26 = vrot.slane %v7922_v34, 7  ;;  %7069 = vpow2.f32 %v5981_v6  ;;  %vm1603_vm1 = vmor %vm1601_vm0, %vm1602_vm15 }
 0x1f7   : > { %v1241_v45 = vsel %vm1228_vm2, %v1212_v12, %v1214_v3  ;;  %v1346_v20 = vadd.f32 %v1256_v42, %v7930_v39  ;;  %v1395_v47 = vadd.f32 %v7988_v35, %v1357_v24  ;;  %v1608_v28 = vor.u32 1.1754944e-38, %v1607_v21 }
 0x1f8   : > { %v7064_v50 = vpop.eup %7063  ;;  %v5990_v9 = vmul.f32 -1.442695, %v1400_v58  ;;  %v1085_v1 = vpop.f32.mrf.mxu2  ;;  %v1600_v61 = vadd.f32 %v7060_v55, %v1599_v17  ;;  %vm1606_vm3 = vcmp.eq.f32.partialorder %v1605_v62, 8.507059e+37  ;;  %v10140_v7 = vrot.slane %v7948_v56, 7 }
 0x1f9   : > { %v7066_v23 = vpop.eup %7065  ;;  %v8102_v6 = vadd.f32 1.0, %v7064_v50  ;;  %v1219_v59 = vrot.slane %v1085_v1, 7  ;;  %v1359_v0 = vadd.f32 %v1241_v45, %v8060_v11  ;;  %v1222_v58 = vrot.slane %v7907_v25, 7  ;;  %v1186_v62 = vpop.f32.mrf.mxu0 }
 0x1fa   : > { %v7068_v16 = vpop.eup %7067  ;;  %7071 = vpow2.f32 %v5990_v9  ;;  %v1604_v12 = vsel %vm1603_vm1, %v7060_v55, %v1600_v61  ;;  %v1612_v39 = vmul.f32 %v7066_v23, %v8076_v14  ;;  %v1254_v17 = vsel %vm1228_vm2, %v1201_v2, %v10140_v7 }
 0x1fb   : > { %7073 = vrcp.f32 %v8102_v6  ;;  %v1238_v46 = vsel %vm1228_vm2, %v1217_v57, %v1219_v59  ;;  %v1609_v19 = vsel %vm1606_vm3, %v1608_v28, %v1604_v12  ;;  %v1620_v56 = vand.u32 2147483647, %v8076_v14  ;;  %v6779_v12 = vld [vmem:[#allocation7 + $0x74] sm:$0xf0]  ;;  %v8139_v7 = vpop.f32.mrf.mxu3 }
 0x1fc   : > { %v1364_v42 = vadd.f32 %v1238_v46, %v1183_v53  ;;  %v1738_v24 = vmul.f32 %v7068_v16, %v1609_v19  ;;  %v1613_v21 = vsub.f32 1.0, %v1612_v39  ;;  %v7070_v55 = vpop.eup %7069  ;;  %7075 = vtanh.f32 %v1395_v47  ;;  %v6054_v16 = vld [vmem:[#allocation7 + $0x70] sm:$0xf] }
 0x1fd   : > { %v1622_v2 = vand.u32 2147483648, %v8076_v14  ;;  %vm1617_vm4 = vweird.f32 %v7066_v23  ;;  %v1218_v11 = vrot.slane %v7928_v38, 7  ;;  %v1384_v53 = vadd.f32 %v7963_v15, %v1346_v20 }
 0x1fe   : > { %v1402_v50 = vadd.f32 %v7963_v15, %v1364_v42  ;;  %v8118_v9 = vpack.c.bf16 %v1738_v24, %v1737_v22  ;;  %v1614_v57 = vmul.f32 %v7066_v23, %v1613_v21  ;;  %v1348_v45 = vadd.f32 %v1254_v17, %v7936_v43  ;;  %v6768_v42 = vld [vmem:[#allocation7 + $0x24] sm:$0xf]  ;;  %v6016_v24 = vld [vmem:[#allocation7 + $0x28] sm:$0xf0] }
 0x1ff   : > { %v1239_v1 = vsel %vm1228_vm2, %v1214_v3, %v1216_v26  ;;  %v1397_v47 = vadd.f32 %v7988_v35, %v1359_v0  ;;  %vm1616_vm5 = vweird.f32 %v8076_v14  ;;  %v6055_v39 = vor.u32 %v6779_v12, %v6054_v16 }
 0x200   : > { %v7072_v61 = vpop.eup %7071  ;;  %v5991_v22 = vmul.f32 -1.442695, %v1402_v50  ;;  %v8130_v28 = vpop.f32.mrf.mxu2  ;;  %v1615_v38 = vadd.f32 %v7066_v23, %v1614_v57  ;;  %vm1618_vm6 = vmor %vm1616_vm5, %vm1617_vm4  ;;  %v1623_v3 = vor.u32 1.1754944e-38, %v1622_v2  ;;  %vm1621_vm7 = vcmp.eq.f32.partialorder %v1620_v56, 8.507059e+37  ;;  %v6046_v57 = vld [vmem:[#allocation7 + $0x60] sm:$0xf] }
 0x201   : > { %v8133_v20 = vpop.eup %7073  ;;  %v8135_v43 = vadd.f32 1.0, %v7072_v61  ;;  %v1221_v32 = vrot.slane %v8130_v28, 7  ;;  %v1361_v14 = vadd.f32 %v1239_v1, %v1132_v10  ;;  %1857 = vmatpush.bf16.msrb.mxu1 %v6055_v39  ;;  %v6019_v50 = vor.u32 %v6768_v42, %v6016_v24  ;;  %v6777_v61 = vld [vmem:[#allocation7 + $0x64] sm:$0xf0]  ;;  %v1188_v12 = vpop.f32.mrf.mxu0 }
 0x202   : > { %7077 = vpow2.f32 %v5991_v22  ;;  %v1619_v17 = vsel %vm1618_vm6, %v7066_v23, %v1615_v38  ;;  %v1627_v46 = vmul.f32 %v8133_v20, %v8102_v6  ;;  %v7076_v19 = vpop.eup %7075  ;;  %v1237_v10 = vsel %vm1228_vm2, %v1216_v26, %v1218_v11 }
 0x203   : > { %7079 = vrcp.f32 %v8135_v43  ;;  %v1236_v0 = vsel %vm1228_vm2, %v1219_v59, %v1221_v32  ;;  %v1624_v21 = vsel %vm1621_vm7, %v1623_v3, %v1619_v17  ;;  %v6047_v1 = vor.u32 %v6777_v61, %v6046_v57  ;;  %1911 = vmatpush.bf16.msra.mxu2 %v6019_v50  ;;  %v1137_v57 = vpop.f32.mrf.mxu3 }
 0x204   : > { %v1366_v2 = vadd.f32 %v1236_v0, %v1186_v62  ;;  %v1628_v23 = vsub.f32 1.0, %v1627_v46  ;;  %v1739_v56 = vmul.f32 %v7076_v19, %v1624_v21  ;;  %7081 = vtanh.f32 %v1397_v47  ;;  %v6038_v46 = vld [vmem:[#allocation7 + $0x50] sm:$0xf]  ;;  %v6775_v19 = vld [vmem:[#allocation7 + $0x54] sm:$0xf0] }
 0x205   : > { %v1637_v22 = vand.u32 2147483648, %v8102_v6  ;;  %vm1632_vm8 = vweird.f32 %v8133_v20  ;;  %v1635_v62 = vand.u32 2147483647, %v8102_v6  ;;  %v8155_v16 = vadd.f32 1.0, %v7070_v55  ;;  %1858 = vmatpush.bf16.msrb.mxu1 %v6047_v1 }
 0x206   : > { %v1404_v59 = vadd.f32 %v7963_v15, %v1366_v2  ;;  %v1629_v28 = vmul.f32 %v8133_v20, %v1628_v23  ;;  %v5982_v47 = vmul.f32 -1.442695, %v1384_v53  ;;  %v1386_v34 = vadd.f32 %v7963_v15, %v1348_v45  ;;  %v6030_v23 = vld [vmem:[#allocation7 + $0x40] sm:$0xf] }
 0x207   : > { %v1235_v26 = vsel %vm1228_vm2, %v1218_v11, %v1220_v8  ;;  %v1399_v39 = vadd.f32 %v7988_v35, %v1361_v14  ;;  %vm1631_vm9 = vweird.f32 %v8102_v6  ;;  %v6039_v0 = vor.u32 %v6775_v19, %v6038_v46  ;;  %v6764_v46 = vld [vmem:[#allocation7 + $0x4] sm:$0xf] }
 0x208   : > { %v7078_v38 = vpop.eup %7077  ;;  %v5992_v3 = vmul.f32 -1.442695, %v1404_v59  ;;  %v8163_v17 = vpop.f32.mrf.mxu2  ;;  %v1630_v55 = vadd.f32 %v8133_v20, %v1629_v28  ;;  %vm1633_vm10 = vmor %vm1631_vm9, %vm1632_vm8  ;;  %v1638_v14 = vor.u32 1.1754944e-38, %v1637_v22  ;;  %vm1636_vm11 = vcmp.eq.f32.partialorder %v1635_v62, 8.507059e+37  ;;  %v6766_v62 = vld [vmem:[#allocation7 + $0x14] sm:$0xf] }
 0x209   : > { %v8167_v53 = vpop.eup %7079  ;;  %v8169_v45 = vadd.f32 1.0, %v7078_v38  ;;  %v1223_v11 = vrot.slane %v8163_v17, 7  ;;  %1859 = vmatpush.bf16.msrb.mxu1 %v6039_v0  ;;  %v1650_v50 = vand.u32 2147483647, %v8135_v43  ;;  %v1652_v59 = vand.u32 2147483648, %v8135_v43 }
 0x20a   : > { %7083 = vpow2.f32 %v5992_v3  ;;  %v1634_v42 = vsel %vm1633_vm10, %v8133_v20, %v1630_v55  ;;  %v1642_v24 = vmul.f32 %v8167_v53, %v8135_v43  ;;  %v7082_v21 = vpop.eup %7081  ;;  %v6773_v20 = vld [vmem:[#allocation7 + $0x44] sm:$0xf0]  ;;  %v1363_v28 = vadd.f32 %v1237_v10, %v8139_v7  ;;  %v6008_v38 = vld [vmem:[#allocation7 + $0x18] sm:$0xf0]  ;;  %v6000_v55 = vld [vmem:[#allocation7 + $0x8] sm:$0xf0] }
 0x20b   : > { %7085 = vrcp.f32 %v8169_v45  ;;  %v1234_v6 = vsel %vm1228_vm2, %v1221_v32, %v1223_v11  ;;  %v1639_v2 = vsel %vm1636_vm11, %v1638_v14, %v1634_v42  ;;  %v6031_v3 = vor.u32 %v6773_v20, %v6030_v23  ;;  %v6771_v0 = vld [vmem:[#allocation7 + $0x34] sm:$0xf0]  ;;  %v6769_v23 = vld [vmem:[#allocation7 + $0x24] sm:$0xf0] }
 0x20c   : > { %v1368_v61 = vadd.f32 %v1234_v6, %v1188_v12  ;;  %v1740_v1 = vmul.f32 %v7082_v21, %v1639_v2  ;;  %v1643_v22 = vsub.f32 1.0, %v1642_v24  ;;  %7087 = vtanh.f32 %v1399_v39  ;;  %v6022_v12 = vld [vmem:[#allocation7 + $0x30] sm:$0xf] }
 0x20d   : > { %vm1647_vm12 = vweird.f32 %v8167_v53  ;;  %v6011_v19 = vor.u32 %v6766_v62, %v6008_v38  ;;  %7089 = vpow2.f32 %v5982_v47  ;;  %v5983_v39 = vmul.f32 -1.442695, %v1386_v34  ;;  %1860 = vmatpush.bf16.msrb.mxu1 %v6031_v3  ;;  %v1191_v34 = vpop.f32.mrf.mxu0 }
 0x20e   : > { %v1406_v32 = vadd.f32 %v7963_v15, %v1368_v61  ;;  %v8187_v14 = vpack.c.bf16 %v1740_v1, %v1739_v56  ;;  %v1644_v42 = vmul.f32 %v8167_v53, %v1643_v22  ;;  %v1365_v24 = vadd.f32 %v1235_v26, %v1137_v57  ;;  %v6014_v61 = vld [vmem:[#allocation7 + $0x20] sm:$0xf] }
 0x20f   : > { %v6023_v7 = vor.u32 %v6771_v0, %v6022_v12  ;;  %1912 = vmatpush.bf16.msra.mxu2 %v6011_v19  ;;  %v6003_v2 = vor.u32 %v6764_v46, %v6000_v55  ;;  %vm1646_vm13 = vweird.f32 %v8135_v43  ;;  %v1401_v47 = vadd.f32 %v7988_v35, %v1363_v28  ;;  %v6767_v46 = vld [vmem:[#allocation7 + $0x14] sm:$0xf0]  ;;  %v5998_v12 = vld [vmem:[#allocation7] sm:$0xf]  ;;  %v6765_v0 = vld [vmem:[#allocation7 + $0x4] sm:$0xf0] }
 0x210   : > { %v7084_v10 = vpop.eup %7083  ;;  %v5993_v21 = vmul.f32 -1.442695, %v1406_v32  ;;  %v8190_v6 = vpop.f32.mrf.mxu2  ;;  %v1645_v20 = vadd.f32 %v8167_v53, %v1644_v42  ;;  %vm1648_vm14 = vmor %vm1646_vm13, %vm1647_vm12  ;;  %v1653_v1 = vor.u32 1.1754944e-38, %v1652_v59  ;;  %vm1651_vm15 = vcmp.eq.f32.partialorder %v1650_v50, 8.507059e+37  ;;  %v6006_v50 = vld [vmem:[#allocation7 + $0x10] sm:$0xf] }
 0x211   : > { %v8194_v56 = vpop.eup %7085  ;;  %v8197_v26 = vadd.f32 1.0, %v7084_v10  ;;  %v1225_v57 = vrot.slane %v8190_v6, 7  ;;  %1861 = vmatpush.bf16.msrb.mxu1 %v6023_v7  ;;  %v6015_v38 = vor.u32 %v6769_v23, %v6014_v61  ;;  %v1403_v59 = vadd.f32 %v7988_v35, %v1365_v24  ;;  %v1139_v10 = vpop.f32.mrf.mxu3 }
 0x212   : > { %7091 = vpow2.f32 %v5993_v21  ;;  %v1649_v22 = vsel %vm1648_vm14, %v8167_v53, %v1645_v20  ;;  %v1657_v43 = vmul.f32 %v8194_v56, %v8169_v45  ;;  %v7088_v62 = vpop.eup %7087  ;;  %vm1261_vm0 = vcmp.ge.s32.totalorder %v8026_v52, 1 }
 0x213   : > { %7093 = vrcp.f32 %v8197_v26  ;;  %v1232_v28 = vsel %vm1228_vm2, %v1223_v11, %v1225_v57  ;;  %v1654_v3 = vsel %vm1651_vm15, %v1653_v1, %v1649_v22  ;;  %1913 = vmatpush.bf16.msra.mxu2 %v6003_v2  ;;  %v8212_v19 = vpop.eup %7089  ;;  %v1667_v17 = vand.u32 2147483648, %v8169_v45 }
 0x214   : > { %7095 = vrcp.f32 %v8155_v16  ;;  %v1370_v53 = vadd.f32 %v1232_v28, %v1191_v34  ;;  %v1658_v32 = vsub.f32 1.0, %v1657_v43  ;;  %v1741_v11 = vmul.f32 %v7088_v62, %v1654_v3 }
 0x215   : > { %7097 = vtanh.f32 %v1401_v47  ;;  %vm1662_vm1 = vweird.f32 %v8194_v56  ;;  %v1665_v24 = vand.u32 2147483647, %v8169_v45  ;;  %v1224_v7 = vrot.slane %v7912_v27, 7  ;;  %1862 = vmatpush.bf16.msrb.mxu1 %v6015_v38  ;;  %v1193_v28 = vpop.f32.mrf.mxu0 }
 0x216   : > { %v1408_v55 = vadd.f32 %v7963_v15, %v1370_v53  ;;  %v1659_v42 = vmul.f32 %v8194_v56, %v1658_v32  ;;  %7099 = vpow2.f32 %v5983_v39  ;;  %v1233_v21 = vsel %vm1228_vm2, %v1220_v8, %v1222_v58 }
 0x217   : > { %v6007_v6 = vor.u32 %v6767_v46, %v6006_v50  ;;  %7101 = vtanh.f32 %v1403_v59  ;;  %vm1661_vm3 = vweird.f32 %v8169_v45  ;;  %v5999_v1 = vor.u32 %v6765_v0, %v5998_v12 }
 0x218   : > { %v7092_v2 = vpop.eup %7091  ;;  %v5994_v61 = vmul.f32 -1.442695, %v1408_v55  ;;  %v1095_v23 = vpop.f32.mrf.mxu2  ;;  %v1660_v20 = vadd.f32 %v8194_v56, %v1659_v42  ;;  %vm1663_vm4 = vmor %vm1661_vm3, %vm1662_vm1  ;;  %v1668_v13 = vor.u32 1.1754944e-38, %v1667_v17  ;;  %vm1666_vm5 = vcmp.eq.f32.partialorder %v1665_v24, 8.507059e+37 }
 0x219   : > { %v7094_v47 = vpop.eup %7093  ;;  %v8229_v39 = vadd.f32 1.0, %v7092_v2  ;;  %v1227_v34 = vrot.slane %v1095_v23, 7  ;;  %v10141_v38 = vrot.slane %v7934_v41, 7  ;;  %1863 = vmatpush.bf16.msrb.mxu1 %v6007_v6  ;;  %v1367_v17 = vadd.f32 %v1233_v21, %v1139_v10 }
 0x21a   : > { %v8233_v8 = vpop.eup %7095  ;;  %7103 = vpow2.f32 %v5994_v61  ;;  %v1664_v22 = vsel %vm1663_vm4, %v8194_v56, %v1660_v20  ;;  %v1672_v43 = vmul.f32 %v7094_v47, %v8197_v26  ;;  %v1680_v12 = vand.u32 2147483647, %v8197_v26 }
 0x21b   : > { %v7098_v62 = vpop.eup %7097  ;;  %7105 = vrcp.f32 %v8229_v39  ;;  %v1230_v45 = vsel %vm1228_vm2, %v1225_v57, %v1227_v34  ;;  %v1260_v3 = vsel %vm1228_vm2, %v1227_v34, %v10141_v38  ;;  %v1669_v59 = vsel %vm1666_vm5, %v1668_v13, %v1664_v22  ;;  %v1142_v34 = vpop.f32.mrf.mxu3 }
 0x21c   : > { %v1310_v56 = vsel %vm1261_vm0, %v1260_v3, 0.0  ;;  %v1372_v53 = vadd.f32 %v1230_v45, %v1193_v28  ;;  %v1742_v50 = vmul.f32 %v7098_v62, %v1669_v59  ;;  %v1673_v46 = vsub.f32 1.0, %v1672_v43  ;;  %v7100_v32 = vpop.eup %7099 }
 0x21d   : > { %v1342_v55 = vadd.f32 %v1310_v56, %v7916_v31  ;;  %v1682_v57 = vand.u32 2147483648, %v8197_v26  ;;  %v7102_v41 = vpop.eup %7101  ;;  %vm1677_vm6 = vweird.f32 %v7094_v47  ;;  %v1196_v6 = vrot.slane %v7944_v48, 7  ;;  %1864 = vmatpush.bf16.msrb.mxu1 %v5999_v1 }
 0x21e   : > { %v1410_v0 = vadd.f32 %v7963_v15, %v1372_v53  ;;  %v8250_v42 = vpack.c.bf16 %v1742_v50, %v1741_v11  ;;  %v1674_v24 = vmul.f32 %v7094_v47, %v1673_v46  ;;  %v1198_v2 = vrot.slane %v7950_v60, 7 }
 0x21f   : > { %v1226_v61 = vrot.slane %v7920_v33, 7  ;;  %v1380_v10 = vadd.f32 %v7963_v15, %v1342_v55  ;;  %v1231_v11 = vsel %vm1228_vm2, %v1222_v58, %v1224_v7  ;;  %vm1676_vm7 = vweird.f32 %v8197_v26 }
 0x220   : > { %v7104_v31 = vpop.eup %7103  ;;  %v5995_v21 = vmul.f32 -1.442695, %v1410_v0  ;;  %v1675_v23 = vadd.f32 %v7094_v47, %v1674_v24  ;;  %v1405_v20 = vadd.f32 %v7988_v35, %v1367_v17  ;;  %vm1678_vm8 = vmor %vm1676_vm7, %vm1677_vm6  ;;  %v1683_v1 = vor.u32 1.1754944e-38, %v1682_v57 }
 0x221   : > { %v7106_v48 = vpop.eup %7105  ;;  %v8264_v33 = vadd.f32 1.0, %v7104_v31  ;;  %v5980_v15 = vmul.f32 -1.442695, %v1380_v10  ;;  %vm1681_vm9 = vcmp.eq.f32.partialorder %v1680_v12, 8.507059e+37  ;;  %v1259_v58 = vsel %vm1228_vm2, %v1226_v61, %v1196_v6 }
 0x222   : > { %7107 = vpow2.f32 %v5995_v21  ;;  %v1679_v13 = vsel %vm1678_vm8, %v7094_v47, %v1675_v23  ;;  %v1687_v25 = vmul.f32 %v7106_v48, %v8229_v39  ;;  %v8271_v26 = vadd.f32 1.0, %v8212_v19 }
 0x223   : > { %7109 = vrcp.f32 %v8264_v33  ;;  %v1684_v22 = vsel %vm1681_vm9, %v1683_v1, %v1679_v13  ;;  %v1369_v43 = vadd.f32 %v1231_v11, %v1142_v34  ;;  %v8274_v45 = vadd.f32 1.0, %v7100_v32 }
 0x224   : > { %7111 = vpow2.f32 %v5980_v15  ;;  %v1688_v62 = vsub.f32 1.0, %v1687_v25  ;;  %v1743_v28 = vmul.f32 %v7102_v41, %v1684_v22  ;;  %v1697_v47 = vand.u32 2147483648, %v8229_v39  ;;  %v1144_v41 = vpop.f32.mrf.mxu3 }
 0x225   : > { %7113 = vtanh.f32 %v1405_v20  ;;  %v1309_v38 = vsel %vm1261_vm0, %v1259_v58, 0.0  ;;  %vm1692_vm10 = vweird.f32 %v7106_v48  ;;  %v1695_v19 = vand.u32 2147483647, %v8229_v39 }
 0x226   : > { %v1689_v3 = vmul.f32 %v7106_v48, %v1688_v62  ;;  %v1341_v59 = vadd.f32 %v1309_v38, %v7926_v37  ;;  %v1257_v56 = vsel %vm1228_vm2, %v1196_v6, %v1198_v2  ;;  %v1507_v53 = vmul.f32 %v8233_v8, %v8155_v16  ;;  %v6176_v38 = vld [vmem:[#allocation5 + $0x1f0] sm:$0xf0] }
 0x227   : > { %7115 = vrcp.f32 %v8271_v26  ;;  %v1407_v46 = vadd.f32 %v7988_v35, %v1369_v43  ;;  %vm1691_vm11 = vweird.f32 %v8229_v39  ;;  %v1343_v55 = vadd.f32 %v1257_v56, %v7932_v40 }
 0x228   : > { %v7108_v50 = vpop.eup %7107  ;;  %v1690_v32 = vadd.f32 %v7106_v48, %v1689_v3  ;;  %7117 = vrcp.f32 %v8274_v45  ;;  %vm1693_vm12 = vmor %vm1691_vm11, %vm1692_vm10  ;;  %v1698_v12 = vor.u32 1.1754944e-38, %v1697_v47  ;;  %v1229_v0 = vsel %vm1228_vm2, %v1224_v7, %v1226_v61  ;;  %v6808_v47 = vld [vmem:[#allocation5 + $0x1e4] sm:$0xf] }
 0x229   : > { %v7110_v17 = vpop.eup %7109  ;;  %v8292_v37 = vadd.f32 1.0, %v7108_v50  ;;  %vm1696_vm13 = vcmp.eq.f32.partialorder %v1695_v19, 8.507059e+37  ;;  %v1508_v40 = vsub.f32 1.0, %v1507_v53  ;;  %v1379_v11 = vadd.f32 %v7988_v35, %v1341_v59 }
 0x22a   : > { %v7112_v57 = vpop.eup %7111  ;;  %v1694_v24 = vsel %vm1693_vm12, %v7106_v48, %v1690_v32  ;;  %v1702_v39 = vmul.f32 %v7110_v17, %v8264_v33  ;;  %v1381_v27 = vadd.f32 %v7988_v35, %v1343_v55  ;;  %v1371_v20 = vadd.f32 %v1229_v0, %v1144_v41 }
 0x22b   : > { %v7114_v6 = vpop.eup %7113  ;;  %v8299_v10 = vadd.f32 1.0, %v7112_v57  ;;  %7119 = vrcp.f32 %v8292_v37  ;;  %v1699_v31 = vsel %vm1696_vm13, %v1698_v12, %v1694_v24  ;;  %v1712_v7 = vand.u32 2147483648, %v8264_v33 }
 0x22c   : > { %7121 = vtanh.f32 %v1407_v46  ;;  %v1744_v21 = vmul.f32 %v7114_v6, %v1699_v31  ;;  %v1703_v23 = vsub.f32 1.0, %v1702_v39  ;;  %vm1707_vm14 = vweird.f32 %v7110_v17 }
 0x22d   : > { %7123 = vrcp.f32 %v8299_v10  ;;  %v8306_v61 = vpop.eup %7115  ;;  %v1710_v15 = vand.u32 2147483647, %v8264_v33  ;;  %v1509_v13 = vmul.f32 %v8233_v8, %v1508_v40  ;;  %vm1706_vm15 = vweird.f32 %v8264_v33 }
 0x22e   : > { %v8308_v48 = vpack.c.bf16 %v1744_v21, %v1743_v28  ;;  %v1704_v34 = vmul.f32 %v7110_v17, %v1703_v23  ;;  %v8311_v1 = vpop.eup %7117  ;;  %7125 = vtanh.f32 %v1379_v11  ;;  %v1200_v22 = vrot.slane %v7965_v18, 7  ;;  %vm1708_vm0 = vmor %vm1706_vm15, %vm1707_vm14 }
 0x22f   : > { %7127 = vtanh.f32 %v1381_v27  ;;  %v1409_v43 = vadd.f32 %v7988_v35, %v1371_v20  ;;  %v1713_v62 = vor.u32 1.1754944e-38, %v1712_v7  ;;  %vm1511_vm1 = vweird.f32 %v8155_v16 }
 0x230   : > { %v1705_v25 = vadd.f32 %v7110_v17, %v1704_v34  ;;  %vm1711_vm3 = vcmp.eq.f32.partialorder %v1710_v15, 8.507059e+37  ;;  %v1510_v33 = vadd.f32 %v8233_v8, %v1509_v13  ;;  %vm1512_vm4 = vweird.f32 %v8233_v8 }
 0x231   : > { %v7120_v58 = vpop.eup %7119  ;;  %v6179_v18 = vor.u32 %v6808_v47, %v6176_v38  ;;  %v1515_v50 = vand.u32 2147483647, %v8155_v16  ;;  %7129 = vtanh.f32 %v1409_v43  ;;  %v1517_v55 = vand.u32 2147483648, %v8155_v16  ;;  %vm8329_vm5 = vmor %vm1511_vm1, %vm1512_vm4 }
 0x232   : > { %v7122_v28 = vpop.eup %7121  ;;  %v1709_v3 = vsel %vm1708_vm0, %v7110_v17, %v1705_v25  ;;  %v1717_v19 = vmul.f32 %v7120_v58, %v8292_v37  ;;  %v1537_v17 = vmul.f32 %v8311_v1, %v8274_v45  ;;  %v1727_v12 = vand.u32 2147483648, %v8292_v37 }
 0x233   : > { %v7124_v59 = vpop.eup %7123  ;;  %v1714_v56 = vsel %vm1711_vm3, %v1713_v62, %v1709_v3  ;;  %2221 = vmatpush.bf16.msra.mxu0 %v6179_v18  ;;  %vm1722_vm6 = vweird.f32 %v7120_v58  ;;  %v1725_v39 = vand.u32 2147483647, %v8292_v37  ;;  %v1502_v40 = vand.u32 2147483648, %v8299_v10 }
 0x234   : > { %v1492_v53 = vmul.f32 %v7124_v59, %v8299_v10  ;;  %v1718_v46 = vsub.f32 1.0, %v1717_v19  ;;  %v1745_v32 = vmul.f32 %v7122_v28, %v1714_v56  ;;  %v7126_v57 = vpop.eup %7125  ;;  %v1514_v31 = vsel %vm8329_vm5, %v8233_v8, %v1510_v33 }
 0x235   : > { %v7128_v6 = vpop.eup %7127  ;;  %v1522_v11 = vmul.f32 %v8306_v61, %v8271_v26  ;;  %vm1721_vm7 = vweird.f32 %v8292_v37  ;;  %vm1497_vm8 = vweird.f32 %v7124_v59  ;;  %v1500_v21 = vand.u32 2147483647, %v8299_v10 }
 0x236   : > { %v1493_v41 = vsub.f32 1.0, %v1492_v53  ;;  %v1719_v24 = vmul.f32 %v7120_v58, %v1718_v46  ;;  %vm1516_vm9 = vcmp.eq.f32.partialorder %v1515_v50, 8.507059e+37  ;;  %v1518_v27 = vor.u32 1.1754944e-38, %v1517_v55  ;;  %vm1723_vm10 = vmor %vm1721_vm7, %vm1722_vm6  ;;  %v6160_v55 = vld [vmem:[#allocation5 + $0x1d0] sm:$0xf0] }
 0x237   : > { %v1538_v20 = vsub.f32 1.0, %v1537_v17  ;;  %v1728_v7 = vor.u32 1.1754944e-38, %v1727_v12  ;;  %vm1496_vm11 = vweird.f32 %v8299_v10  ;;  %vm1726_vm12 = vcmp.eq.f32.partialorder %v1725_v39, 8.507059e+37  ;;  %v7130_v8 = vpop.eup %7129 }
 0x238   : > { %v1494_v16 = vmul.f32 %v7124_v59, %v1493_v41  ;;  %v1720_v23 = vadd.f32 %v7120_v58, %v1719_v24  ;;  %v10144_v13 = vrot.slane %v7971_v54, 7  ;;  %vm1498_vm13 = vmor %vm1496_vm11, %vm1497_vm8  ;;  %v1503_v25 = vor.u32 1.1754944e-38, %v1502_v40 }
 0x239   : > { %v1519_v43 = vsel %vm1516_vm9, %v1518_v27, %v1514_v31  ;;  %vm1501_vm14 = vcmp.eq.f32.partialorder %v1500_v21, 8.507059e+37  ;;  %v1523_v47 = vsub.f32 1.0, %v1522_v11  ;;  %v1255_v10 = vsel %vm1228_vm2, %v1198_v2, %v1200_v22  ;;  %v6810_v2 = vld [vmem:[#allocation5 + $0x1ec] sm:$0xf0]  ;;  %v6800_v27 = vld [vmem:[#allocation5 + $0x1a4] sm:$0xf] }
 0x23a   : > { %v1495_v34 = vadd.f32 %v7124_v59, %v1494_v16  ;;  %v1724_v15 = vsel %vm1723_vm10, %v7120_v58, %v1720_v23  ;;  %v1253_v37 = vsel %vm1228_vm2, %v1200_v22, %v10144_v13  ;;  %v1732_v19 = vmul.f32 %v7128_v6, %v1519_v43  ;;  %v6804_v22 = vld [vmem:[#allocation5 + $0x1c4] sm:$0xf]  ;;  %v6806_v23 = vld [vmem:[#allocation5 + $0x1cc] sm:$0xf0]  ;;  %v6126_v43 = vld [vmem:[#allocation5 + $0x180] sm:$0xf] }
 0x23b   : > { %v1729_v62 = vsel %vm1726_vm12, %v1728_v7, %v1724_v15  ;;  %v1347_v58 = vadd.f32 %v1253_v37, %v7946_v49  ;;  %v1539_v33 = vmul.f32 %v8311_v1, %v1538_v20  ;;  %v1345_v56 = vadd.f32 %v1255_v10, %v7938_v44  ;;  %v6174_v49 = vld [vmem:[#allocation5 + $0x1e0] sm:$0xf]  ;;  %v6144_v7 = vld [vmem:[#allocation5 + $0x1b0] sm:$0xf0]  ;;  %v6802_v15 = vld [vmem:[#allocation5 + $0x1ac] sm:$0xf0] }
 0x23c   : > { %v1499_v28 = vsel %vm1498_vm13, %v7124_v59, %v1495_v34  ;;  %v1746_v38 = vmul.f32 %v7130_v8, %v1729_v62  ;;  %v1524_v53 = vmul.f32 %v8306_v61, %v1523_v47  ;;  %vm1542_vm2 = vweird.f32 %v8311_v1  ;;  %v6796_v8 = vld [vmem:[#allocation5 + $0x184] sm:$0xf]  ;;  %v6128_v37 = vld [vmem:[#allocation5 + $0x190] sm:$0xf0]  ;;  %v6798_v62 = vld [vmem:[#allocation5 + $0x18c] sm:$0xf0] }
 0x23d   : > { %v1504_v3 = vsel %vm1501_vm14, %v1503_v25, %v1499_v28  ;;  %v1385_v50 = vadd.f32 %v7988_v35, %v1347_v58  ;;  %v1540_v60 = vadd.f32 %v8311_v1, %v1539_v33  ;;  %v1383_v46 = vadd.f32 %v7988_v35, %v1345_v56  ;;  %v6792_v28 = vld [vmem:[#allocation5 + $0x164] sm:$0xf]  ;;  %v6794_v58 = vld [vmem:[#allocation5 + $0x16c] sm:$0xf0] }
 0x23e   : > { %v1731_v54 = vmul.f32 %v7126_v57, %v1504_v3  ;;  %v8353_v18 = vpack.c.bf16 %v1746_v38, %v1745_v32  ;;  %vm1527_vm15 = vweird.f32 %v8306_v61  ;;  %v1547_v44 = vand.u32 2147483648, %v8274_v45  ;;  %v6112_v38 = vld [vmem:[#allocation5 + $0x170] sm:$0xf0]  ;;  %v6788_v3 = vld [vmem:[#allocation5 + $0x144] sm:$0xf] }
 0x23f   : > { %v6175_v32 = vor.u32 %v6810_v2, %v6174_v49  ;;  %v1525_v17 = vadd.f32 %v8306_v61, %v1524_v53  ;;  %vm1541_vm0 = vweird.f32 %v8274_v45  ;;  %v1545_v12 = vand.u32 2147483647, %v8274_v45  ;;  %v6790_v56 = vld [vmem:[#allocation5 + $0x14c] sm:$0xf0]  ;;  %v6811_v49 = vld [vmem:[#allocation5 + $0x1f4] sm:$0xf0] }
 0x240   : > { %v1763_v59 = vpack.c.bf16 %v1732_v19, %v1731_v54  ;;  %v6163_v57 = vor.u32 %v6804_v22, %v6160_v55  ;;  %7131 = vtanh.f32 %v1385_v50  ;;  %v1532_v41 = vand.u32 2147483648, %v8271_v26  ;;  %vm1543_vm1 = vmor %vm1541_vm0, %vm1542_vm2  ;;  %v6096_v19 = vld [vmem:[#allocation5 + $0x150] sm:$0xf0]  ;;  %v6809_v22 = vld [vmem:[#allocation5 + $0x1ec] sm:$0xf] }
 0x241   : > { %2172 = vmatpush.bf16.msrb.mxu3 %v6175_v32  ;;  %vm1526_vm3 = vweird.f32 %v8271_v26  ;;  %v1530_v35 = vand.u32 2147483647, %v8271_v26  ;;  %v1544_v0 = vsel %vm1543_vm1, %v8311_v1, %v1540_v60  ;;  %7133 = vtanh.f32 %v1383_v46  ;;  %v6158_v1 = vld [vmem:[#allocation5 + $0x1c0] sm:$0xf]  ;;  %v6080_v50 = vld [vmem:[#allocation5 + $0x130] sm:$0xf0] }
 0x242   : > { %1865 = vmatmul.bf16.vlgmr.msrb.gmra.mxu1 %v1763_v59  ;;  %1914 = vmatmul.bf16.vlgmr.msra.gmra.mxu2 %v1763_v59  ;;  %vm1528_vm4 = vmor %vm1526_vm3, %vm1527_vm15  ;;  %v1548_v45 = vor.u32 1.1754944e-38, %v1547_v44  ;;  %vm1546_vm5 = vcmp.eq.f32.partialorder %v1545_v12, 8.507059e+37  ;;  %v1533_v39 = vor.u32 1.1754944e-38, %v1532_v41  ;;  %v6159_v20 = vor.u32 %v6806_v23, %v6158_v1  ;;  %v6784_v59 = vld [vmem:[#allocation5 + $0x124] sm:$0xf] }
 0x243   : > { %2222 = vmatpush.bf16.msra.mxu0 %v6163_v57  ;;  %v1529_v24 = vsel %vm1528_vm4, %v8306_v61, %v1525_v17  ;;  %vm1531_vm6 = vcmp.eq.f32.partialorder %v1530_v35, 8.507059e+37  ;;  %v6147_v34 = vor.u32 %v6800_v27, %v6144_v7  ;;  %v6142_v61 = vld [vmem:[#allocation5 + $0x1a0] sm:$0xf]  ;;  %v6131_v25 = vor.u32 %v6796_v8, %v6128_v37  ;;  %v6182_v60 = vld [vmem:[#allocation5 + $0x1e8] sm:$0xf] }
 0x244   : > { %v1549_v6 = vsel %vm1546_vm5, %v1548_v45, %v1544_v0  ;;  %v1534_v31 = vsel %vm1531_vm6, %v1533_v39, %v1529_v24  ;;  %v6143_v13 = vor.u32 %v6802_v15, %v6142_v61  ;;  %v6127_v47 = vor.u32 %v6798_v62, %v6126_v43  ;;  %v6184_v46 = vld [vmem:[#allocation5 + $0x1f8] sm:$0xf0]  ;;  %v6166_v44 = vld [vmem:[#allocation5 + $0x1c8] sm:$0xf]  ;;  %v6807_v55 = vld [vmem:[#allocation5 + $0x1d4] sm:$0xf0] }
 0x245   : > { %2173 = vmatpush.bf16.msrb.mxu3 %v6159_v20  ;;  %v6115_v10 = vor.u32 %v6792_v28, %v6112_v38  ;;  %v6099_v33 = vor.u32 %v6788_v3, %v6096_v19  ;;  %v6183_v2 = vor.u32 %v6811_v49, %v6182_v60  ;;  %v6187_v32 = vor.u32 %v6809_v22, %v6184_v46  ;;  %v6805_v17 = vld [vmem:[#allocation5 + $0x1cc] sm:$0xf]  ;;  %v6168_v12 = vld [vmem:[#allocation5 + $0x1d8] sm:$0xf0]  ;;  %v6150_v41 = vld [vmem:[#allocation5 + $0x1a8] sm:$0xf] }
 0x246   : > { %v7132_v40 = vpop.eup %7131  ;;  %v6171_v57 = vor.u32 %v6805_v17, %v6168_v12  ;;  %v6803_v35 = vld [vmem:[#allocation5 + $0x1b4] sm:$0xf0]  ;;  %v6801_v0 = vld [vmem:[#allocation5 + $0x1ac] sm:$0xf]  ;;  %v6152_v45 = vld [vmem:[#allocation5 + $0x1b8] sm:$0xf0] }
 0x247   : > { %v1734_v11 = vmul.f32 %v7132_v40, %v1549_v6  ;;  %v7134_v16 = vpop.eup %7133  ;;  %2223 = vmatpush.bf16.msra.mxu0 %v6147_v34  ;;  %2270 = vmatpush.bf16.msra.mxu1 %v6183_v2  ;;  %v6151_v24 = vor.u32 %v6803_v35, %v6150_v41  ;;  %v6155_v39 = vor.u32 %v6801_v0, %v6152_v45  ;;  %v6134_v6 = vld [vmem:[#allocation5 + $0x188] sm:$0xf]  ;;  %v6799_v40 = vld [vmem:[#allocation5 + $0x194] sm:$0xf0]  ;;  %v6780_v27 = vld [vmem:[#allocation5 + $0x104] sm:$0xf] }
 0x248   : > { %v1733_v21 = vmul.f32 %v7134_v16, %v1534_v31  ;;  %2319 = vmatpush.bf16.msrb.mxu2 %v6187_v32  ;;  %v6797_v31 = vld [vmem:[#allocation5 + $0x18c] sm:$0xf]  ;;  %v6136_v16 = vld [vmem:[#allocation5 + $0x198] sm:$0xf0]  ;;  %v6064_v20 = vld [vmem:[#allocation5 + $0x110] sm:$0xf0] }
 0x249   : > { %2174 = vmatpush.bf16.msrb.mxu3 %v6143_v13  ;;  %v6139_v1 = vor.u32 %v6797_v31, %v6136_v16  ;;  %v6067_v7 = vor.u32 %v6780_v27, %v6064_v20  ;;  %v6118_v34 = vld [vmem:[#allocation5 + $0x168] sm:$0xf]  ;;  %v6795_v61 = vld [vmem:[#allocation5 + $0x174] sm:$0xf0]  ;;  %v6793_v15 = vld [vmem:[#allocation5 + $0x16c] sm:$0xf] }
 0x24a   : > { %v1764_v26 = vpack.c.bf16 %v1734_v11, %v1733_v21  ;;  %v6135_v11 = vor.u32 %v6799_v40, %v6134_v6  ;;  %v6078_v21 = vld [vmem:[#allocation5 + $0x120] sm:$0xf]  ;;  %v6119_v8 = vor.u32 %v6795_v61, %v6118_v34  ;;  %v6120_v13 = vld [vmem:[#allocation5 + $0x178] sm:$0xf0]  ;;  %v6102_v37 = vld [vmem:[#allocation5 + $0x148] sm:$0xf] }
 0x24b   : > { %2224 = vmatpush.bf16.msra.mxu0 %v6131_v25  ;;  %v6791_v25 = vld [vmem:[#allocation5 + $0x154] sm:$0xf0]  ;;  %v6123_v43 = vor.u32 %v6793_v15, %v6120_v13  ;;  %v6789_v62 = vld [vmem:[#allocation5 + $0x14c] sm:$0xf]  ;;  %v6104_v28 = vld [vmem:[#allocation5 + $0x158] sm:$0xf0] }
 0x24c   : > { %2320 = vmatpush.bf16.msrb.mxu2 %v6171_v57  ;;  %v6086_v38 = vld [vmem:[#allocation5 + $0x128] sm:$0xf]  ;;  %v6088_v3 = vld [vmem:[#allocation5 + $0x138] sm:$0xf0]  ;;  %v6062_v19 = vld [vmem:[#allocation5 + $0x100] sm:$0xf] }
 0x24d   : > { %2175 = vmatpush.bf16.msrb.mxu3 %v6127_v47  ;;  %v6107_v47 = vor.u32 %v6789_v62, %v6104_v28  ;;  %v1771_v22 = vld [vmem:[#allocation8] ss:$4 sm:$0x3]  ;;  %v10150_v61 = vld [vmem:[#allocation26_spill] sm:$0xff]  ;;  %vm2400_vm7 = vcmp.lt.s32.totalorder %v7952_v63, 2 }
 0x24e   : > { %v8391_v46 = vperm.slane %v1771_v22, 1 }
 0x24f   : > { %2225 = vmatpush.bf16.msra.mxu0 %v6115_v10  ;;  %v6787_v10 = vld [vmem:[#allocation5 + $0x134] sm:$0xf0] }
 0x250   : > { %2321 = vmatpush.bf16.msrb.mxu2 %v6155_v39 }
 0x252   : > { %1870 = vmatmul.bf16.gmra.mxu1 %v1764_v26  ;;  %1919 = vmatmul.bf16.gmra.mxu2 %v1764_v26  ;;  %v6786_v26 = vld [vmem:[#allocation5 + $0x12c] sm:$0xf0] }
 0x253   : > { %2226 = vmatpush.bf16.msra.mxu0 %v6099_v33  ;;  %v6079_v23 = vor.u32 %v6786_v26, %v6078_v21  ;;  %v6782_v33 = vld [vmem:[#allocation5 + $0x10c] sm:$0xf0] }
 0x254   : > { %2322 = vmatpush.bf16.msrb.mxu2 %v6139_v1 }
 0x258   : > { %2323 = vmatpush.bf16.msrb.mxu2 %v6123_v43 }
 0x25c   : > { %2324 = vmatpush.bf16.msrb.mxu2 %v6107_v47 }
 0x262   : > { %1875 = vmatmul.bf16.gmra.mxu1 %v8072_v36  ;;  %1924 = vmatmul.bf16.gmra.mxu2 %v8072_v36  ;;  %v6110_v36 = vld [vmem:[#allocation5 + $0x160] sm:$0xf] }
 0x263   : > { %v6111_v54 = vor.u32 %v6794_v58, %v6110_v36  ;;  %v6785_v36 = vld [vmem:[#allocation5 + $0x12c] sm:$0xf]  ;;  %v6087_v58 = vor.u32 %v6787_v10, %v6086_v38  ;;  %v10153_v38 = vld [vmem:[#allocation28_spill] sm:$0xff] }
 0x265   : > { %2176 = vmatpush.bf16.msrb.mxu3 %v6111_v54  ;;  %v6091_v54 = vor.u32 %v6785_v36, %v6088_v3  ;;  %v10154_v36 = vld [vmem:[#allocation29_spill] sm:$0xff] }
 0x267   : > { %2325 = vmatpush.bf16.msrb.mxu2 %v6091_v54 }
 0x272   : > { %1880 = vmatmul.bf16.gmra.mxu1 %v8118_v9  ;;  %1929 = vmatmul.bf16.gmra.mxu2 %v8118_v9  ;;  %v6094_v9 = vld [vmem:[#allocation5 + $0x140] sm:$0xf] }
 0x273   : > { %v6095_v53 = vor.u32 %v6790_v56, %v6094_v9  ;;  %v6070_v9 = vld [vmem:[#allocation5 + $0x108] sm:$0xf]  ;;  %v6063_v56 = vor.u32 %v6782_v33, %v6062_v19 }
 0x275   : > { %2177 = vmatpush.bf16.msrb.mxu3 %v6095_v53  ;;  %v6781_v53 = vld [vmem:[#allocation5 + $0x10c] sm:$0xf] }
 0x279   : > { %2178 = vmatpush.bf16.msrb.mxu3 %v6079_v23 }
 0x27d   : > { %2179 = vmatpush.bf16.msrb.mxu3 %v6063_v56 }
 0x282   : > { %1885 = vmatmul.bf16.gmra.mxu1 %v8187_v14  ;;  %1934 = vmatmul.bf16.gmra.mxu2 %v8187_v14  ;;  %v6083_v14 = vor.u32 %v6784_v59, %v6080_v50  ;;  %v6783_v59 = vld [vmem:[#allocation5 + $0x114] sm:$0xf0]  ;;  %v6072_v50 = vld [vmem:[#allocation5 + $0x118] sm:$0xf0] }
 0x283   : > { %v6071_v60 = vor.u32 %v6783_v59, %v6070_v9  ;;  %v6075_v49 = vor.u32 %v6781_v53, %v6072_v50  ;;  %v10155_v59 = vld [vmem:[#allocation30_spill] sm:$0xff]  ;;  %v10156_v50 = vld [vmem:[#allocation31_spill] sm:$0xff] }
 0x284   : > { %2227 = vmatpush.bf16.msra.mxu0 %v6083_v14 }
 0x285   : > { %2326 = vmatpush.bf16.msrb.mxu2 %v6075_v49 }
 0x288   : > { %2228 = vmatpush.bf16.msra.mxu0 %v6067_v7 }
 0x292   : > { %1890 = vmatmul.bf16.gmra.mxu1 %v8250_v42  ;;  %1939 = vmatmul.bf16.gmra.mxu2 %v8250_v42  ;;  %v6167_v42 = vor.u32 %v6807_v55, %v6166_v44 }
 0x294   : > { %2271 = vmatpush.bf16.msra.mxu1 %v6167_v42 }
 0x298   : > { %2272 = vmatpush.bf16.msra.mxu1 %v6151_v24 }
 0x29c   : > { %2273 = vmatpush.bf16.msra.mxu1 %v6135_v11 }
 0x2a0   : > { %2274 = vmatpush.bf16.msra.mxu1 %v6119_v8  ;;  %v10151_v8 = vld [vmem:[#allocation27_spill] sm:$0xff] }
 0x2a2   : > { %1895 = vmatmul.bf16.gmra.mxu1 %v8308_v48  ;;  %1944 = vmatmul.bf16.gmra.mxu2 %v8308_v48  ;;  %v6103_v48 = vor.u32 %v6791_v25, %v6102_v37 }
 0x2a4   : > { %2275 = vmatpush.bf16.msra.mxu1 %v6103_v48 }
 0x2a8   : > { %2276 = vmatpush.bf16.msra.mxu1 %v6087_v58 }
 0x2ac   : > { %2277 = vmatpush.bf16.msra.mxu1 %v6071_v60 }
 0x2b2   : > { %1900 = vmatmul.bf16.gmra.mxu1 %v8353_v18  ;;  %1949 = vmatmul.bf16.gmra.mxu2 %v8353_v18 }
 0x2bf   : > { %v8387_v14 = vpop.f32.mrf.mxu1 }
 0x2c5   : > { %v1915_v2 = vpop.f32.mrf.mxu2 }
 0x2c6   : > { %v1916_v44 = vadd.f32 %v1915_v2, %v8391_v46 }
 0x2c7   : > { %v8389_v18 = vpop.f32.mrf.mxu1 }
 0x2c8   : > { %10145 = vst [vmem:[#allocation32_spill] sm:$0xff] %v8389_v18  ;;  %v8398_v12 = vadd.f32 %v1916_v44, %v7815_v4 }
 0x2cd   : > { %v1917_v32 = vpop.f32.mrf.mxu2 }
 0x2ce   : > { %v1918_v55 = vadd.f32 %v1917_v32, %v8391_v46 }
 0x2cf   : > { %v8395_v17 = vpop.f32.mrf.mxu1 }
 0x2d0   : > { %v8401_v42 = vadd.f32 %v1918_v55, %v7818_v5 }
 0x2d2   : > { %v2004_v57 = vpack.c.bf16 %v8401_v42, %v8398_v12 }
 0x2d4   : > { %2180 = vmatmul.bf16.vlgmr.msrb.gmra.mxu3 %v2004_v57  ;;  %2229 = vmatmul.bf16.vlgmr.msra.gmra.mxu0 %v2004_v57 }
 0x2d5   : > { %2278 = vmatmul.bf16.vlgmr.msra.gmra.mxu1 %v2004_v57  ;;  %2327 = vmatmul.bf16.vlgmr.msrb.gmra.mxu2 %v2004_v57  ;;  %v1920_v41 = vpop.f32.mrf.mxu2 }
 0x2d6   : > { %v1921_v0 = vadd.f32 %v1920_v41, %v8391_v46  ;;  %v10158_v41 = vld [vmem:[#allocation21_spill] sm:$0xff] }
 0x2d7   : > { %v8405_v35 = vpop.f32.mrf.mxu1 }
 0x2d8   : > { %10146 = vst [vmem:[#allocation33_spill] sm:$0xff] %v8405_v35  ;;  %v8412_v5 = vadd.f32 %v1921_v0, %v7829_v29 }
 0x2dd   : > { %v1922_v45 = vpop.f32.mrf.mxu2 }
 0x2de   : > { %v1923_v24 = vadd.f32 %v1922_v45, %v8391_v46  ;;  %v10160_v45 = vld [vmem:[#allocation22_spill] sm:$0xff] }
 0x2df   : > { %v8409_v4 = vpop.f32.mrf.mxu1 }
 0x2e0   : > { %v8415_v39 = vadd.f32 %v1923_v24, %v7832_v30  ;;  %v10148_v30 = vld [vmem:[#allocation23_spill] sm:$0xff] }
 0x2e2   : > { %v2005_v6 = vpack.c.bf16 %v8415_v39, %v8412_v5 }
 0x2e4   : > { %2185 = vmatmul.bf16.gmra.mxu3 %v2005_v6  ;;  %2234 = vmatmul.bf16.gmra.mxu0 %v2005_v6 }
 0x2e5   : > { %2283 = vmatmul.bf16.gmra.mxu1 %v2005_v6  ;;  %2332 = vmatmul.bf16.gmra.mxu2 %v2005_v6  ;;  %v1925_v40 = vpop.f32.mrf.mxu2 }
 0x2e6   : > { %v1926_v11 = vadd.f32 %v1925_v40, %v8391_v46 }
 0x2e7   : > { %v8419_v31 = vpop.f32.mrf.mxu1 }
 0x2e8   : > { %10147 = vst [vmem:[#allocation34_spill] sm:$0xff] %v8419_v31  ;;  %v8424_v29 = vadd.f32 %v1926_v11, %v7852_v51 }
 0x2ed   : > { %v1927_v16 = vpop.f32.mrf.mxu2 }
 0x2ee   : > { %v1928_v21 = vadd.f32 %v1927_v16, %v8391_v46 }
 0x2ef   : > { %v8429_v1 = vpop.f32.mrf.mxu1 }
 0x2f0   : > { %v8427_v26 = vadd.f32 %v1928_v21, %v10148_v30 }
 0x2f2   : > { %v2006_v23 = vpack.c.bf16 %v8427_v26, %v8424_v29 }
 0x2f4   : > { %2190 = vmatmul.bf16.gmra.mxu3 %v2006_v23  ;;  %2239 = vmatmul.bf16.gmra.mxu0 %v2006_v23 }
 0x2f5   : > { %2288 = vmatmul.bf16.gmra.mxu1 %v2006_v23  ;;  %2337 = vmatmul.bf16.gmra.mxu2 %v2006_v23  ;;  %v1930_v27 = vpop.f32.mrf.mxu2 }
 0x2f6   : > { %v1931_v7 = vadd.f32 %v1930_v27, %v8391_v46  ;;  %v10164_v27 = vld [vmem:[#allocation24_spill] sm:$0xff] }
 0x2f7   : > { %v8433_v20 = vpop.f32.mrf.mxu1 }
 0x2f8   : > { %10149 = vst [vmem:[#allocation23_spill] sm:$0xff] %v8433_v20  ;;  %v8438_v15 = vadd.f32 %v1931_v7, %v10150_v61 }
 0x2fd   : > { %v1932_v34 = vpop.f32.mrf.mxu2 }
 0x2fe   : > { %v1933_v51 = vadd.f32 %v1932_v34, %v8391_v46  ;;  %v10166_v34 = vld [vmem:[#allocation25_spill] sm:$0xff] }
 0x2ff   : > { %v8445_v25 = vpop.f32.mrf.mxu1 }
 0x300   : > { %v8441_v13 = vadd.f32 %v1933_v51, %v10151_v8 }
 0x302   : > { %v2007_v37 = vpack.c.bf16 %v8441_v13, %v8438_v15 }
 0x304   : > { %2195 = vmatmul.bf16.gmra.mxu3 %v2007_v37  ;;  %2244 = vmatmul.bf16.gmra.mxu0 %v2007_v37 }
 0x305   : > { %2293 = vmatmul.bf16.gmra.mxu1 %v2007_v37  ;;  %2342 = vmatmul.bf16.gmra.mxu2 %v2007_v37  ;;  %v1935_v43 = vpop.f32.mrf.mxu2 }
 0x306   : > { %v1936_v62 = vadd.f32 %v1935_v43, %v8391_v46 }
 0x307   : > { %v8448_v48 = vpop.f32.mrf.mxu1 }
 0x308   : > { %10152 = vst [vmem:[#allocation26_spill] sm:$0xff] %v8448_v48  ;;  %v8452_v10 = vadd.f32 %v1936_v62, %v10153_v38 }
 0x30d   : > { %v1937_v28 = vpop.f32.mrf.mxu2 }
 0x30e   : > { %v1938_v47 = vadd.f32 %v1937_v28, %v8391_v46 }
 0x30f   : > { %v8459_v19 = vpop.f32.mrf.mxu1 }
 0x310   : > { %v8455_v58 = vadd.f32 %v1938_v47, %v10154_v36  ;;  %v6188_v36 = vld [vmem:[%s10060_s4 + $0x1] ss:$4 sm:$0x3] }
 0x312   : > { %v2008_v3 = vpack.c.bf16 %v8455_v58, %v8452_v10 }
 0x314   : > { %2200 = vmatmul.bf16.gmra.mxu3 %v2008_v3  ;;  %2249 = vmatmul.bf16.gmra.mxu0 %v2008_v3 }
 0x315   : > { %2298 = vmatmul.bf16.gmra.mxu1 %v2008_v3  ;;  %2347 = vmatmul.bf16.gmra.mxu2 %v2008_v3  ;;  %v1940_v54 = vpop.f32.mrf.mxu2 }
 0x316   : > { %v1941_v33 = vadd.f32 %v1940_v54, %v8391_v46 }
 0x317   : > { %v8469_v49 = vpop.f32.mrf.mxu1 }
 0x318   : > { %v8464_v53 = vadd.f32 %v1941_v33, %v10155_v59  ;;  %10157 = vst [vmem:[#allocation27_spill] sm:$0xff] %v8469_v49  ;;  %v8514_v33 = vperm.slane %v6188_v36, 1 }
 0x31d   : > { %v1942_v9 = vpop.f32.mrf.mxu2 }
 0x31e   : > { %v1943_v56 = vadd.f32 %v1942_v9, %v8391_v46 }
 0x31f   : > { %v8473_v44 = vpop.f32.mrf.mxu1 }
 0x320   : > { %v8467_v60 = vadd.f32 %v1943_v56, %v10156_v50 }
 0x322   : > { %v2009_v2 = vpack.c.bf16 %v8467_v60, %v8464_v53 }
 0x324   : > { %2205 = vmatmul.bf16.gmra.mxu3 %v2009_v2  ;;  %2254 = vmatmul.bf16.gmra.mxu0 %v2009_v2 }
 0x325   : > { %2303 = vmatmul.bf16.gmra.mxu1 %v2009_v2  ;;  %2352 = vmatmul.bf16.gmra.mxu2 %v2009_v2  ;;  %v1945_v22 = vpop.f32.mrf.mxu2  ;;  %v6826_v2 = vld [vmem:[#allocation7 + $0xf4] sm:$0xf] }
 0x326   : > { %v1946_v32 = vadd.f32 %v1945_v22, %v8391_v46  ;;  %v6265_v22 = vld [vmem:[#allocation7 + $0xf8] sm:$0xf0] }
 0x327   : > { %v8485_v11 = vpop.f32.mrf.mxu1 }
 0x328   : > { %v8478_v0 = vadd.f32 %v1946_v32, %v10158_v41  ;;  %10162 = vst [vmem:[#allocation30_spill] sm:$0xff] %v8485_v11 }
 0x32a   : > { %10159 = vst [vmem:[#allocation28_spill] sm:$0xff] %v8478_v0 }
 0x32d   : > { %v1947_v55 = vpop.f32.mrf.mxu2 }
 0x32e   : > { %v1948_v57 = vadd.f32 %v1947_v55, %v8391_v46  ;;  %v6268_v55 = vor.u32 %v6826_v2, %v6265_v22 }
 0x32f   : > { %v8489_v23 = vpop.f32.mrf.mxu1 }
 0x330   : > { %v8481_v24 = vadd.f32 %v1948_v57, %v10160_v45  ;;  %10163 = vst [vmem:[#allocation31_spill] sm:$0xff] %v8489_v23  ;;  %3081 = vmatpush.bf16.msrb.mxu0 %v6268_v55 }
 0x332   : > { %10161 = vst [vmem:[#allocation29_spill] sm:$0xff] %v8481_v24  ;;  %v2010_v6 = vpack.c.bf16 %v8481_v24, %v8478_v0  ;;  %v6239_v24 = vld [vmem:[#allocation7 + $0xc0] sm:$0xf]  ;;  %v6812_v0 = vld [vmem:[#allocation7 + $0x84] sm:$0xf] }
 0x334   : > { %2210 = vmatmul.bf16.gmra.mxu3 %v2010_v6  ;;  %2259 = vmatmul.bf16.gmra.mxu0 %v2010_v6 }
 0x335   : > { %2308 = vmatmul.bf16.gmra.mxu1 %v2010_v6  ;;  %2357 = vmatmul.bf16.gmra.mxu2 %v2010_v6  ;;  %v1950_v40 = vpop.f32.mrf.mxu2 }
 0x336   : > { %v1951_v16 = vadd.f32 %v1950_v40, %v8391_v46 }
 0x337   : > { %v8499_v8 = vpop.f32.mrf.mxu1 }
 0x338   : > { %v8492_v7 = vadd.f32 %v1951_v16, %v10164_v27  ;;  %10168 = vst [vmem:[#allocation24_spill] sm:$0xff] %v8499_v8 }
 0x33a   : > { %10165 = vst [vmem:[#allocation21_spill] sm:$0xff] %v8492_v7 }
 0x33d   : > { %v1952_v21 = vpop.f32.mrf.mxu2 }
 0x33e   : > { %v1953_v30 = vadd.f32 %v1952_v21, %v8391_v46 }
 0x340   : > { %v8495_v51 = vadd.f32 %v1953_v30, %v10166_v34 }
 0x342   : > { %10167 = vst [vmem:[#allocation22_spill] sm:$0xff] %v8495_v51  ;;  %v2011_v61 = vpack.c.bf16 %v8495_v51, %v8492_v7 }
 0x344   : > { %2215 = vmatmul.bf16.gmra.mxu3 %v2011_v61  ;;  %2264 = vmatmul.bf16.gmra.mxu0 %v2011_v61 }
 0x345   : > { %2313 = vmatmul.bf16.gmra.mxu1 %v2011_v61  ;;  %2362 = vmatmul.bf16.gmra.mxu2 %v2011_v61 }
 0x351   : > { %v8501_v37 = vpop.f32.mrf.mxu0 }
 0x352   : > { %v8503_v46 = vpop.f32.mrf.mxu1  ;;  %v10089_v3 = vrot.slane %v8501_v37, 6 }
 0x357   : > { %v8505_v43 = vpop.f32.mrf.mxu3 }
 0x358   : > { %v8507_v62 = vpop.f32.mrf.mxu2 }
 0x359   : > { %v2232_v28 = vpop.f32.mrf.mxu0 }
 0x35a   : > { %v2281_v47 = vpop.f32.mrf.mxu1  ;;  %v2371_v38 = vrot.slane %v2232_v28, 6 }
 0x35c   : > { %v2430_v56 = vsel %vm2400_vm7, %v10089_v3, %v2371_v38 }
 0x35f   : > { %v2183_v54 = vpop.f32.mrf.mxu3 }
 0x360   : > { %v2330_v9 = vpop.f32.mrf.mxu2  ;;  %v2370_v34 = vrot.slane %v2183_v54, 6 }
 0x361   : > { %v2516_v59 = vadd.f32 %v2430_v56, %v2330_v9  ;;  %v2235_v50 = vpop.f32.mrf.mxu0  ;;  %v10088_v9 = vrot.slane %v8505_v43, 6 }
 0x362   : > { %v2284_v32 = vpop.f32.mrf.mxu1  ;;  %v2373_v41 = vrot.slane %v2235_v50, 6 }
 0x363   : > { %v2555_v57 = vadd.f32 %v8514_v33, %v2516_v59  ;;  %v2429_v50 = vsel %vm2400_vm7, %v10088_v9, %v2370_v34 }
 0x364   : > { %v2428_v16 = vsel %vm2400_vm7, %v2371_v38, %v2373_v41 }
 0x365   : > { %v6190_v45 = vmul.f32 -1.442695, %v2555_v57 }
 0x367   : > { %v2186_v6 = vpop.f32.mrf.mxu3  ;;  %7135 = vpow2.f32 %v6190_v45  ;;  %v6824_v45 = vld [vmem:[#allocation7 + $0xe4] sm:$0xf] }
 0x368   : > { %v2333_v40 = vpop.f32.mrf.mxu2 }
 0x369   : > { %v2518_v21 = vadd.f32 %v2428_v16, %v2333_v40  ;;  %v2237_v30 = vpop.f32.mrf.mxu0  ;;  %v6257_v40 = vld [vmem:[#allocation7 + $0xe8] sm:$0xf0]  ;;  %v2515_v16 = vadd.f32 %v2429_v50, %v2281_v47 }
 0x36a   : > { %v2286_v27 = vpop.f32.mrf.mxu1  ;;  %v2375_v28 = vrot.slane %v2237_v30, 6  ;;  %v6260_v30 = vor.u32 %v6824_v45, %v6257_v40 }
 0x36b   : > { %v2557_v61 = vadd.f32 %v8514_v33, %v2518_v21  ;;  %v8533_v21 = vperm.slane %v6188_v36, 0 }
 0x36c   : > { %v2426_v54 = vsel %vm2400_vm7, %v2373_v41, %v2375_v28  ;;  %3082 = vmatpush.bf16.msrb.mxu0 %v6260_v30 }
 0x36d   : > { %v6191_v56 = vmul.f32 -1.442695, %v2557_v61  ;;  %v7136_v59 = vpop.eup %7135  ;;  %v2372_v61 = vrot.slane %v2186_v6, 6  ;;  %v2554_v41 = vadd.f32 %v8533_v21, %v2515_v16 }
 0x36e   : > { %v2649_v2 = vadd.f32 1.0, %v7136_v59 }
 0x36f   : > { %v8529_v22 = vpop.f32.mrf.mxu3  ;;  %7137 = vpow2.f32 %v6191_v56 }
 0x370   : > { %v2335_v38 = vpop.f32.mrf.mxu2  ;;  %7139 = vrcp.f32 %v2649_v2  ;;  %v10090_v47 = vrot.slane %v8529_v22, 6  ;;  %v2688_v30 = vand.u32 2147483647, %v2649_v2  ;;  %vm2684_vm9 = vweird.f32 %v2649_v2 }
 0x371   : > { %v2520_v55 = vadd.f32 %v2426_v54, %v2335_v38  ;;  %v2240_v57 = vpop.f32.mrf.mxu0  ;;  %v2427_v38 = vsel %vm2400_vm7, %v2370_v34, %v2372_v61 }
 0x372   : > { %v8536_v59 = vpop.f32.mrf.mxu1  ;;  %v2377_v3 = vrot.slane %v2240_v57, 6  ;;  %v2517_v34 = vadd.f32 %v2427_v38, %v2284_v32  ;;  %v2425_v40 = vsel %vm2400_vm7, %v2372_v61, %v10090_v47  ;;  %vm2689_vm11 = vcmp.eq.f32.partialorder %v2688_v30, 8.507059e+37 }
 0x373   : > { %v2559_v9 = vadd.f32 %v8514_v33, %v2520_v55 }
 0x374   : > { %v2424_v55 = vsel %vm2400_vm7, %v2375_v28, %v2377_v3 }
 0x375   : > { %v6192_v56 = vmul.f32 -1.442695, %v2559_v9  ;;  %v7138_v8 = vpop.eup %7137 }
 0x376   : > { %v7140_v11 = vpop.eup %7139  ;;  %v8541_v54 = vadd.f32 1.0, %v7138_v8  ;;  %v2690_v8 = vand.u32 2147483648, %v2649_v2 }
 0x377   : > { %v8544_v36 = vpop.f32.mrf.mxu3  ;;  %v2680_v6 = vmul.f32 %v7140_v11, %v2649_v2  ;;  %7141 = vpow2.f32 %v6192_v56  ;;  %vm2685_vm8 = vweird.f32 %v7140_v11 }
 0x378   : > { %v2338_v50 = vpop.f32.mrf.mxu2  ;;  %7143 = vrcp.f32 %v8541_v54  ;;  %vm2686_vm10 = vmor %vm2684_vm9, %vm2685_vm8  ;;  %vm2699_vm13 = vweird.f32 %v8541_v54 }
 0x379   : > { %v2522_v9 = vadd.f32 %v2424_v55, %v2338_v50  ;;  %v8549_v57 = vpop.f32.mrf.mxu0  ;;  %7145 = vtanh.f32 %v2554_v41  ;;  %v2681_v45 = vsub.f32 1.0, %v2680_v6  ;;  %v2519_v41 = vadd.f32 %v2425_v40, %v2286_v27 }
 0x37a   : > { %v2379_v28 = vrot.slane %v8549_v57, 6  ;;  %v8557_v50 = vpop.f32.mrf.mxu1  ;;  %v2556_v6 = vadd.f32 %v8533_v21, %v2517_v34 }
 0x37b   : > { %v2561_v16 = vadd.f32 %v8514_v33, %v2522_v9  ;;  %v2682_v56 = vmul.f32 %v7140_v11, %v2681_v45  ;;  %v2691_v9 = vor.u32 1.1754944e-38, %v2690_v8  ;;  %v2558_v30 = vadd.f32 %v8533_v21, %v2519_v41 }
 0x37c   : > { %v2422_v2 = vsel %vm2400_vm7, %v2377_v3, %v2379_v28  ;;  %v2705_v3 = vand.u32 2147483648, %v8541_v54 }
 0x37d   : > { %v6193_v49 = vmul.f32 -1.442695, %v2561_v16  ;;  %v7142_v55 = vpop.eup %7141  ;;  %v2683_v32 = vadd.f32 %v7140_v11, %v2682_v56  ;;  %v6822_v56 = vld [vmem:[#allocation7 + $0xd4] sm:$0xf] }
 0x37e   : > { %v7144_v38 = vpop.eup %7143  ;;  %v8560_v48 = vadd.f32 1.0, %v7142_v55  ;;  %v6249_v55 = vld [vmem:[#allocation7 + $0xd8] sm:$0xf0] }
 0x37f   : > { %v8562_v61 = vpop.f32.mrf.mxu3  ;;  %v7146_v45 = vpop.eup %7145  ;;  %v2695_v57 = vmul.f32 %v7144_v38, %v8541_v54  ;;  %7147 = vpow2.f32 %v6193_v49  ;;  %v2687_v27 = vsel %vm2686_vm10, %v7140_v11, %v2683_v32  ;;  %v6252_v8 = vor.u32 %v6822_v56, %v6249_v55 }
 0x380   : > { %v2340_v16 = vpop.f32.mrf.mxu2  ;;  %7149 = vrcp.f32 %v8560_v48  ;;  %v2692_v47 = vsel %vm2689_vm11, %v2691_v9, %v2687_v27  ;;  %v2376_v49 = vrot.slane %v8544_v36, 6  ;;  %vm2700_vm12 = vweird.f32 %v7144_v38 }
 0x381   : > { %v2524_v40 = vadd.f32 %v2422_v2, %v2340_v16  ;;  %v8568_v34 = vpop.f32.mrf.mxu0  ;;  %v8571_v20 = vmul.f32 %v7146_v45, %v2692_v47  ;;  %v2696_v35 = vsub.f32 1.0, %v2695_v57  ;;  %7151 = vtanh.f32 %v2556_v6  ;;  %3083 = vmatpush.bf16.msrb.mxu0 %v6252_v8  ;;  %vm2701_vm14 = vmor %vm2699_vm13, %vm2700_vm12 }
 0x382   : > { %v2381_v11 = vrot.slane %v8568_v34, 6  ;;  %v2703_v9 = vand.u32 2147483647, %v8541_v54  ;;  %7153 = vtanh.f32 %v2558_v30  ;;  %v10091_v47 = vrot.slane %v8562_v61, 6  ;;  %v8585_v2 = vpop.f32.mrf.mxu1 }
 0x383   : > { %v2563_v31 = vadd.f32 %v8514_v33, %v2524_v40  ;;  %v2697_v16 = vmul.f32 %v7144_v38, %v2696_v35  ;;  %v10169_v36 = vrot.slane %v8529_v22, 6  ;;  %v2706_v22 = vor.u32 1.1754944e-38, %v2705_v3 }
 0x384   : > { %v2420_v40 = vsel %vm2400_vm7, %v2379_v28, %v2381_v11  ;;  %vm2704_vm2 = vcmp.eq.f32.partialorder %v2703_v9, 8.507059e+37  ;;  %v2421_v28 = vsel %vm2400_vm7, %v2376_v49, %v10091_v47  ;;  %vm2714_vm0 = vweird.f32 %v8560_v48 }
 0x385   : > { %v6194_v32 = vmul.f32 -1.442695, %v2563_v31  ;;  %v7148_v41 = vpop.eup %7147  ;;  %v2423_v6 = vsel %vm2400_vm7, %v10169_v36, %v2376_v49  ;;  %v2698_v35 = vadd.f32 %v7144_v38, %v2697_v16  ;;  %v2720_v36 = vand.u32 2147483648, %v8560_v48 }
 0x386   : > { %v7150_v45 = vpop.eup %7149  ;;  %v8583_v57 = vadd.f32 1.0, %v7148_v41  ;;  %v2521_v54 = vadd.f32 %v2423_v6, %v8536_v59  ;;  %v2718_v41 = vand.u32 2147483647, %v8560_v48 }
 0x387   : > { %v8587_v27 = vpop.f32.mrf.mxu3  ;;  %7155 = vpow2.f32 %v6194_v32  ;;  %v2710_v34 = vmul.f32 %v7150_v45, %v8560_v48  ;;  %v2702_v30 = vsel %vm2701_vm14, %v7144_v38, %v2698_v35  ;;  %v7152_v8 = vpop.eup %7151  ;;  %vm2715_vm15 = vweird.f32 %v7150_v45 }
 0x388   : > { %v2343_v31 = vpop.f32.mrf.mxu2  ;;  %7157 = vrcp.f32 %v8583_v57  ;;  %v2707_v32 = vsel %vm2704_vm2, %v2706_v22, %v2702_v30  ;;  %v2523_v35 = vadd.f32 %v2421_v28, %v8557_v50  ;;  %v2560_v22 = vadd.f32 %v8533_v21, %v2521_v54  ;;  %vm2716_vm1 = vmor %vm2714_vm0, %vm2715_vm15 }
 0x389   : > { %v2526_v56 = vadd.f32 %v2420_v40, %v2343_v31  ;;  %v8595_v55 = vpop.f32.mrf.mxu0  ;;  %v2711_v16 = vsub.f32 1.0, %v2710_v34  ;;  %v2906_v31 = vmul.f32 %v7152_v8, %v2707_v32  ;;  %v7154_v40 = vpop.eup %7153  ;;  %vm2719_vm3 = vcmp.eq.f32.partialorder %v2718_v41, 8.507059e+37 }
 0x38a   : > { %v2383_v38 = vrot.slane %v8595_v55, 6  ;;  %v2721_v30 = vor.u32 1.1754944e-38, %v2720_v36  ;;  %v8617_v48 = vpop.f32.mrf.mxu1  ;;  %v2562_v41 = vadd.f32 %v8533_v21, %v2523_v35  ;;  %v2733_v35 = vand.u32 2147483647, %v8583_v57 }
 0x38b   : > { %v2565_v3 = vadd.f32 %v8514_v33, %v2526_v56  ;;  %v2712_v9 = vmul.f32 %v7150_v45, %v2711_v16  ;;  %v6820_v16 = vld [vmem:[#allocation7 + $0xc4] sm:$0xf]  ;;  %vm2729_vm5 = vweird.f32 %v8583_v57 }
 0x38c   : > { %v2418_v50 = vsel %vm2400_vm7, %v2381_v11, %v2383_v38  ;;  %vm2734_vm8 = vcmp.eq.f32.partialorder %v2733_v35, 8.507059e+37 }
 0x38d   : > { %v6195_v59 = vmul.f32 -1.442695, %v2565_v3  ;;  %v7156_v6 = vpop.eup %7155  ;;  %v2713_v18 = vadd.f32 %v7150_v45, %v2712_v9  ;;  %v6241_v3 = vld [vmem:[#allocation7 + $0xc8] sm:$0xf0] }
 0x38e   : > { %v7158_v49 = vpop.eup %7157  ;;  %v8609_v34 = vadd.f32 1.0, %v7156_v6  ;;  %v6244_v36 = vor.u32 %v6820_v16, %v6241_v3 }
 0x38f   : > { %v8611_v56 = vpop.f32.mrf.mxu3  ;;  %v2725_v55 = vmul.f32 %v7158_v49, %v8583_v57  ;;  %7159 = vpow2.f32 %v6195_v59  ;;  %v2717_v28 = vsel %vm2716_vm1, %v7150_v45, %v2713_v18  ;;  %v2380_v59 = vrot.slane %v8587_v27, 6 }
 0x390   : > { %v2345_v8 = vpop.f32.mrf.mxu2  ;;  %7161 = vrcp.f32 %v8609_v34  ;;  %v2722_v9 = vsel %vm2719_vm3, %v2721_v30, %v2717_v28  ;;  %3084 = vmatpush.bf16.msrb.mxu0 %v6244_v36  ;;  %vm2730_vm4 = vweird.f32 %v7158_v49  ;;  %v10170_v27 = vrot.slane %v8562_v61, 6 }
 0x391   : > { %v2528_v54 = vadd.f32 %v2418_v50, %v2345_v8  ;;  %v8619_v32 = vpop.f32.mrf.mxu0  ;;  %v2907_v6 = vmul.f32 %v7154_v40, %v2722_v9  ;;  %v2726_v11 = vsub.f32 1.0, %v2725_v55  ;;  %7163 = vtanh.f32 %v2560_v22  ;;  %vm2731_vm6 = vmor %vm2729_vm5, %vm2730_vm4 }
 0x392   : > { %v2385_v18 = vrot.slane %v8619_v32, 6  ;;  %v2735_v8 = vand.u32 2147483648, %v8583_v57  ;;  %7165 = vtanh.f32 %v2562_v41  ;;  %v2419_v22 = vsel %vm2400_vm7, %v10170_v27, %v2380_v59 }
 0x393   : > { %v2567_v47 = vadd.f32 %v8514_v33, %v2528_v54  ;;  %v8625_v45 = vpack.c.bf16 %v2907_v6, %v2906_v31  ;;  %v2727_v51 = vmul.f32 %v7158_v49, %v2726_v11  ;;  %v2382_v57 = vrot.slane %v8611_v56, 6  ;;  %v8646_v11 = vpop.f32.mrf.mxu1 }
 0x394   : > { %v2416_v54 = vsel %vm2400_vm7, %v2383_v38, %v2385_v18  ;;  %v2736_v32 = vor.u32 1.1754944e-38, %v2735_v8  ;;  %v2748_v8 = vand.u32 2147483647, %v8609_v34  ;;  %vm2744_vm10 = vweird.f32 %v8609_v34 }
 0x395   : > { %v6196_v50 = vmul.f32 -1.442695, %v2567_v47  ;;  %v7160_v30 = vpop.eup %7159  ;;  %v2728_v31 = vadd.f32 %v7158_v49, %v2727_v51  ;;  %v2525_v51 = vadd.f32 %v2419_v22, %v8585_v2 }
 0x396   : > { %v7162_v40 = vpop.eup %7161  ;;  %v8633_v55 = vadd.f32 1.0, %v7160_v30  ;;  %vm2749_vm12 = vcmp.eq.f32.partialorder %v2748_v8, 8.507059e+37 }
 0x397   : > { %v8635_v28 = vpop.f32.mrf.mxu3  ;;  %7167 = vpow2.f32 %v6196_v50  ;;  %v2740_v16 = vmul.f32 %v7162_v40, %v8609_v34  ;;  %v2732_v9 = vsel %vm2731_vm6, %v7158_v49, %v2728_v31  ;;  %v7164_v41 = vpop.eup %7163  ;;  %v2750_v50 = vand.u32 2147483648, %v8609_v34 }
 0x398   : > { %v2348_v47 = vpop.f32.mrf.mxu2  ;;  %7169 = vrcp.f32 %v8633_v55  ;;  %v2737_v36 = vsel %vm2734_vm8, %v2736_v32, %v2732_v9  ;;  %v7166_v27 = vpop.eup %7165  ;;  %vm2745_vm9 = vweird.f32 %v7162_v40  ;;  %v2564_v56 = vadd.f32 %v8533_v21, %v2525_v51 }
 0x399   : > { %v2530_v61 = vadd.f32 %v2416_v54, %v2348_v47  ;;  %v8642_v3 = vpop.f32.mrf.mxu0  ;;  %v2741_v6 = vsub.f32 1.0, %v2740_v16  ;;  %v2908_v30 = vmul.f32 %v7164_v41, %v2737_v36  ;;  %v2417_v54 = vsel %vm2400_vm7, %v2380_v59, %v2382_v57  ;;  %vm2746_vm11 = vmor %vm2744_vm10, %vm2745_vm9  ;;  %v6818_v59 = vld [vmem:[#allocation7 + $0xb4] sm:$0xf] }
 0x39a   : > { %v2387_v49 = vrot.slane %v8642_v3, 6  ;;  %vm2759_vm14 = vweird.f32 %v8633_v55 }
 0x39b   : > { %v2569_v38 = vadd.f32 %v8514_v33, %v2530_v61  ;;  %v2742_v35 = vmul.f32 %v7162_v40, %v2741_v6  ;;  %v2751_v61 = vor.u32 1.1754944e-38, %v2750_v50  ;;  %v6233_v6 = vld [vmem:[#allocation7 + $0xb8] sm:$0xf0] }
 0x39c   : > { %v2414_v41 = vsel %vm2400_vm7, %v2385_v18, %v2387_v49  ;;  %v6236_v8 = vor.u32 %v6818_v59, %v6233_v6 }
 0x39d   : > { %v6197_v31 = vmul.f32 -1.442695, %v2569_v38  ;;  %v7168_v2 = vpop.eup %7167  ;;  %v2743_v22 = vadd.f32 %v7162_v40, %v2742_v35  ;;  %v2527_v35 = vadd.f32 %v2417_v54, %v8617_v48  ;;  %v2763_v48 = vand.u32 2147483647, %v8633_v55 }
 0x39e   : > { %v7170_v47 = vpop.eup %7169  ;;  %v8656_v32 = vadd.f32 1.0, %v7168_v2  ;;  %v2384_v2 = vrot.slane %v8635_v28, 6  ;;  %3085 = vmatpush.bf16.msrb.mxu0 %v6236_v8 }
 0x39f   : > { %v8658_v16 = vpop.f32.mrf.mxu3  ;;  %v2755_v3 = vmul.f32 %v7170_v47, %v8633_v55  ;;  %7171 = vpow2.f32 %v6197_v31  ;;  %v2747_v51 = vsel %vm2746_vm11, %v7162_v40, %v2743_v22  ;;  %v2765_v22 = vand.u32 2147483648, %v8633_v55 }
 0x3a0   : > { %v2350_v9 = vpop.f32.mrf.mxu2  ;;  %7173 = vrcp.f32 %v8656_v32  ;;  %v2752_v38 = vsel %vm2749_vm12, %v2751_v61, %v2747_v51  ;;  %vm2760_vm13 = vweird.f32 %v7170_v47  ;;  %v2566_v28 = vadd.f32 %v8533_v21, %v2527_v35 }
 0x3a1   : > { %v2532_v34 = vadd.f32 %v2414_v41, %v2350_v9  ;;  %v8664_v36 = vpop.f32.mrf.mxu0  ;;  %v2909_v50 = vmul.f32 %v7166_v27, %v2752_v38  ;;  %v2756_v7 = vsub.f32 1.0, %v2755_v3  ;;  %7175 = vtanh.f32 %v2564_v56  ;;  %v8673_v9 = vpop.f32.mrf.mxu1  ;;  %vm2761_vm2 = vmor %vm2759_vm14, %vm2760_vm13 }
 0x3a2   : > { %v2389_v18 = vrot.slane %v8664_v36, 6  ;;  %v2415_v56 = vsel %vm2400_vm7, %v2382_v57, %v2384_v2  ;;  %v2766_v36 = vor.u32 1.1754944e-38, %v2765_v22  ;;  %vm2764_vm15 = vcmp.eq.f32.partialorder %v2763_v48, 8.507059e+37 }
 0x3a3   : > { %v2571_v31 = vadd.f32 %v8514_v33, %v2532_v34  ;;  %v8670_v40 = vpack.c.bf16 %v2909_v50, %v2908_v30  ;;  %v2757_v41 = vmul.f32 %v7170_v47, %v2756_v7  ;;  %v2529_v8 = vadd.f32 %v2415_v56, %v8646_v11 }
 0x3a4   : > { %v2412_v7 = vsel %vm2400_vm7, %v2387_v49, %v2389_v18  ;;  %v2386_v55 = vrot.slane %v8658_v16, 6  ;;  %v2778_v22 = vand.u32 2147483647, %v8656_v32  ;;  %vm2774_vm1 = vweird.f32 %v8656_v32 }
 0x3a5   : > { %v6198_v61 = vmul.f32 -1.442695, %v2571_v31  ;;  %v7172_v27 = vpop.eup %7171  ;;  %v2758_v51 = vadd.f32 %v7170_v47, %v2757_v41  ;;  %v2568_v11 = vadd.f32 %v8533_v21, %v2529_v8 }
 0x3a6   : > { %v7174_v54 = vpop.eup %7173  ;;  %v8679_v3 = vadd.f32 1.0, %v7172_v27  ;;  %vm2779_vm4 = vcmp.eq.f32.partialorder %v2778_v22, 8.507059e+37 }
 0x3a7   : > { %v8681_v30 = vpop.f32.mrf.mxu3  ;;  %7177 = vpow2.f32 %v6198_v61  ;;  %v2770_v59 = vmul.f32 %v7174_v54, %v8656_v32  ;;  %v2762_v38 = vsel %vm2761_vm2, %v7170_v47, %v2758_v51  ;;  %v7176_v35 = vpop.eup %7175  ;;  %v2780_v61 = vand.u32 2147483648, %v8656_v32 }
 0x3a8   : > { %v2353_v34 = vpop.f32.mrf.mxu2  ;;  %7179 = vrcp.f32 %v8679_v3  ;;  %v2767_v50 = vsel %vm2764_vm15, %v2766_v36, %v2762_v38  ;;  %vm2775_vm0 = vweird.f32 %v7174_v54  ;;  %v10095_v16 = vrot.slane %v8681_v30, 6 }
 0x3a9   : > { %v2534_v6 = vadd.f32 %v2412_v7, %v2353_v34  ;;  %v8688_v57 = vpop.f32.mrf.mxu0  ;;  %v2771_v31 = vsub.f32 1.0, %v2770_v59  ;;  %v2910_v41 = vmul.f32 %v7176_v35, %v2767_v50  ;;  %7181 = vtanh.f32 %v2566_v28  ;;  %v2304_v28 = vpop.f32.mrf.mxu1  ;;  %vm2776_vm3 = vmor %vm2774_vm1, %vm2775_vm0  ;;  %v6816_v50 = vld [vmem:[#allocation7 + $0xa4] sm:$0xf] }
 0x3aa   : > { %v2391_v27 = vrot.slane %v8688_v57, 6  ;;  %v2413_v7 = vsel %vm2400_vm7, %v2384_v2, %v2386_v55  ;;  %vm2789_vm6 = vweird.f32 %v8679_v3  ;;  %vm2433_vm1 = vcmp.ge.s32.totalorder %v8026_v52, 2 }
 0x3ab   : > { %v2573_v49 = vadd.f32 %v8514_v33, %v2534_v6  ;;  %v2772_v34 = vmul.f32 %v7174_v54, %v2771_v31  ;;  %v2781_v6 = vor.u32 1.1754944e-38, %v2780_v61  ;;  %v6225_v31 = vld [vmem:[#allocation7 + $0xa8] sm:$0xf0]  ;;  %v2531_v22 = vadd.f32 %v2413_v7, %v8673_v9 }
 0x3ac   : > { %v2410_v32 = vsel %vm2400_vm7, %v2389_v18, %v2391_v27  ;;  %v2411_v61 = vsel %vm2400_vm7, %v2386_v55, %v10095_v16  ;;  %v2793_v18 = vand.u32 2147483647, %v8679_v3 }
 0x3ad   : > { %v6199_v47 = vmul.f32 -1.442695, %v2573_v49  ;;  %v7178_v48 = vpop.eup %7177  ;;  %v2773_v56 = vadd.f32 %v7174_v54, %v2772_v34 }
 0x3ae   : > { %v8699_v51 = vpop.eup %7179  ;;  %v8703_v36 = vadd.f32 1.0, %v7178_v48  ;;  %vm8729_vm8 = vcmp.eq.f32.partialorder %v2793_v18, 8.507059e+37 }
 0x3af   : > { %v8705_v59 = vpop.f32.mrf.mxu3  ;;  %v2785_v57 = vmul.f32 %v8699_v51, %v8679_v3  ;;  %7183 = vpow2.f32 %v6199_v47  ;;  %v2777_v35 = vsel %vm2776_vm3, %v7174_v54, %v2773_v56  ;;  %v7182_v34 = vpop.eup %7181  ;;  %v6228_v47 = vor.u32 %v6816_v50, %v6225_v31  ;;  %v6827_v31 = vld [vmem:[#allocation7 + $0xf4] sm:$0xf0] }
 0x3b0   : > { %v2355_v38 = vpop.f32.mrf.mxu2  ;;  %7185 = vrcp.f32 %v8703_v36  ;;  %v2782_v49 = vsel %vm2779_vm4, %v2781_v6, %v2777_v35  ;;  %vm2790_vm5 = vweird.f32 %v8699_v51  ;;  %v2570_v35 = vadd.f32 %v8533_v21, %v2531_v22 }
 0x3b1   : > { %v2536_v2 = vadd.f32 %v2410_v32, %v2355_v38  ;;  %v8712_v8 = vpop.f32.mrf.mxu0  ;;  %v2911_v48 = vmul.f32 %v7182_v34, %v2782_v49  ;;  %v2786_v56 = vsub.f32 1.0, %v2785_v57  ;;  %v2795_v38 = vand.u32 2147483648, %v8679_v3  ;;  %3086 = vmatpush.bf16.msrb.mxu0 %v6228_v47  ;;  %vm2791_vm9 = vmor %vm2789_vm6, %vm2790_vm5  ;;  %v2306_v18 = vpop.f32.mrf.mxu1 }
 0x3b2   : > { %7187 = vtanh.f32 %v2568_v11  ;;  %v10094_v6 = vrot.slane %v8712_v8, 6  ;;  %v2533_v50 = vadd.f32 %v2411_v61, %v2304_v28  ;;  %v2390_v22 = vrot.slane %v8705_v59, 6 }
 0x3b3   : > { %v2575_v54 = vadd.f32 %v8514_v33, %v2536_v2  ;;  %v8723_v9 = vpack.c.bf16 %v2911_v48, %v2910_v41  ;;  %v2787_v7 = vmul.f32 %v8699_v51, %v2786_v56  ;;  %v6263_v2 = vld [vmem:[#allocation7 + $0xf0] sm:$0xf]  ;;  %vm2804_vm11 = vweird.f32 %v8703_v36 }
 0x3b4   : > { %v6264_v34 = vor.u32 %v6827_v31, %v6263_v2  ;;  %v2408_v3 = vsel %vm2400_vm7, %v2391_v27, %v10094_v6  ;;  %v6825_v27 = vld [vmem:[#allocation7 + $0xe4] sm:$0xf0] }
 0x3b5   : > { %v6200_v32 = vmul.f32 -1.442695, %v2575_v54  ;;  %v7184_v55 = vpop.eup %7183  ;;  %v2788_v47 = vadd.f32 %v8699_v51, %v2787_v7  ;;  %v2796_v54 = vor.u32 1.1754944e-38, %v2795_v38  ;;  %v2808_v38 = vand.u32 2147483647, %v8703_v36 }
 0x3b6   : > { %v7186_v57 = vpop.eup %7185  ;;  %v8733_v49 = vadd.f32 1.0, %v7184_v55  ;;  %3032 = vmatpush.bf16.msra.mxu3 %v6264_v34  ;;  %v6255_v7 = vld [vmem:[#allocation7 + $0xe0] sm:$0xf] }
 0x3b7   : > { %v8735_v41 = vpop.f32.mrf.mxu3  ;;  %7189 = vpow2.f32 %v6200_v32  ;;  %v2800_v61 = vmul.f32 %v7186_v57, %v8703_v36  ;;  %v2792_v59 = vsel %vm2791_vm9, %v8699_v51, %v2788_v47  ;;  %v6256_v6 = vor.u32 %v6825_v27, %v6255_v7 }
 0x3b8   : > { %v2358_v28 = vpop.f32.mrf.mxu2  ;;  %7191 = vrcp.f32 %v8733_v49  ;;  %v7188_v32 = vpop.eup %7187  ;;  %v2797_v55 = vsel %vm8729_vm8, %v2796_v54, %v2792_v59  ;;  %vm2805_vm10 = vweird.f32 %v7186_v57  ;;  %v2572_v51 = vadd.f32 %v8533_v21, %v2533_v50  ;;  %v6823_v59 = vld [vmem:[#allocation7 + $0xd4] sm:$0xf0] }
 0x3b9   : > { %v2538_v48 = vadd.f32 %v2408_v3, %v2358_v28  ;;  %v8747_v56 = vpop.f32.mrf.mxu0  ;;  %7193 = vtanh.f32 %v2570_v35  ;;  %v2801_v2 = vsub.f32 1.0, %v2800_v61  ;;  %v2810_v28 = vand.u32 2147483648, %v8703_v36  ;;  %vm2806_vm13 = vmor %vm2804_vm11, %vm2805_vm10 }
 0x3ba   : > { %v2912_v3 = vmul.f32 %v7188_v32, %v2797_v55  ;;  %v10097_v34 = vrot.slane %v8747_v56, 6  ;;  %v10173_v35 = vrot.slane %v8681_v30, 6  ;;  %3033 = vmatpush.bf16.msra.mxu3 %v6256_v6  ;;  %vm8763_vm12 = vcmp.eq.f32.partialorder %v2808_v38, 8.507059e+37 }
 0x3bb   : > { %v2577_v31 = vadd.f32 %v8514_v33, %v2538_v48  ;;  %v2802_v16 = vmul.f32 %v7186_v57, %v2801_v2  ;;  %v6247_v48 = vld [vmem:[#allocation7 + $0xd0] sm:$0xf]  ;;  %v2811_v6 = vor.u32 1.1754944e-38, %v2810_v28  ;;  %v2825_v2 = vand.u32 2147483648, %v8733_v49 }
 0x3bc   : > { %v2409_v47 = vsel %vm2400_vm7, %v10173_v35, %v2390_v22  ;;  %v6248_v55 = vor.u32 %v6823_v59, %v6247_v48  ;;  %v10176_v38 = vrot.slane %v8712_v8, 6  ;;  %v10177_v23 = vrot.slane %v8735_v41, 6 }
 0x3bd   : > { %v6201_v11 = vmul.f32 -1.442695, %v2577_v31  ;;  %v7190_v54 = vpop.eup %7189  ;;  %v2803_v7 = vadd.f32 %v7186_v57, %v2802_v16  ;;  %v2535_v61 = vadd.f32 %v2409_v47, %v2306_v18  ;;  %v2826_v32 = vor.u32 1.1754944e-38, %v2825_v2  ;;  %v6819_v2 = vld [vmem:[#allocation7 + $0xb4] sm:$0xf0] }
 0x3be   : > { %v8767_v50 = vpop.eup %7191  ;;  %v8769_v30 = vadd.f32 1.0, %v7190_v54  ;;  %v2406_v35 = vsel %vm2400_vm7, %v10176_v38, %v10097_v34  ;;  %3034 = vmatpush.bf16.msra.mxu3 %v6248_v55  ;;  %v2407_v8 = vsel %vm2400_vm7, %v2390_v22, %v10177_v23  ;;  %v6821_v38 = vld [vmem:[#allocation7 + $0xc4] sm:$0xf0]  ;;  %v2309_v34 = vpop.f32.mrf.mxu1  ;;  %vm2819_vm2 = vweird.f32 %v8733_v49 }
 0x3bf   : > { %v8771_v27 = vpop.f32.mrf.mxu3  ;;  %v7194_v31 = vpop.eup %7193  ;;  %v2815_v16 = vmul.f32 %v8767_v50, %v8733_v49  ;;  %7195 = vpow2.f32 %v6201_v11  ;;  %v2807_v54 = vsel %vm2806_vm13, %v7186_v57, %v2803_v7  ;;  %v2823_v11 = vand.u32 2147483647, %v8733_v49 }
 0x3c0   : > { %v2360_v36 = vpop.f32.mrf.mxu2  ;;  %7197 = vrcp.f32 %v8769_v30  ;;  %v2812_v59 = vsel %vm8763_vm12, %v2811_v6, %v2807_v54  ;;  %v6814_v6 = vld [vmem:[#allocation7 + $0x94] sm:$0xf]  ;;  %v6217_v54 = vld [vmem:[#allocation7 + $0x98] sm:$0xf0]  ;;  %vm2820_vm14 = vweird.f32 %v8767_v50  ;;  %vm2834_vm4 = vweird.f32 %v8769_v30 }
 0x3c1   : > { %v2540_v48 = vadd.f32 %v2406_v35, %v2360_v36  ;;  %v8784_v28 = vpop.f32.mrf.mxu0  ;;  %v2913_v57 = vmul.f32 %v7194_v31, %v2812_v59  ;;  %v2816_v7 = vsub.f32 1.0, %v2815_v16  ;;  %v6240_v35 = vor.u32 %v6821_v38, %v6239_v24  ;;  %v6209_v31 = vld [vmem:[#allocation7 + $0x88] sm:$0xf0]  ;;  %v6231_v16 = vld [vmem:[#allocation7 + $0xb0] sm:$0xf]  ;;  %vm2821_vm15 = vmor %vm2819_vm2, %vm2820_vm14 }
 0x3c2   : > { %v2397_v55 = vrot.slane %v8784_v28, 6  ;;  %7199 = vtanh.f32 %v2572_v51  ;;  %v6220_v22 = vor.u32 %v6814_v6, %v6217_v54  ;;  %v2574_v28 = vadd.f32 %v8533_v21, %v2535_v61  ;;  %v6223_v59 = vld [vmem:[#allocation7 + $0xa0] sm:$0xf]  ;;  %v6817_v38 = vld [vmem:[#allocation7 + $0xa4] sm:$0xf0] }
 0x3c3   : > { %v2579_v36 = vadd.f32 %v8514_v33, %v2540_v48  ;;  %v8795_v18 = vpack.c.bf16 %v2913_v57, %v2912_v3  ;;  %v2817_v47 = vmul.f32 %v8767_v50, %v2816_v7  ;;  %3035 = vmatpush.bf16.msra.mxu3 %v6240_v35  ;;  %v2537_v24 = vadd.f32 %v2407_v8, %v2309_v34 }
 0x3c4   : > { %v2394_v51 = vrot.slane %v8771_v27, 6  ;;  %3087 = vmatpush.bf16.msrb.mxu0 %v6220_v22  ;;  %v6212_v35 = vor.u32 %v6812_v0, %v6209_v31  ;;  %v6232_v6 = vor.u32 %v6819_v2, %v6231_v16  ;;  %v10178_v61 = vrot.slane %v8747_v56, 6  ;;  %v6815_v16 = vld [vmem:[#allocation7 + $0x94] sm:$0xf0] }
 0x3c5   : > { %v6202_v23 = vmul.f32 -1.442695, %v2579_v36  ;;  %v7196_v48 = vpop.eup %7195  ;;  %v2818_v3 = vadd.f32 %v8767_v50, %v2817_v47  ;;  %vm2824_vm0 = vcmp.eq.f32.partialorder %v2823_v11, 8.507059e+37  ;;  %v6224_v0 = vor.u32 %v6817_v38, %v6223_v59 }
 0x3c6   : > { %v8802_v57 = vpop.eup %7197  ;;  %v8804_v7 = vadd.f32 1.0, %v7196_v48  ;;  %v2404_v49 = vsel %vm2400_vm7, %v10178_v61, %v2397_v55 }
 0x3c7   : > { %v8807_v36 = vpop.f32.mrf.mxu3  ;;  %7201 = vpow2.f32 %v6202_v23  ;;  %v2822_v8 = vsel %vm2821_vm15, %v8767_v50, %v2818_v3  ;;  %3036 = vmatpush.bf16.msra.mxu3 %v6232_v6  ;;  %v6215_v23 = vld [vmem:[#allocation7 + $0x90] sm:$0xf]  ;;  %v2830_v56 = vmul.f32 %v8802_v57, %v8769_v30  ;;  %v10179_v50 = vrot.slane %v8735_v41, 6  ;;  %v2311_v41 = vpop.f32.mrf.mxu1 }
 0x3c8   : > { %v2363_v34 = vpop.f32.mrf.mxu2  ;;  %7203 = vrcp.f32 %v8804_v7  ;;  %v2827_v22 = vsel %vm2824_vm0, %v2826_v32, %v2822_v8  ;;  %v7200_v48 = vpop.eup %7199  ;;  %3088 = vmatpush.bf16.msrb.mxu0 %v6212_v35  ;;  %v10180_v32 = vrot.slane %v8501_v37, 6  ;;  %v2576_v6 = vadd.f32 %v8533_v21, %v2537_v24 }
 0x3c9   : > { %v2542_v54 = vadd.f32 %v2404_v49, %v2363_v34  ;;  %v2267_v47 = vpop.f32.mrf.mxu0  ;;  %7205 = vtanh.f32 %v2574_v28  ;;  %v2405_v11 = vsel %vm2400_vm7, %v10179_v50, %v2394_v51  ;;  %v2831_v3 = vsub.f32 1.0, %v2830_v56 }
 0x3ca   : > { %v2399_v31 = vrot.slane %v2267_v47, 6  ;;  %v8833_v28 = vmul.f32 %v7200_v48, %v2827_v22  ;;  %v6216_v35 = vor.u32 %v6815_v16, %v6215_v23  ;;  %v2539_v37 = vadd.f32 %v2405_v11, %v2311_v41  ;;  %v6207_v47 = vld [vmem:[#allocation7 + $0x80] sm:$0xf]  ;;  %v6856_v41 = vld [vmem:[#allocation5 + $0x2e4] sm:$0xf] }
 0x3cb   : > { %v2581_v2 = vadd.f32 %v8514_v33, %v2542_v54  ;;  %3037 = vmatpush.bf16.msra.mxu3 %v6224_v0  ;;  %v2396_v8 = vrot.slane %v8807_v36, 6  ;;  %v2832_v22 = vmul.f32 %v8802_v57, %v2831_v3  ;;  %vm2835_vm3 = vweird.f32 %v8802_v57 }
 0x3cc   : > { %v2432_v59 = vsel %vm2400_vm7, %v2399_v31, %v10180_v32  ;;  %v2402_v38 = vsel %vm2400_vm7, %v2397_v55, %v2399_v31  ;;  %v6813_v55 = vld [vmem:[#allocation7 + $0x84] sm:$0xf0]  ;;  %v2838_v0 = vand.u32 2147483647, %v8769_v30  ;;  %v2840_v23 = vand.u32 2147483648, %v8769_v30  ;;  %vm2836_vm5 = vmor %vm2834_vm4, %vm2835_vm3 }
 0x3cd   : > { %v6203_v34 = vmul.f32 -1.442695, %v2581_v2  ;;  %v2482_v61 = vsel %vm2433_vm1, %v2432_v59, 0.0  ;;  %v7202_v49 = vpop.eup %7201  ;;  %v6208_v2 = vor.u32 %v6813_v55, %v6207_v47  ;;  %v2833_v32 = vadd.f32 %v8802_v57, %v2832_v22 }
 0x3ce   : > { %v2514_v54 = vadd.f32 %v2482_v61, %v8507_v62  ;;  %v8841_v31 = vpop.eup %7203  ;;  %v8843_v24 = vadd.f32 1.0, %v7202_v49  ;;  %v2578_v61 = vadd.f32 %v8533_v21, %v2539_v37  ;;  %vm2839_vm6 = vcmp.eq.f32.partialorder %v2838_v0, 8.507059e+37 }
 0x3cf   : > { %v2218_v56 = vpop.f32.mrf.mxu3  ;;  %v2845_v36 = vmul.f32 %v8841_v31, %v8804_v7  ;;  %7207 = vpow2.f32 %v6203_v34  ;;  %v7206_v50 = vpop.eup %7205  ;;  %3038 = vmatpush.bf16.msra.mxu3 %v6216_v35  ;;  %v6385_v34 = vld [vmem:[#allocation5 + $0x2f0] sm:$0xf0]  ;;  %v2403_v47 = vsel %vm2400_vm7, %v2394_v51, %v2396_v8  ;;  %v2855_v37 = vand.u32 2147483648, %v8804_v7 }
 0x3d0   : > { %v2553_v62 = vadd.f32 %v8514_v33, %v2514_v54  ;;  %v2398_v16 = vrot.slane %v2218_v56, 6  ;;  %v2365_v48 = vpop.f32.mrf.mxu2  ;;  %7209 = vrcp.f32 %v8843_v24  ;;  %v6388_v54 = vor.u32 %v6856_v41, %v6385_v34 }
 0x3d1   : > { %v2544_v11 = vadd.f32 %v2402_v38, %v2365_v48  ;;  %7211 = vtanh.f32 %v2576_v6  ;;  %v2841_v38 = vor.u32 1.1754944e-38, %v2840_v23  ;;  %v2837_v6 = vsel %vm2836_vm5, %v8802_v57, %v2833_v32 }
 0x3d2   : > { %v6189_v59 = vmul.f32 -1.442695, %v2553_v62  ;;  %v8855_v3 = vsel %vm2400_vm7, %v2396_v8, %v2398_v16  ;;  %v2846_v35 = vsub.f32 1.0, %v2845_v36  ;;  %3412 = vmatpush.bf16.msra.mxu2 %v6388_v54  ;;  %vm2850_vm8 = vweird.f32 %v8841_v31  ;;  %v2314_v8 = vpop.f32.mrf.mxu1 }
 0x3d3   : > { %v2583_v49 = vadd.f32 %v8514_v33, %v2544_v11  ;;  %3039 = vmatpush.bf16.msra.mxu3 %v6208_v2  ;;  %v2842_v30 = vsel %vm2839_vm6, %v2841_v38, %v2837_v6  ;;  %v2853_v33 = vand.u32 2147483647, %v8804_v7  ;;  %vm2849_vm9 = vweird.f32 %v8804_v7 }
 0x3d4   : > { %7213 = vpow2.f32 %v6189_v59  ;;  %v2915_v56 = vmul.f32 %v7206_v50, %v2842_v30  ;;  %v2847_v23 = vmul.f32 %v8841_v31, %v2846_v35  ;;  %v10181_v0 = vrot.slane %v8505_v43, 6  ;;  %vm2851_vm10 = vmor %vm2849_vm9, %vm2850_vm8 }
 0x3d5   : > { %v7208_v55 = vpop.eup %7207  ;;  %v6204_v22 = vmul.f32 -1.442695, %v2583_v49  ;;  %7215 = vtanh.f32 %v2578_v61  ;;  %v2541_v11 = vadd.f32 %v2403_v47, %v2314_v8  ;;  %v2856_v2 = vor.u32 1.1754944e-38, %v2855_v37 }
 0x3d6   : > { %v7210_v57 = vpop.eup %7209  ;;  %v8871_v27 = vadd.f32 1.0, %v7208_v55  ;;  %v2431_v36 = vsel %vm2400_vm7, %v2398_v16, %v10181_v0  ;;  %v8879_v62 = vpack.c.bf16 %v2915_v56, %v8833_v28  ;;  %v2848_v48 = vadd.f32 %v8841_v31, %v2847_v23  ;;  %v6852_v23 = vld [vmem:[#allocation5 + $0x2c4] sm:$0xf] }
 0x3d7   : > { %v7212_v51 = vpop.eup %7211  ;;  %v2860_v50 = vmul.f32 %v7210_v57, %v8843_v24  ;;  %vm2854_vm11 = vcmp.eq.f32.partialorder %v2853_v33, 8.507059e+37  ;;  %v2481_v28 = vsel %vm2433_vm1, %v2431_v36, 0.0  ;;  %v2870_v41 = vand.u32 2147483648, %v8843_v24 }
 0x3d8   : > { %7217 = vrcp.f32 %v8871_v27  ;;  %v2852_v32 = vsel %vm2851_vm10, %v8841_v31, %v2848_v48  ;;  %vm2865_vm7 = vweird.f32 %v7210_v57  ;;  %v2868_v61 = vand.u32 2147483647, %v8843_v24 }
 0x3d9   : > { %7219 = vpow2.f32 %v6204_v22  ;;  %v2861_v43 = vsub.f32 1.0, %v2860_v50  ;;  %v2857_v16 = vsel %vm2854_vm11, %v2856_v2, %v2852_v32  ;;  %v2580_v31 = vadd.f32 %v8533_v21, %v2541_v11 }
 0x3da   : > { %v7214_v7 = vpop.eup %7213  ;;  %v2916_v49 = vmul.f32 %v7212_v51, %v2857_v16  ;;  %v2513_v38 = vadd.f32 %v2481_v28, %v8503_v46  ;;  %vm2864_vm12 = vweird.f32 %v8843_v24  ;;  %v2871_v47 = vor.u32 1.1754944e-38, %v2870_v41  ;;  %v6369_v51 = vld [vmem:[#allocation5 + $0x2d0] sm:$0xf0] }
 0x3db   : > { %v8885_v59 = vadd.f32 1.0, %v7214_v7  ;;  %v2862_v34 = vmul.f32 %v7210_v57, %v2861_v43  ;;  %v7216_v54 = vpop.eup %7215  ;;  %vm2866_vm13 = vmor %vm2864_vm12, %vm2865_vm7  ;;  %vm2869_vm14 = vcmp.eq.f32.partialorder %v2868_v61, 8.507059e+37  ;;  %v6372_v24 = vor.u32 %v6852_v23, %v6369_v51 }
 0x3dc   : > { %v2552_v56 = vadd.f32 %v8533_v21, %v2513_v38  ;;  %v2883_v36 = vand.u32 2147483647, %v8871_v27  ;;  %v2885_v48 = vand.u32 2147483648, %v8871_v27  ;;  %vm2879_vm15 = vweird.f32 %v8871_v27 }
 0x3dd   : > { %7221 = vrcp.f32 %v8885_v59  ;;  %v2863_v6 = vadd.f32 %v7210_v57, %v2862_v34  ;;  %3413 = vmatpush.bf16.msra.mxu2 %v6372_v24  ;;  %v2673_v28 = vand.u32 2147483647, %v8885_v59  ;;  %v2675_v16 = vand.u32 2147483648, %v8885_v59  ;;  %v6848_v24 = vld [vmem:[#allocation5 + $0x2a4] sm:$0xf] }
 0x3de   : > { %v7218_v35 = vpop.eup %7217  ;;  %7223 = vtanh.f32 %v2580_v31  ;;  %v2886_v41 = vor.u32 1.1754944e-38, %v2885_v48  ;;  %vm2884_vm3 = vcmp.eq.f32.partialorder %v2883_v36, 8.507059e+37  ;;  %vm2669_vm4 = vweird.f32 %v8885_v59 }
 0x3df   : > { %v7220_v30 = vpop.eup %7219  ;;  %v2875_v33 = vmul.f32 %v7218_v35, %v8871_v27  ;;  %v2867_v37 = vsel %vm2866_vm13, %v7210_v57, %v2863_v6  ;;  %v2316_v57 = vpop.f32.mrf.mxu1  ;;  %vm2880_vm2 = vweird.f32 %v7218_v35  ;;  %vm2674_vm6 = vcmp.eq.f32.partialorder %v2673_v28, 8.507059e+37  ;;  %v6844_v28 = vld [vmem:[#allocation5 + $0x284] sm:$0xf] }
 0x3e0   : > { %v2663_v55 = vadd.f32 1.0, %v7220_v30  ;;  %v2872_v22 = vsel %vm2869_vm14, %v2871_v47, %v2867_v37  ;;  %v2543_v7 = vadd.f32 %v8855_v3, %v2316_v57  ;;  %vm2881_vm0 = vmor %vm2879_vm15, %vm2880_vm2  ;;  %v2676_v47 = vor.u32 1.1754944e-38, %v2675_v16  ;;  %v6353_v57 = vld [vmem:[#allocation5 + $0x2b0] sm:$0xf0] }
 0x3e1   : > { %v2917_v8 = vmul.f32 %v7216_v54, %v2872_v22  ;;  %v2876_v46 = vsub.f32 1.0, %v2875_v33  ;;  %vm3591_vm7 = vcmp.lt.s32.totalorder %v7952_v63, 4 }
 0x3e2   : > { %7225 = vrcp.f32 %v2663_v55  ;;  %v2582_v3 = vadd.f32 %v8533_v21, %v2543_v7  ;;  %vm2894_vm9 = vweird.f32 %v2663_v55  ;;  %v6356_v7 = vor.u32 %v6848_v24, %v6353_v57  ;;  %v6853_v24 = vld [vmem:[#allocation5 + $0x2cc] sm:$0xf]  ;;  %v6851_v57 = vld [vmem:[#allocation5 + $0x2b4] sm:$0xf0] }
 0x3e3   : > { %v7222_v0 = vpop.eup %7221  ;;  %v8900_v11 = vpack.c.bf16 %v2917_v8, %v2916_v49  ;;  %v2877_v2 = vmul.f32 %v7218_v35, %v2876_v46  ;;  %7227 = vtanh.f32 %v2552_v56  ;;  %v2898_v56 = vand.u32 2147483647, %v2663_v55  ;;  %v6383_v46 = vld [vmem:[#allocation5 + $0x2e0] sm:$0xf] }
 0x3e4   : > { %v2665_v50 = vmul.f32 %v7222_v0, %v8885_v59  ;;  %v7224_v34 = vpop.eup %7223  ;;  %vm2670_vm1 = vweird.f32 %v7222_v0  ;;  %7229 = vtanh.f32 %v2582_v3  ;;  %3414 = vmatpush.bf16.msra.mxu2 %v6356_v7  ;;  %v6849_v7 = vld [vmem:[#allocation5 + $0x2ac] sm:$0xf] }
 0x3e5   : > { %v2878_v43 = vadd.f32 %v7218_v35, %v2877_v2  ;;  %vm2671_vm5 = vmor %vm2669_vm4, %vm2670_vm1  ;;  %vm2899_vm11 = vcmp.eq.f32.partialorder %v2898_v56, 8.507059e+37 }
 0x3e6   : > { %v2666_v32 = vsub.f32 1.0, %v2665_v50 }
 0x3e7   : > { %v2882_v49 = vsel %vm2881_vm0, %v7218_v35, %v2878_v43  ;;  %v2900_v35 = vand.u32 2147483648, %v2663_v55  ;;  %v6854_v43 = vld [vmem:[#allocation5 + $0x2cc] sm:$0xf0] }
 0x3e8   : > { %v2667_v61 = vmul.f32 %v7222_v0, %v2666_v32  ;;  %v7226_v54 = vpop.eup %7225  ;;  %v2887_v31 = vsel %vm2884_vm3, %v2886_v41, %v2882_v49  ;;  %v6337_v41 = vld [vmem:[#allocation5 + $0x290] sm:$0xf0]  ;;  %v6850_v49 = vld [vmem:[#allocation5 + $0x2ac] sm:$0xf0] }
 0x3e9   : > { %v2890_v27 = vmul.f32 %v7226_v54, %v2663_v55  ;;  %v2918_v6 = vmul.f32 %v7224_v34, %v2887_v31  ;;  %v7228_v37 = vpop.eup %7227  ;;  %vm2895_vm8 = vweird.f32 %v7226_v54  ;;  %v2901_v59 = vor.u32 1.1754944e-38, %v2900_v35  ;;  %v6367_v55 = vld [vmem:[#allocation5 + $0x2c0] sm:$0xf]  ;;  %v6321_v31 = vld [vmem:[#allocation5 + $0x270] sm:$0xf0] }
 0x3ea   : > { %v2668_v38 = vadd.f32 %v7222_v0, %v2667_v61  ;;  %vm2896_vm10 = vmor %vm2894_vm9, %vm2895_vm8  ;;  %v7230_v48 = vpop.eup %7229  ;;  %v6368_v16 = vor.u32 %v6854_v43, %v6367_v55  ;;  %v6340_v34 = vor.u32 %v6844_v28, %v6337_v41  ;;  %v6351_v61 = vld [vmem:[#allocation5 + $0x2a0] sm:$0xf]  ;;  %v6289_v35 = vld [vmem:[#allocation5 + $0x230] sm:$0xf0] }
 0x3eb   : > { %v2891_v33 = vsub.f32 1.0, %v2890_v27  ;;  %v6352_v3 = vor.u32 %v6850_v49, %v6351_v61  ;;  %v6846_v27 = vld [vmem:[#allocation5 + $0x28c] sm:$0xf0]  ;;  %v6303_v55 = vld [vmem:[#allocation5 + $0x240] sm:$0xf] }
 0x3ec   : > { %v2672_v30 = vsel %vm2671_vm5, %v7222_v0, %v2668_v38  ;;  %v6858_v0 = vld [vmem:[#allocation5 + $0x2ec] sm:$0xf0]  ;;  %3415 = vmatpush.bf16.msra.mxu2 %v6340_v34  ;;  %v6343_v34 = vld [vmem:[#allocation5 + $0x288] sm:$0xf]  ;;  %v6847_v61 = vld [vmem:[#allocation5 + $0x294] sm:$0xf0] }
 0x3ed   : > { %v2677_v22 = vsel %vm2674_vm6, %v2676_v47, %v2672_v30  ;;  %v2892_v51 = vmul.f32 %v7226_v54, %v2891_v33  ;;  %v6384_v50 = vor.u32 %v6858_v0, %v6383_v46  ;;  %v6305_v30 = vld [vmem:[#allocation5 + $0x250] sm:$0xf0]  ;;  %v6855_v0 = vld [vmem:[#allocation5 + $0x2d4] sm:$0xf0]  ;;  %v6838_v28 = vld [vmem:[#allocation5 + $0x24c] sm:$0xf0] }
 0x3ee   : > { %v2904_v23 = vmul.f32 %v7228_v37, %v2677_v22  ;;  %v6842_v37 = vld [vmem:[#allocation5 + $0x26c] sm:$0xf0]  ;;  %v6832_v22 = vld [vmem:[#allocation5 + $0x224] sm:$0xf]  ;;  %v6304_v41 = vor.u32 %v6838_v28, %v6303_v55  ;;  %v6845_v49 = vld [vmem:[#allocation5 + $0x28c] sm:$0xf] }
 0x3ef   : > { %v2893_v8 = vadd.f32 %v7226_v54, %v2892_v51  ;;  %3363 = vmatpush.bf16.msrb.mxu1 %v6384_v50  ;;  %v6859_v51 = vld [vmem:[#allocation5 + $0x2f4] sm:$0xf0]  ;;  %v6359_v50 = vld [vmem:[#allocation5 + $0x2a8] sm:$0xf] }
 0x3f0   : > { %v2937_v21 = vpack.c.bf16 %v8571_v20, %v2904_v23  ;;  %v6391_v23 = vld [vmem:[#allocation5 + $0x2e8] sm:$0xf]  ;;  %v6360_v43 = vor.u32 %v6851_v57, %v6359_v50  ;;  %v2946_v28 = vld [vmem:[#allocation8 + $0x1] ss:$4 sm:$0x3] }
 0x3f1   : > { %v2897_v36 = vsel %vm2896_vm10, %v7226_v54, %v2893_v8  ;;  %v6840_v54 = vld [vmem:[#allocation5 + $0x264] sm:$0xf]  ;;  %v6857_v8 = vld [vmem:[#allocation5 + $0x2ec] sm:$0xf]  ;;  %v6279_v50 = vld [vmem:[#allocation5 + $0x208] sm:$0xf] }
 0x3f2   : > { %3040 = vmatmul.bf16.vlgmr.msra.gmra.mxu3 %v2937_v21  ;;  %3089 = vmatmul.bf16.vlgmr.msrb.gmra.mxu0 %v2937_v21  ;;  %v2902_v2 = vsel %vm2899_vm11, %v2901_v59, %v2897_v36  ;;  %v6324_v38 = vor.u32 %v6840_v54, %v6321_v31  ;;  %v6392_v21 = vor.u32 %v6859_v51, %v6391_v23  ;;  %v6393_v59 = vld [vmem:[#allocation5 + $0x2f8] sm:$0xf0] }
 0x3f3   : > { %v2919_v32 = vmul.f32 %v7230_v48, %v2902_v2  ;;  %3364 = vmatpush.bf16.msrb.mxu1 %v6368_v16  ;;  %v6396_v46 = vor.u32 %v6857_v8, %v6393_v59  ;;  %v6377_v48 = vld [vmem:[#allocation5 + $0x2d8] sm:$0xf0]  ;;  %v6295_v8 = vld [vmem:[#allocation5 + $0x228] sm:$0xf]  ;;  %v6835_v59 = vld [vmem:[#allocation5 + $0x234] sm:$0xf0] }
 0x3f4   : > { %3416 = vmatpush.bf16.msra.mxu2 %v6324_v38  ;;  %3461 = vmatpush.bf16.msrb.mxu3 %v6392_v21  ;;  %v6380_v2 = vor.u32 %v6853_v24, %v6377_v48  ;;  %v6345_v54 = vld [vmem:[#allocation5 + $0x298] sm:$0xf0]  ;;  %v6344_v38 = vor.u32 %v6847_v61, %v6343_v34  ;;  %v6834_v21 = vld [vmem:[#allocation5 + $0x22c] sm:$0xf0]  ;;  %v8927_v61 = vperm.slane %v2946_v28, 1 }
 0x3f5   : > { %v8909_v20 = vpack.c.bf16 %v2919_v32, %v2918_v6  ;;  %v6836_v6 = vld [vmem:[#allocation5 + $0x244] sm:$0xf]  ;;  %3510 = vmatpush.bf16.msra.mxu0 %v6396_v46  ;;  %v6361_v32 = vld [vmem:[#allocation5 + $0x2b8] sm:$0xf0]  ;;  %v6833_v46 = vld [vmem:[#allocation5 + $0x22c] sm:$0xf] }
 0x3f6   : > { %v6308_v33 = vor.u32 %v6836_v6, %v6305_v30  ;;  %v6364_v16 = vor.u32 %v6849_v7, %v6361_v32  ;;  %v6843_v6 = vld [vmem:[#allocation5 + $0x274] sm:$0xf0]  ;;  %v6830_v48 = vld [vmem:[#allocation5 + $0x20c] sm:$0xf0]  ;;  %v6829_v7 = vld [vmem:[#allocation5 + $0x20c] sm:$0xf] }
 0x3f7   : > { %3365 = vmatpush.bf16.msrb.mxu1 %v6352_v3  ;;  %v6273_v3 = vld [vmem:[#allocation5 + $0x210] sm:$0xf0]  ;;  %v6281_v32 = vld [vmem:[#allocation5 + $0x218] sm:$0xf0] }
 0x3f8   : > { %3417 = vmatpush.bf16.msra.mxu2 %v6308_v33  ;;  %v6329_v33 = vld [vmem:[#allocation5 + $0x278] sm:$0xf0] }
 0x3f9   : > { %3511 = vmatpush.bf16.msra.mxu0 %v6380_v2  ;;  %v6831_v2 = vld [vmem:[#allocation5 + $0x214] sm:$0xf0] }
 0x3fa   : > { %v6280_v55 = vor.u32 %v6831_v2, %v6279_v50 }
 0x3fd   : > { %3512 = vmatpush.bf16.msra.mxu0 %v6364_v16 }
 0x402   : > { %3045 = vmatmul.bf16.gmra.mxu3 %v8625_v45  ;;  %3094 = vmatmul.bf16.gmra.mxu0 %v8625_v45  ;;  %v6335_v45 = vld [vmem:[#allocation5 + $0x280] sm:$0xf] }
 0x403   : > { %v6336_v47 = vor.u32 %v6846_v27, %v6335_v45  ;;  %v6348_v45 = vor.u32 %v6845_v49, %v6345_v54  ;;  %v6327_v27 = vld [vmem:[#allocation5 + $0x268] sm:$0xf] }
 0x404   : > { %v6328_v30 = vor.u32 %v6843_v6, %v6327_v27 }
 0x405   : > { %3366 = vmatpush.bf16.msrb.mxu1 %v6336_v47  ;;  %3513 = vmatpush.bf16.msra.mxu0 %v6348_v45  ;;  %v6841_v47 = vld [vmem:[#allocation5 + $0x26c] sm:$0xf] }
 0x412   : > { %3050 = vmatmul.bf16.gmra.mxu3 %v8670_v40  ;;  %3099 = vmatmul.bf16.gmra.mxu0 %v8670_v40  ;;  %v6319_v40 = vld [vmem:[#allocation5 + $0x260] sm:$0xf] }
 0x413   : > { %v6320_v56 = vor.u32 %v6842_v37, %v6319_v40  ;;  %v6311_v40 = vld [vmem:[#allocation5 + $0x248] sm:$0xf]  ;;  %v6839_v37 = vld [vmem:[#allocation5 + $0x254] sm:$0xf0] }
 0x414   : > { %v6312_v23 = vor.u32 %v6839_v37, %v6311_v40 }
 0x415   : > { %3367 = vmatpush.bf16.msrb.mxu1 %v6320_v56  ;;  %v6837_v56 = vld [vmem:[#allocation5 + $0x24c] sm:$0xf] }
 0x419   : > { %3368 = vmatpush.bf16.msrb.mxu1 %v6304_v41  ;;  %v7423_v41 = vld [vmem:[#allocation8] ss:$4 sm:$0x3] }
 0x41a   : > { %v8925_v34 = vperm.slane %v7423_v41, 0 }
 0x41c   : > { %10182 = vst [vmem:[#allocation25_spill] sm:$0xff] %v8925_v34  ;;  %v1867_v54 = vadd.f32 %v8387_v14, %v8925_v34  ;;  %v1872_v40 = vadd.f32 %v8395_v17, %v8925_v34  ;;  %v1882_v50 = vadd.f32 %v8429_v1, %v8925_v34  ;;  %v1887_v41 = vadd.f32 %v8445_v25, %v8925_v34 }
 0x422   : > { %3055 = vmatmul.bf16.gmra.mxu3 %v8723_v9  ;;  %3104 = vmatmul.bf16.gmra.mxu0 %v8723_v9  ;;  %v6292_v9 = vor.u32 %v6832_v22, %v6289_v35  ;;  %v6332_v22 = vor.u32 %v6841_v47, %v6329_v33  ;;  %v6313_v35 = vld [vmem:[#allocation5 + $0x258] sm:$0xf0] }
 0x423   : > { %v6316_v51 = vor.u32 %v6837_v56, %v6313_v35 }
 0x424   : > { %3418 = vmatpush.bf16.msra.mxu2 %v6292_v9  ;;  %3514 = vmatpush.bf16.msra.mxu0 %v6332_v22  ;;  %v6287_v9 = vld [vmem:[#allocation5 + $0x220] sm:$0xf] }
 0x428   : > { %3515 = vmatpush.bf16.msra.mxu0 %v6316_v51 }
 0x432   : > { %3060 = vmatmul.bf16.gmra.mxu3 %v8795_v18  ;;  %3109 = vmatmul.bf16.gmra.mxu0 %v8795_v18  ;;  %v6375_v18 = vld [vmem:[#allocation5 + $0x2c8] sm:$0xf] }
 0x433   : > { %v6376_v36 = vor.u32 %v6855_v0, %v6375_v18  ;;  %v6297_v18 = vld [vmem:[#allocation5 + $0x238] sm:$0xf0]  ;;  %v6296_v0 = vor.u32 %v6835_v59, %v6295_v8  ;;  %v1877_v8 = vadd.f32 %v8409_v4, %v8925_v34 }
 0x434   : > { %v6300_v24 = vor.u32 %v6833_v46, %v6297_v18 }
 0x435   : > { %3462 = vmatpush.bf16.msrb.mxu3 %v6376_v36  ;;  %v6271_v36 = vld [vmem:[#allocation5 + $0x200] sm:$0xf] }
 0x436   : > { %v6272_v57 = vor.u32 %v6830_v48, %v6271_v36  ;;  %3516 = vmatpush.bf16.msra.mxu0 %v6300_v24 }
 0x439   : > { %3463 = vmatpush.bf16.msrb.mxu3 %v6360_v43  ;;  %v6284_v43 = vor.u32 %v6829_v7, %v6281_v32 }
 0x43b   : > { %3517 = vmatpush.bf16.msra.mxu0 %v6284_v43 }
 0x43d   : > { %3464 = vmatpush.bf16.msrb.mxu3 %v6344_v38 }
 0x441   : > { %3465 = vmatpush.bf16.msrb.mxu3 %v6328_v30 }
 0x442   : > { %3065 = vmatmul.bf16.gmra.mxu3 %v8879_v62  ;;  %3114 = vmatmul.bf16.gmra.mxu0 %v8879_v62  ;;  %v6828_v62 = vld [vmem:[#allocation5 + $0x204] sm:$0xf] }
 0x443   : > { %v6276_v31 = vor.u32 %v6828_v62, %v6273_v3  ;;  %v8929_v62 = vperm.slane %v2946_v28, 0 }
 0x445   : > { %3419 = vmatpush.bf16.msra.mxu2 %v6276_v31  ;;  %3466 = vmatpush.bf16.msrb.mxu3 %v6312_v23  ;;  %10183 = vst [vmem:[#allocation35_spill] sm:$0xff] %v8929_v62 }
 0x449   : > { %3467 = vmatpush.bf16.msrb.mxu3 %v6296_v0 }
 0x44d   : > { %3468 = vmatpush.bf16.msrb.mxu3 %v6280_v55 }
 0x452   : > { %3070 = vmatmul.bf16.gmra.mxu3 %v8900_v11  ;;  %3119 = vmatmul.bf16.gmra.mxu0 %v8900_v11  ;;  %v6288_v11 = vor.u32 %v6834_v21, %v6287_v9 }
 0x454   : > { %3369 = vmatpush.bf16.msrb.mxu1 %v6288_v11 }
 0x458   : > { %3370 = vmatpush.bf16.msrb.mxu1 %v6272_v57 }
 0x462   : > { %3075 = vmatmul.bf16.gmra.mxu3 %v8909_v20  ;;  %3124 = vmatmul.bf16.gmra.mxu0 %v8909_v20 }
 0x46f   : > { %v3090_v16 = vpop.f32.mrf.mxu0 }
 0x470   : > { %v3091_v3 = vadd.f32 %v3090_v16, %v8927_v61 }
 0x472   : > { %v8939_v27 = vadd.f32 %v3091_v3, %v8398_v12 }
 0x475   : > { %v3041_v49 = vpop.f32.mrf.mxu3 }
 0x476   : > { %v3042_v20 = vadd.f32 %v3041_v49, %v8929_v62 }
 0x477   : > { %v3092_v31 = vpop.f32.mrf.mxu0 }
 0x478   : > { %v8935_v38 = vadd.f32 %v3042_v20, %v1867_v54  ;;  %v3093_v45 = vadd.f32 %v3092_v31, %v8927_v61 }
 0x47a   : > { %v8942_v6 = vadd.f32 %v3093_v45, %v8401_v42 }
 0x47c   : > { %v3195_v47 = vpack.c.bf16 %v8942_v6, %v8939_v27 }
 0x47d   : > { %v8946_v30 = vpop.f32.mrf.mxu3 }
 0x47e   : > { %10184 = vst [vmem:[#allocation36_spill] sm:$0xff] %v8946_v30  ;;  %3371 = vmatmul.bf16.vlgmr.msrb.gmra.mxu1 %v3195_v47  ;;  %3420 = vmatmul.bf16.vlgmr.msra.gmra.mxu2 %v3195_v47 }
 0x47f   : > { %3469 = vmatmul.bf16.vlgmr.msrb.gmra.mxu3 %v3195_v47  ;;  %3518 = vmatmul.bf16.vlgmr.msra.gmra.mxu0 %v3195_v47  ;;  %v3095_v14 = vpop.f32.mrf.mxu0 }
 0x480   : > { %v3096_v12 = vadd.f32 %v3095_v14, %v8927_v61 }
 0x482   : > { %v8956_v35 = vadd.f32 %v3096_v12, %v8412_v5 }
 0x485   : > { %v3046_v33 = vpop.f32.mrf.mxu3 }
 0x486   : > { %v3047_v37 = vadd.f32 %v3046_v33, %v8929_v62  ;;  %v1892_v33 = vadd.f32 %v8459_v19, %v8925_v34 }
 0x487   : > { %v3097_v42 = vpop.f32.mrf.mxu0 }
 0x488   : > { %v8952_v22 = vadd.f32 %v3047_v37, %v1872_v40  ;;  %v3098_v56 = vadd.f32 %v3097_v42, %v8927_v61 }
 0x48a   : > { %v8959_v23 = vadd.f32 %v3098_v56, %v8415_v39 }
 0x48c   : > { %v3196_v51 = vpack.c.bf16 %v8959_v23, %v8956_v35 }
 0x48d   : > { %v8963_v9 = vpop.f32.mrf.mxu3 }
 0x48e   : > { %10185 = vst [vmem:[#allocation37_spill] sm:$0xff] %v8963_v9  ;;  %3376 = vmatmul.bf16.gmra.mxu1 %v3196_v51  ;;  %3425 = vmatmul.bf16.gmra.mxu2 %v3196_v51 }
 0x48f   : > { %3474 = vmatmul.bf16.gmra.mxu3 %v3196_v51  ;;  %3523 = vmatmul.bf16.gmra.mxu0 %v3196_v51  ;;  %v3100_v17 = vpop.f32.mrf.mxu0 }
 0x490   : > { %v3101_v5 = vadd.f32 %v3100_v17, %v8927_v61 }
 0x492   : > { %v8973_v18 = vadd.f32 %v3101_v5, %v8424_v29 }
 0x495   : > { %v3051_v21 = vpop.f32.mrf.mxu3 }
 0x496   : > { %v3052_v11 = vadd.f32 %v3051_v21, %v8929_v62 }
 0x497   : > { %v3102_v39 = vpop.f32.mrf.mxu0 }
 0x498   : > { %v8969_v59 = vadd.f32 %v3052_v11, %v1877_v8  ;;  %v3103_v46 = vadd.f32 %v3102_v39, %v8927_v61  ;;  %v1897_v8 = vadd.f32 %v8473_v44, %v8925_v34 }
 0x49a   : > { %v8976_v0 = vadd.f32 %v3103_v46, %v8427_v26  ;;  %v10190_v46 = vld [vmem:[#allocation28_spill] sm:$0xff] }
 0x49c   : > { %v3197_v24 = vpack.c.bf16 %v8976_v0, %v8973_v18 }
 0x49d   : > { %v8980_v36 = vpop.f32.mrf.mxu3 }
 0x49e   : > { %10186 = vst [vmem:[#allocation38_spill] sm:$0xff] %v8980_v36  ;;  %3381 = vmatmul.bf16.gmra.mxu1 %v3197_v24  ;;  %3430 = vmatmul.bf16.gmra.mxu2 %v3197_v24 }
 0x49f   : > { %3479 = vmatmul.bf16.gmra.mxu3 %v3197_v24  ;;  %3528 = vmatmul.bf16.gmra.mxu0 %v3197_v24  ;;  %v3105_v4 = vpop.f32.mrf.mxu0 }
 0x4a0   : > { %v3106_v29 = vadd.f32 %v3105_v4, %v8927_v61  ;;  %v10192_v4 = vld [vmem:[#allocation29_spill] sm:$0xff] }
 0x4a2   : > { %v8990_v32 = vadd.f32 %v3106_v29, %v8438_v15 }
 0x4a5   : > { %v3056_v48 = vpop.f32.mrf.mxu3 }
 0x4a6   : > { %v3057_v57 = vadd.f32 %v3056_v48, %v8929_v62 }
 0x4a7   : > { %v3107_v26 = vpop.f32.mrf.mxu0 }
 0x4a8   : > { %v8986_v2 = vadd.f32 %v3057_v57, %v1882_v50  ;;  %v3108_v7 = vadd.f32 %v3107_v26, %v8927_v61  ;;  %v10195_v26 = vld [vmem:[#allocation31_spill] sm:$0xff] }
 0x4aa   : > { %v8993_v55 = vadd.f32 %v3108_v7, %v8441_v13  ;;  %v1902_v7 = vadd.f32 %v10195_v26, %v8925_v34 }
 0x4ac   : > { %v3198_v43 = vpack.c.bf16 %v8993_v55, %v8990_v32 }
 0x4ad   : > { %v8997_v28 = vpop.f32.mrf.mxu3 }
 0x4ae   : > { %10187 = vst [vmem:[#allocation39_spill] sm:$0xff] %v8997_v28  ;;  %3386 = vmatmul.bf16.gmra.mxu1 %v3198_v43  ;;  %3435 = vmatmul.bf16.gmra.mxu2 %v3198_v43 }
 0x4af   : > { %3484 = vmatmul.bf16.gmra.mxu3 %v3198_v43  ;;  %3533 = vmatmul.bf16.gmra.mxu0 %v3198_v43  ;;  %v3110_v1 = vpop.f32.mrf.mxu0 }
 0x4b0   : > { %v3111_v15 = vadd.f32 %v3110_v1, %v8927_v61 }
 0x4b2   : > { %v9007_v20 = vadd.f32 %v3111_v15, %v8452_v10 }
 0x4b5   : > { %v3061_v16 = vpop.f32.mrf.mxu3 }
 0x4b6   : > { %v3062_v49 = vadd.f32 %v3061_v16, %v8929_v62 }
 0x4b7   : > { %v3112_v13 = vpop.f32.mrf.mxu0 }
 0x4b8   : > { %v9003_v54 = vadd.f32 %v3062_v49, %v1887_v41  ;;  %v3113_v3 = vadd.f32 %v3112_v13, %v8927_v61  ;;  %v10197_v49 = vld [vmem:[#allocation21_spill] sm:$0xff] }
 0x4ba   : > { %v9010_v31 = vadd.f32 %v3113_v3, %v8455_v58  ;;  %v10199_v3 = vld [vmem:[#allocation22_spill] sm:$0xff] }
 0x4bc   : > { %v3199_v45 = vpack.c.bf16 %v9010_v31, %v9007_v20 }
 0x4bd   : > { %v9014_v47 = vpop.f32.mrf.mxu3 }
 0x4be   : > { %10188 = vst [vmem:[#allocation40_spill] sm:$0xff] %v9014_v47  ;;  %3391 = vmatmul.bf16.gmra.mxu1 %v3199_v45  ;;  %3440 = vmatmul.bf16.gmra.mxu2 %v3199_v45 }
 0x4bf   : > { %3489 = vmatmul.bf16.gmra.mxu3 %v3199_v45  ;;  %3538 = vmatmul.bf16.gmra.mxu0 %v3199_v45  ;;  %v3115_v25 = vpop.f32.mrf.mxu0 }
 0x4c0   : > { %v3116_v10 = vadd.f32 %v3115_v25, %v8927_v61 }
 0x4c2   : > { %v9024_v42 = vadd.f32 %v3116_v10, %v8464_v53 }
 0x4c5   : > { %v3066_v14 = vpop.f32.mrf.mxu3 }
 0x4c6   : > { %v3067_v40 = vadd.f32 %v3066_v14, %v8929_v62 }
 0x4c7   : > { %v3117_v58 = vpop.f32.mrf.mxu0 }
 0x4c8   : > { %v9020_v12 = vadd.f32 %v3067_v40, %v1892_v33  ;;  %v3118_v37 = vadd.f32 %v3117_v58, %v8927_v61 }
 0x4ca   : > { %v9027_v56 = vadd.f32 %v3118_v37, %v8467_v60 }
 0x4cc   : > { %v3200_v51 = vpack.c.bf16 %v9027_v56, %v9024_v42 }
 0x4cd   : > { %v9031_v17 = vpop.f32.mrf.mxu3 }
 0x4ce   : > { %10189 = vst [vmem:[#allocation41_spill] sm:$0xff] %v9031_v17  ;;  %3396 = vmatmul.bf16.gmra.mxu1 %v3200_v51  ;;  %3445 = vmatmul.bf16.gmra.mxu2 %v3200_v51 }
 0x4cf   : > { %3494 = vmatmul.bf16.gmra.mxu3 %v3200_v51  ;;  %3543 = vmatmul.bf16.gmra.mxu0 %v3200_v51  ;;  %v3120_v19 = vpop.f32.mrf.mxu0 }
 0x4d0   : > { %v3121_v53 = vadd.f32 %v3120_v19, %v8927_v61 }
 0x4d2   : > { %v9041_v24 = vadd.f32 %v3121_v53, %v10190_v46 }
 0x4d4   : > { %10191 = vst [vmem:[#allocation28_spill] sm:$0xff] %v9041_v24 }
 0x4d5   : > { %v3071_v21 = vpop.f32.mrf.mxu3 }
 0x4d6   : > { %v3072_v5 = vadd.f32 %v3071_v21, %v8929_v62 }
 0x4d7   : > { %v3122_v60 = vpop.f32.mrf.mxu0 }
 0x4d8   : > { %v9037_v11 = vadd.f32 %v3072_v5, %v1897_v8  ;;  %v3123_v39 = vadd.f32 %v3122_v60, %v8927_v61  ;;  %v6397_v8 = vld [vmem:[%s10060_s4 + $0x2] ss:$4 sm:$0x3] }
 0x4d9   : > { %v9080_v5 = vperm.slane %v6397_v8, 1 }
 0x4da   : > { %v9044_v48 = vadd.f32 %v3123_v39, %v10192_v4 }
 0x4dc   : > { %10193 = vst [vmem:[#allocation29_spill] sm:$0xff] %v9044_v48  ;;  %v3201_v50 = vpack.c.bf16 %v9044_v48, %v9041_v24 }
 0x4dd   : > { %v9048_v29 = vpop.f32.mrf.mxu3 }
 0x4de   : > { %10194 = vst [vmem:[#allocation42_spill] sm:$0xff] %v9048_v29  ;;  %3401 = vmatmul.bf16.gmra.mxu1 %v3201_v50  ;;  %3450 = vmatmul.bf16.gmra.mxu2 %v3201_v50 }
 0x4df   : > { %3499 = vmatmul.bf16.gmra.mxu3 %v3201_v50  ;;  %3548 = vmatmul.bf16.gmra.mxu0 %v3201_v50  ;;  %v3125_v44 = vpop.f32.mrf.mxu0 }
 0x4e0   : > { %v3126_v43 = vadd.f32 %v3125_v44, %v8927_v61 }
 0x4e2   : > { %v9058_v13 = vadd.f32 %v3126_v43, %v10197_v49  ;;  %v6474_v49 = vld [vmem:[#allocation7 + $0x178] sm:$0xf0] }
 0x4e4   : > { %10198 = vst [vmem:[#allocation21_spill] sm:$0xff] %v9058_v13 }
 0x4e5   : > { %v3076_v57 = vpop.f32.mrf.mxu3 }
 0x4e6   : > { %v3077_v1 = vadd.f32 %v3076_v57, %v8929_v62 }
 0x4e7   : > { %v3127_v16 = vpop.f32.mrf.mxu0 }
 0x4e8   : > { %v9054_v41 = vadd.f32 %v3077_v1, %v1902_v7  ;;  %v3128_v15 = vadd.f32 %v3127_v16, %v8927_v61 }
 0x4ea   : > { %10196 = vst [vmem:[#allocation31_spill] sm:$0xff] %v9054_v41  ;;  %v9061_v45 = vadd.f32 %v3128_v15, %v10199_v3  ;;  %v6874_v15 = vld [vmem:[#allocation7 + $0x174] sm:$0xf] }
 0x4ec   : > { %10200 = vst [vmem:[#allocation22_spill] sm:$0xff] %v9061_v45  ;;  %v3202_v25 = vpack.c.bf16 %v9061_v45, %v9058_v13 }
 0x4ed   : > { %v9065_v14 = vpop.f32.mrf.mxu3 }
 0x4ee   : > { %3406 = vmatmul.bf16.gmra.mxu1 %v3202_v25  ;;  %3455 = vmatmul.bf16.gmra.mxu2 %v3202_v25  ;;  %10201 = vst [vmem:[#allocation43_spill] sm:$0xff] %v9065_v14 }
 0x4ef   : > { %3504 = vmatmul.bf16.gmra.mxu3 %v3202_v25  ;;  %3553 = vmatmul.bf16.gmra.mxu0 %v3202_v25  ;;  %v6477_v25 = vor.u32 %v6874_v15, %v6474_v49  ;;  %v9105_v15 = vperm.slane %v6397_v8, 0 }
 0x4f1   : > { %4272 = vmatpush.bf16.msrb.mxu2 %v6477_v25 }
 0x4fb   : > { %v9067_v33 = vpop.f32.mrf.mxu1 }
 0x4fc   : > { %v9069_v10 = vpop.f32.mrf.mxu0  ;;  %v10100_v14 = vrot.slane %v9067_v33, 4 }
 0x501   : > { %v9071_v61 = vpop.f32.mrf.mxu2 }
 0x502   : > { %v9073_v40 = vpop.f32.mrf.mxu3  ;;  %v10099_v19 = vrot.slane %v9071_v61, 4 }
 0x503   : > { %v3374_v58 = vpop.f32.mrf.mxu1 }
 0x504   : > { %v3521_v37 = vpop.f32.mrf.mxu0 }
 0x509   : > { %v3423_v51 = vpop.f32.mrf.mxu2 }
 0x50a   : > { %v3562_v21 = vrot.slane %v3423_v51, 4  ;;  %v3472_v53 = vpop.f32.mrf.mxu3 }
 0x50b   : > { %v9082_v60 = vpop.f32.mrf.mxu1 }
 0x50c   : > { %v3621_v39 = vsel %vm3591_vm7, %v10099_v19, %v3562_v21  ;;  %v3524_v46 = vpop.f32.mrf.mxu0 }
 0x50d   : > { %v3707_v4 = vadd.f32 %v3621_v39, %v3521_v37  ;;  %v3561_v39 = vrot.slane %v3374_v58, 4 }
 0x50f   : > { %v3746_v50 = vadd.f32 %v9080_v5, %v3707_v4 }
 0x511   : > { %v6399_v44 = vmul.f32 -1.442695, %v3746_v50  ;;  %v3426_v57 = vpop.f32.mrf.mxu2 }
 0x512   : > { %v3564_v26 = vrot.slane %v3426_v57, 4  ;;  %v3475_v7 = vpop.f32.mrf.mxu3 }
 0x513   : > { %7231 = vpow2.f32 %v6399_v44  ;;  %v9089_v43 = vpop.f32.mrf.mxu1 }
 0x514   : > { %v3619_v1 = vsel %vm3591_vm7, %v3562_v21, %v3564_v26  ;;  %v3526_v16 = vpop.f32.mrf.mxu0 }
 0x515   : > { %v3709_v3 = vadd.f32 %v3619_v1, %v3524_v46  ;;  %v3620_v46 = vsel %vm3591_vm7, %v10100_v14, %v3561_v39 }
 0x516   : > { %v3706_v1 = vadd.f32 %v3620_v46, %v3472_v53  ;;  %v6872_v46 = vld [vmem:[#allocation7 + $0x164] sm:$0xf] }
 0x517   : > { %v3748_v51 = vadd.f32 %v9080_v5, %v3709_v3  ;;  %v3563_v3 = vrot.slane %v9082_v60, 4 }
 0x519   : > { %v7232_v37 = vpop.eup %7231  ;;  %v6400_v4 = vmul.f32 -1.442695, %v3748_v51  ;;  %v3428_v50 = vpop.f32.mrf.mxu2  ;;  %v3618_v8 = vsel %vm3591_vm7, %v3561_v39, %v3563_v3  ;;  %v3565_v39 = vrot.slane %v9089_v43, 4 }
 0x51a   : > { %v3840_v57 = vadd.f32 1.0, %v7232_v37  ;;  %v3566_v19 = vrot.slane %v3428_v50, 4  ;;  %v9094_v44 = vpop.f32.mrf.mxu3  ;;  %v3745_v50 = vadd.f32 %v9105_v15, %v3706_v1 }
 0x51b   : > { %7233 = vpow2.f32 %v6400_v4  ;;  %v9097_v21 = vpop.f32.mrf.mxu1 }
 0x51c   : > { %7235 = vrcp.f32 %v3840_v57  ;;  %v3529_v29 = vpop.f32.mrf.mxu0  ;;  %v3617_v58 = vsel %vm3591_vm7, %v3564_v26, %v3566_v19  ;;  %v3879_v9 = vand.u32 2147483647, %v3840_v57  ;;  %vm3875_vm13 = vweird.f32 %v3840_v57 }
 0x51d   : > { %v3711_v49 = vadd.f32 %v3617_v58, %v3526_v16  ;;  %v6466_v58 = vld [vmem:[#allocation7 + $0x168] sm:$0xf0] }
 0x51e   : > { %vm3880_vm2 = vcmp.eq.f32.partialorder %v3879_v9, 8.507059e+37 }
 0x51f   : > { %v3750_v25 = vadd.f32 %v9080_v5, %v3711_v49  ;;  %v3708_v49 = vadd.f32 %v3618_v8, %v3475_v7 }
 0x521   : > { %v7234_v51 = vpop.eup %7233  ;;  %v3431_v37 = vpop.f32.mrf.mxu2  ;;  %v6401_v47 = vmul.f32 -1.442695, %v3750_v25 }
 0x522   : > { %v7236_v4 = vpop.eup %7235  ;;  %v9110_v17 = vadd.f32 1.0, %v7234_v51  ;;  %v3568_v14 = vrot.slane %v3431_v37, 4  ;;  %v9112_v28 = vpop.f32.mrf.mxu3  ;;  %v3881_v51 = vand.u32 2147483648, %v3840_v57  ;;  %v6469_v37 = vor.u32 %v6872_v46, %v6466_v58 }
 0x523   : > { %v3871_v26 = vmul.f32 %v7236_v4, %v3840_v57  ;;  %v9114_v53 = vpop.f32.mrf.mxu1  ;;  %vm3876_vm12 = vweird.f32 %v7236_v4 }
 0x524   : > { %7237 = vrcp.f32 %v9110_v17  ;;  %v3615_v60 = vsel %vm3591_vm7, %v3566_v19, %v3568_v14  ;;  %v3531_v16 = vpop.f32.mrf.mxu0  ;;  %4273 = vmatpush.bf16.msrb.mxu2 %v6469_v37  ;;  %v3747_v19 = vadd.f32 %v9105_v15, %v3708_v49  ;;  %vm3877_vm14 = vmor %vm3875_vm13, %vm3876_vm12  ;;  %vm3890_vm0 = vweird.f32 %v9110_v17 }
 0x525   : > { %v3872_v1 = vsub.f32 1.0, %v3871_v26  ;;  %7239 = vpow2.f32 %v6401_v47  ;;  %v3713_v25 = vadd.f32 %v3615_v60, %v3529_v29  ;;  %v3882_v47 = vor.u32 1.1754944e-38, %v3881_v51 }
 0x526   : > { %7241 = vtanh.f32 %v3745_v50 }
 0x527   : > { %v3873_v36 = vmul.f32 %v7236_v4, %v3872_v1  ;;  %v3752_v34 = vadd.f32 %v9080_v5, %v3713_v25 }
 0x529   : > { %v3874_v30 = vadd.f32 %v7236_v4, %v3873_v36  ;;  %v6402_v62 = vmul.f32 -1.442695, %v3752_v34  ;;  %v3433_v26 = vpop.f32.mrf.mxu2  ;;  %v3616_v34 = vsel %vm3591_vm7, %v3563_v3, %v3565_v39  ;;  %v3894_v3 = vand.u32 2147483647, %v9110_v17 }
 0x52a   : > { %v7238_v7 = vpop.eup %7237  ;;  %v3570_v29 = vrot.slane %v3433_v26, 4  ;;  %v9124_v50 = vpop.f32.mrf.mxu3  ;;  %v3710_v9 = vadd.f32 %v3616_v34, %v9094_v44 }
 0x52b   : > { %v7240_v8 = vpop.eup %7239  ;;  %v3878_v60 = vsel %vm3877_vm14, %v7236_v4, %v3874_v30  ;;  %7243 = vpow2.f32 %v6402_v62  ;;  %v9126_v46 = vpop.f32.mrf.mxu1  ;;  %v3886_v43 = vmul.f32 %v7238_v7, %v9110_v17  ;;  %v3896_v4 = vand.u32 2147483648, %v9110_v17 }
 0x52c   : > { %v7242_v36 = vpop.eup %7241  ;;  %v3883_v57 = vsel %vm3880_vm2, %v3882_v47, %v3878_v60  ;;  %v9129_v58 = vadd.f32 1.0, %v7240_v8  ;;  %v3613_v1 = vsel %vm3591_vm7, %v3568_v14, %v3570_v29  ;;  %v3534_v49 = vpop.f32.mrf.mxu0  ;;  %7245 = vtanh.f32 %v3747_v19 }
 0x52d   : > { %v9135_v25 = vmul.f32 %v7242_v36, %v3883_v57  ;;  %v3715_v30 = vadd.f32 %v3613_v1, %v3531_v16  ;;  %v3887_v62 = vsub.f32 1.0, %v3886_v43  ;;  %vm3891_vm15 = vweird.f32 %v7238_v7 }
 0x52e   : > { %7247 = vrcp.f32 %v9129_v58  ;;  %v3567_v14 = vrot.slane %v9097_v21, 4  ;;  %vm9148_vm1 = vmor %vm3890_vm0, %vm3891_vm15  ;;  %v3897_v36 = vor.u32 1.1754944e-38, %v3896_v4  ;;  %v3749_v34 = vadd.f32 %v9105_v15, %v3710_v9  ;;  %v6870_v4 = vld [vmem:[#allocation7 + $0x154] sm:$0xf] }
 0x52f   : > { %v3754_v51 = vadd.f32 %v9080_v5, %v3715_v30  ;;  %v3888_v37 = vmul.f32 %v7238_v7, %v3887_v62  ;;  %vm3895_vm3 = vcmp.eq.f32.partialorder %v3894_v3, 8.507059e+37  ;;  %v3569_v30 = vrot.slane %v9114_v53, 4 }
 0x530   : > { %v3614_v9 = vsel %vm3591_vm7, %v3565_v39, %v3567_v14  ;;  %vm3905_vm5 = vweird.f32 %v9129_v58 }
 0x531   : > { %v7244_v26 = vpop.eup %7243  ;;  %v6403_v47 = vmul.f32 -1.442695, %v3754_v51  ;;  %v3436_v8 = vpop.f32.mrf.mxu2  ;;  %v3889_v19 = vadd.f32 %v7238_v7, %v3888_v37  ;;  %v6458_v37 = vld [vmem:[#allocation7 + $0x158] sm:$0xf0]  ;;  %v3712_v3 = vadd.f32 %v3614_v9, %v9112_v28 }
 0x532   : > { %v9144_v16 = vadd.f32 1.0, %v7244_v26  ;;  %v3572_v60 = vrot.slane %v3436_v8, 4  ;;  %v9146_v44 = vpop.f32.mrf.mxu3  ;;  %v7246_v57 = vpop.eup %7245  ;;  %v6461_v8 = vor.u32 %v6870_v4, %v6458_v37 }
 0x533   : > { %7249 = vpow2.f32 %v6403_v47  ;;  %v9153_v21 = vpop.f32.mrf.mxu1  ;;  %v3893_v1 = vsel %vm9148_vm1, %v7238_v7, %v3889_v19  ;;  %v3751_v28 = vadd.f32 %v9105_v15, %v3712_v3  ;;  %v6472_v3 = vld [vmem:[#allocation7 + $0x170] sm:$0xf] }
 0x534   : > { %v7248_v17 = vpop.eup %7247  ;;  %7251 = vrcp.f32 %v9144_v16  ;;  %v3611_v62 = vsel %vm3591_vm7, %v3570_v29, %v3572_v60  ;;  %v3536_v51 = vpop.f32.mrf.mxu0  ;;  %v3898_v26 = vsel %vm3895_vm3, %v3897_v36, %v3893_v1  ;;  %4274 = vmatpush.bf16.msrb.mxu2 %v6461_v8  ;;  %v3612_v29 = vsel %vm3591_vm7, %v3567_v14, %v3569_v30 }
 0x535   : > { %v3717_v47 = vadd.f32 %v3611_v62, %v3534_v49  ;;  %v3901_v7 = vmul.f32 %v7248_v17, %v9129_v58  ;;  %v4097_v19 = vmul.f32 %v7246_v57, %v3898_v26  ;;  %7253 = vtanh.f32 %v3749_v34 }
 0x536   : > { %v3911_v36 = vand.u32 2147483648, %v9129_v58  ;;  %vm3906_vm4 = vweird.f32 %v7248_v17  ;;  %v3909_v62 = vand.u32 2147483647, %v9129_v58  ;;  %v3714_v34 = vadd.f32 %v3612_v29, %v9124_v50 }
 0x537   : > { %v3756_v43 = vadd.f32 %v9080_v5, %v3717_v47  ;;  %v3902_v53 = vsub.f32 1.0, %v3901_v7  ;;  %vm3907_vm6 = vmor %vm3905_vm5, %vm3906_vm4  ;;  %vm3920_vm10 = vweird.f32 %v9144_v16 }
 0x538   : > { %vm3910_vm8 = vcmp.eq.f32.partialorder %v3909_v62, 8.507059e+37  ;;  %v10204_v62 = vrot.slane %v9126_v46, 4 }
 0x539   : > { %v7250_v1 = vpop.eup %7249  ;;  %v6404_v45 = vmul.f32 -1.442695, %v3756_v43  ;;  %v3438_v39 = vpop.f32.mrf.mxu2  ;;  %v3903_v49 = vmul.f32 %v7248_v17, %v3902_v53  ;;  %v6875_v43 = vld [vmem:[#allocation7 + $0x174] sm:$0xf0] }
 0x53a   : > { %v9170_v4 = vpop.eup %7251  ;;  %v9173_v57 = vadd.f32 1.0, %v7250_v1  ;;  %v3574_v37 = vrot.slane %v3438_v39, 4  ;;  %v9176_v26 = vpop.f32.mrf.mxu3  ;;  %v6473_v29 = vor.u32 %v6875_v43, %v6472_v3 }
 0x53b   : > { %7255 = vpow2.f32 %v6404_v45  ;;  %v9178_v14 = vpop.f32.mrf.mxu1  ;;  %v3904_v9 = vadd.f32 %v7248_v17, %v3903_v49  ;;  %v3916_v47 = vmul.f32 %v9170_v4, %v9144_v16  ;;  %v3912_v45 = vor.u32 1.1754944e-38, %v3911_v36  ;;  %v7254_v58 = vpop.eup %7253 }
 0x53c   : > { %7257 = vrcp.f32 %v9173_v57  ;;  %v3609_v7 = vsel %vm3591_vm7, %v3572_v60, %v3574_v37  ;;  %v3539_v50 = vpop.f32.mrf.mxu0  ;;  %4223 = vmatpush.bf16.msra.mxu1 %v6473_v29  ;;  %v3926_v60 = vand.u32 2147483648, %v9144_v16  ;;  %vm3921_vm9 = vweird.f32 %v9170_v4 }
 0x53d   : > { %v3719_v53 = vadd.f32 %v3609_v7, %v3536_v51  ;;  %v3908_v1 = vsel %vm3907_vm6, %v7248_v17, %v3904_v9  ;;  %v3917_v49 = vsub.f32 1.0, %v3916_v47  ;;  %7259 = vtanh.f32 %v3751_v28  ;;  %vm3922_vm11 = vmor %vm3920_vm10, %vm3921_vm9 }
 0x53e   : > { %v3913_v39 = vsel %vm3910_vm8, %v3912_v45, %v3908_v1  ;;  %v3924_v36 = vand.u32 2147483647, %v9144_v16  ;;  %v3753_v17 = vadd.f32 %v9105_v15, %v3714_v34  ;;  %v3610_v28 = vsel %vm3591_vm7, %v3569_v30, %v10204_v62  ;;  %v6450_v16 = vld [vmem:[#allocation7 + $0x148] sm:$0xf0] }
 0x53f   : > { %v3758_v13 = vadd.f32 %v9080_v5, %v3719_v53  ;;  %v4098_v8 = vmul.f32 %v7254_v58, %v3913_v39  ;;  %v3918_v41 = vmul.f32 %v9170_v4, %v3917_v49  ;;  %v3716_v34 = vadd.f32 %v3610_v28, %v9146_v44 }
 0x540   : > { %vm3925_vm12 = vcmp.eq.f32.partialorder %v3924_v36, 8.507059e+37  ;;  %v3573_v39 = vrot.slane %v9153_v21, 4  ;;  %vm3935_vm14 = vweird.f32 %v9173_v57 }
 0x541   : > { %v7256_v51 = vpop.eup %7255  ;;  %v6405_v9 = vmul.f32 -1.442695, %v3758_v13  ;;  %v3441_v47 = vpop.f32.mrf.mxu2  ;;  %v9198_v7 = vpack.c.bf16 %v4098_v8, %v4097_v19  ;;  %v3919_v29 = vadd.f32 %v9170_v4, %v3918_v41  ;;  %v3927_v13 = vor.u32 1.1754944e-38, %v3926_v60  ;;  %v6868_v8 = vld [vmem:[#allocation7 + $0x144] sm:$0xf] }
 0x542   : > { %v9200_v3 = vpop.eup %7257  ;;  %v9202_v43 = vadd.f32 1.0, %v7256_v51  ;;  %v3576_v45 = vrot.slane %v3441_v47, 4  ;;  %v9204_v53 = vpop.f32.mrf.mxu3  ;;  %v6453_v51 = vor.u32 %v6868_v8, %v6450_v16  ;;  %v3755_v21 = vadd.f32 %v9105_v15, %v3716_v34 }
 0x543   : > { %7261 = vpow2.f32 %v6405_v9  ;;  %v9209_v1 = vpop.f32.mrf.mxu1  ;;  %v3931_v30 = vmul.f32 %v9200_v3, %v9173_v57  ;;  %v3923_v44 = vsel %vm3922_vm11, %v9170_v4, %v3919_v29  ;;  %v7260_v58 = vpop.eup %7259  ;;  %vm3936_vm13 = vweird.f32 %v9200_v3 }
 0x544   : > { %7263 = vrcp.f32 %v9202_v43  ;;  %v3607_v19 = vsel %vm3591_vm7, %v3574_v37, %v3576_v45  ;;  %v3541_v41 = vpop.f32.mrf.mxu0  ;;  %v3928_v60 = vsel %vm3925_vm12, %v3927_v13, %v3923_v44  ;;  %4275 = vmatpush.bf16.msrb.mxu2 %v6453_v51  ;;  %v3941_v37 = vand.u32 2147483648, %v9173_v57  ;;  %vm3937_vm2 = vmor %vm3935_vm14, %vm3936_vm13 }
 0x545   : > { %v3721_v49 = vadd.f32 %v3607_v19, %v3539_v50  ;;  %v3932_v62 = vsub.f32 1.0, %v3931_v30  ;;  %v4099_v28 = vmul.f32 %v7260_v58, %v3928_v60  ;;  %7265 = vtanh.f32 %v3753_v17  ;;  %v6464_v60 = vld [vmem:[#allocation7 + $0x160] sm:$0xf] }
 0x546   : > { %v3939_v4 = vand.u32 2147483647, %v9173_v57  ;;  %v10205_v50 = vrot.slane %v9126_v46, 4  ;;  %v3942_v58 = vor.u32 1.1754944e-38, %v3941_v37  ;;  %vm3950_vm1 = vweird.f32 %v9202_v43 }
 0x547   : > { %v3760_v9 = vadd.f32 %v9080_v5, %v3721_v49  ;;  %v3933_v47 = vmul.f32 %v9200_v3, %v3932_v62 }
 0x548   : > { %v3608_v29 = vsel %vm3591_vm7, %v10205_v50, %v3573_v39  ;;  %vm3940_vm15 = vcmp.eq.f32.partialorder %v3939_v4, 8.507059e+37 }
 0x549   : > { %v7262_v36 = vpop.eup %7261  ;;  %v6406_v17 = vmul.f32 -1.442695, %v3760_v9  ;;  %v3443_v13 = vpop.f32.mrf.mxu2  ;;  %v3934_v16 = vadd.f32 %v9200_v3, %v3933_v47  ;;  %v3718_v44 = vadd.f32 %v3608_v29, %v9176_v26  ;;  %v6873_v26 = vld [vmem:[#allocation7 + $0x164] sm:$0xf0]  ;;  %v3575_v47 = vrot.slane %v9178_v14, 4 }
 0x54a   : > { %v9230_v30 = vpop.eup %7263  ;;  %v9232_v19 = vadd.f32 1.0, %v7262_v36  ;;  %v3578_v8 = vrot.slane %v3443_v13, 4  ;;  %v9237_v34 = vpop.f32.mrf.mxu3  ;;  %v6465_v50 = vor.u32 %v6873_v26, %v6464_v60 }
 0x54b   : > { %7267 = vpow2.f32 %v6406_v17  ;;  %v9239_v46 = vpop.f32.mrf.mxu1  ;;  %v3946_v49 = vmul.f32 %v9230_v30, %v9202_v43  ;;  %v3938_v62 = vsel %vm3937_vm2, %v9200_v3, %v3934_v16  ;;  %v7266_v9 = vpop.eup %7265  ;;  %vm3951_vm0 = vweird.f32 %v9230_v30 }
 0x54c   : > { %7269 = vrcp.f32 %v9232_v19  ;;  %v3605_v51 = vsel %vm3591_vm7, %v3576_v45, %v3578_v8  ;;  %v3544_v57 = vpop.f32.mrf.mxu0  ;;  %v3943_v37 = vsel %vm3940_vm15, %v3942_v58, %v3938_v62  ;;  %4224 = vmatpush.bf16.msra.mxu1 %v6465_v50  ;;  %v3956_v45 = vand.u32 2147483648, %v9202_v43  ;;  %vm9269_vm3 = vmor %vm3950_vm1, %vm3951_vm0 }
 0x54d   : > { %v3723_v36 = vadd.f32 %v3605_v51, %v3541_v41  ;;  %v4100_v29 = vmul.f32 %v7266_v9, %v3943_v37  ;;  %v3947_v17 = vsub.f32 1.0, %v3946_v49  ;;  %7271 = vtanh.f32 %v3755_v21  ;;  %v6866_v9 = vld [vmem:[#allocation7 + $0x134] sm:$0xf] }
 0x54e   : > { %v3954_v3 = vand.u32 2147483647, %v9202_v43  ;;  %v3757_v41 = vadd.f32 %v9105_v15, %v3718_v44  ;;  %v3606_v4 = vsel %vm3591_vm7, %v3573_v39, %v3575_v47  ;;  %v3957_v39 = vor.u32 1.1754944e-38, %v3956_v45 }
 0x54f   : > { %v3762_v13 = vadd.f32 %v9080_v5, %v3723_v36  ;;  %v9252_v48 = vpack.c.bf16 %v4100_v29, %v4099_v28  ;;  %v3948_v24 = vmul.f32 %v9230_v30, %v3947_v17  ;;  %v3720_v60 = vadd.f32 %v3606_v4, %v9204_v53  ;;  %v6442_v53 = vld [vmem:[#allocation7 + $0x138] sm:$0xf0] }
 0x550   : > { %vm3955_vm4 = vcmp.eq.f32.partialorder %v3954_v3, 8.507059e+37  ;;  %v3577_v37 = vrot.slane %v9209_v1, 4  ;;  %vm3965_vm6 = vweird.f32 %v9232_v19 }
 0x551   : > { %v7268_v14 = vpop.eup %7267  ;;  %v6407_v21 = vmul.f32 -1.442695, %v3762_v13  ;;  %v3446_v16 = vpop.f32.mrf.mxu2  ;;  %v3949_v28 = vadd.f32 %v9230_v30, %v3948_v24  ;;  %v6445_v13 = vor.u32 %v6866_v9, %v6442_v53 }
 0x552   : > { %v7270_v58 = vpop.eup %7269  ;;  %v9260_v49 = vadd.f32 1.0, %v7268_v14  ;;  %v3580_v51 = vrot.slane %v3446_v16, 4  ;;  %v3495_v17 = vpop.f32.mrf.mxu3  ;;  %v3604_v1 = vsel %vm3591_vm7, %v3575_v47, %v3577_v37 }
 0x553   : > { %7273 = vpow2.f32 %v6407_v21  ;;  %v9265_v26 = vpop.f32.mrf.mxu1  ;;  %v3961_v62 = vmul.f32 %v7270_v58, %v9232_v19  ;;  %v3953_v36 = vsel %vm9269_vm3, %v9230_v30, %v3949_v28  ;;  %v7272_v50 = vpop.eup %7271  ;;  %4276 = vmatpush.bf16.msrb.mxu2 %v6445_v13  ;;  %v3971_v21 = vand.u32 2147483648, %v9232_v19 }
 0x554   : > { %7275 = vrcp.f32 %v9260_v49  ;;  %v3603_v24 = vsel %vm3591_vm7, %v3578_v8, %v3580_v51  ;;  %v3546_v43 = vpop.f32.mrf.mxu0  ;;  %v3958_v45 = vsel %vm3955_vm4, %v3957_v39, %v3953_v36  ;;  %vm3966_vm5 = vweird.f32 %v7270_v58 }
 0x555   : > { %v3725_v29 = vadd.f32 %v3603_v24, %v3544_v57  ;;  %v3962_v14 = vsub.f32 1.0, %v3961_v62  ;;  %v4101_v4 = vmul.f32 %v7272_v50, %v3958_v45  ;;  %7277 = vtanh.f32 %v3757_v41  ;;  %vm3967_vm8 = vmor %vm3965_vm6, %vm3966_vm5  ;;  %v6456_v50 = vld [vmem:[#allocation7 + $0x150] sm:$0xf] }
 0x556   : > { %v3969_v30 = vand.u32 2147483647, %v9232_v19  ;;  %v3759_v28 = vadd.f32 %v9105_v15, %v3720_v60  ;;  %v3722_v9 = vadd.f32 %v3604_v1, %v9237_v34  ;;  %v3972_v60 = vor.u32 1.1754944e-38, %v3971_v21 }
 0x557   : > { %v3764_v8 = vadd.f32 %v9080_v5, %v3725_v29  ;;  %v3963_v16 = vmul.f32 %v7270_v58, %v3962_v14  ;;  %v6871_v29 = vld [vmem:[#allocation7 + $0x154] sm:$0xf0]  ;;  %v10109_v34 = vrot.slane %v9239_v46, 4  ;;  %vm3980_vm11 = vweird.f32 %v9260_v49 }
 0x558   : > { %vm3970_vm9 = vcmp.eq.f32.partialorder %v3969_v30, 8.507059e+37  ;;  %v6457_v14 = vor.u32 %v6871_v29, %v6456_v50  ;;  %v3984_v30 = vand.u32 2147483647, %v9260_v49  ;;  %vm3624_vm6 = vcmp.ge.s32.totalorder %v8026_v52, 4 }
 0x559   : > { %v7274_v3 = vpop.eup %7273  ;;  %v6408_v57 = vmul.f32 -1.442695, %v3764_v8  ;;  %v3448_v44 = vpop.f32.mrf.mxu2  ;;  %v3964_v24 = vadd.f32 %v7270_v58, %v3963_v16 }
 0x55a   : > { %v7276_v39 = vpop.eup %7275  ;;  %v9287_v62 = vadd.f32 1.0, %v7274_v3  ;;  %v3582_v41 = vrot.slane %v3448_v44, 4  ;;  %4225 = vmatpush.bf16.msra.mxu1 %v6457_v14  ;;  %v6864_v14 = vld [vmem:[#allocation7 + $0x124] sm:$0xf]  ;;  %vm3985_vm13 = vcmp.eq.f32.partialorder %v3984_v30, 8.507059e+37 }
 0x55b   : > { %7279 = vpow2.f32 %v6408_v57  ;;  %v9291_v53 = vpop.f32.mrf.mxu1  ;;  %v3976_v36 = vmul.f32 %v7276_v39, %v9260_v49  ;;  %v3968_v13 = vsel %vm3967_vm8, %v7270_v58, %v3964_v24  ;;  %v7278_v19 = vpop.eup %7277  ;;  %vm3981_vm10 = vweird.f32 %v7276_v39 }
 0x55c   : > { %7281 = vrcp.f32 %v9287_v62  ;;  %v3601_v47 = vsel %vm3591_vm7, %v3580_v51, %v3582_v41  ;;  %v3973_v8 = vsel %vm3970_vm9, %v3972_v60, %v3968_v13  ;;  %v3549_v16 = vpop.f32.mrf.mxu0  ;;  %v9300_v57 = vpop.f32.mrf.mxu3  ;;  %v3986_v51 = vand.u32 2147483648, %v9260_v49  ;;  %vm3982_vm12 = vmor %vm3980_vm11, %vm3981_vm10 }
 0x55d   : > { %v3727_v45 = vadd.f32 %v3601_v47, %v3546_v43  ;;  %v4102_v3 = vmul.f32 %v7278_v19, %v3973_v8  ;;  %v3977_v21 = vsub.f32 1.0, %v3976_v36  ;;  %7283 = vtanh.f32 %v3759_v28  ;;  %v6434_v8 = vld [vmem:[#allocation7 + $0x128] sm:$0xf0] }
 0x55e   : > { %v3761_v24 = vadd.f32 %v9105_v15, %v3722_v9  ;;  %v3602_v28 = vsel %vm3591_vm7, %v3577_v37, %v10109_v34  ;;  %v3987_v9 = vor.u32 1.1754944e-38, %v3986_v51  ;;  %v3581_v51 = vrot.slane %v9265_v26, 4 }
 0x55f   : > { %v3766_v1 = vadd.f32 %v9080_v5, %v3727_v45  ;;  %v9303_v44 = vpack.c.bf16 %v4102_v3, %v4101_v4  ;;  %v3978_v58 = vmul.f32 %v7276_v39, %v3977_v21  ;;  %v3724_v13 = vadd.f32 %v3602_v28, %v3495_v17 }
 0x560   : > { %v6437_v17 = vor.u32 %v6864_v14, %v6434_v8  ;;  %v3583_v30 = vrot.slane %v9291_v53, 4  ;;  %vm3995_vm2 = vweird.f32 %v9287_v62 }
 0x561   : > { %v7280_v43 = vpop.eup %7279  ;;  %v6409_v60 = vmul.f32 -1.442695, %v3766_v1  ;;  %v3451_v36 = vpop.f32.mrf.mxu2  ;;  %v3979_v4 = vadd.f32 %v7276_v39, %v3978_v58 }
 0x562   : > { %v7282_v47 = vpop.eup %7281  ;;  %v9311_v50 = vadd.f32 1.0, %v7280_v43  ;;  %v3584_v29 = vrot.slane %v3451_v36, 4  ;;  %4277 = vmatpush.bf16.msrb.mxu2 %v6437_v17 }
 0x563   : > { %7285 = vpow2.f32 %v6409_v60  ;;  %v9314_v19 = vpop.f32.mrf.mxu1  ;;  %v3991_v45 = vmul.f32 %v7282_v47, %v9287_v62  ;;  %v3983_v3 = vsel %vm3982_vm12, %v7276_v39, %v3979_v4  ;;  %v7284_v21 = vpop.eup %7283  ;;  %v4001_v60 = vand.u32 2147483648, %v9287_v62 }
 0x564   : > { %7287 = vrcp.f32 %v9311_v50  ;;  %v3599_v37 = vsel %vm3591_vm7, %v3582_v41, %v3584_v29  ;;  %v3988_v1 = vsel %vm3985_vm13, %v3987_v9, %v3983_v3  ;;  %v3763_v41 = vadd.f32 %v9105_v15, %v3724_v13  ;;  %v3551_v36 = vpop.f32.mrf.mxu0  ;;  %v3500_v9 = vpop.f32.mrf.mxu3 }
 0x565   : > { %v3729_v49 = vadd.f32 %v3599_v37, %v3549_v16  ;;  %v3992_v58 = vsub.f32 1.0, %v3991_v45  ;;  %v4103_v43 = vmul.f32 %v7284_v21, %v3988_v1  ;;  %7289 = vtanh.f32 %v3761_v24 }
 0x566   : > { %vm3996_vm14 = vweird.f32 %v7282_v47  ;;  %v3999_v39 = vand.u32 2147483647, %v9287_v62  ;;  %v10208_v13 = vrot.slane %v9239_v46, 4  ;;  %v4002_v53 = vor.u32 1.1754944e-38, %v4001_v60 }
 0x567   : > { %v3768_v28 = vadd.f32 %v9080_v5, %v3729_v49  ;;  %v3993_v34 = vmul.f32 %v7282_v47, %v3992_v58  ;;  %vm3997_vm15 = vmor %vm3995_vm2, %vm3996_vm14  ;;  %vm4010_vm3 = vweird.f32 %v9311_v50 }
 0x568   : > { %v3600_v8 = vsel %vm3591_vm7, %v10208_v13, %v3581_v51  ;;  %vm4000_vm0 = vcmp.eq.f32.partialorder %v3999_v39, 8.507059e+37 }
 0x569   : > { %v7286_v16 = vpop.eup %7285  ;;  %v6410_v4 = vmul.f32 -1.442695, %v3768_v28  ;;  %v3453_v24 = vpop.f32.mrf.mxu2  ;;  %v3994_v14 = vadd.f32 %v7282_v47, %v3993_v34  ;;  %v3726_v46 = vadd.f32 %v3600_v8, %v9300_v57  ;;  %v3598_v28 = vsel %vm3591_vm7, %v3581_v51, %v3583_v30 }
 0x56a   : > { %v7288_v45 = vpop.eup %7287  ;;  %v9327_v26 = vadd.f32 1.0, %v7286_v16  ;;  %v3586_v37 = vrot.slane %v3453_v24, 4  ;;  %v4016_v16 = vand.u32 2147483648, %v9311_v50 }
 0x56b   : > { %7291 = vpow2.f32 %v6410_v4  ;;  %v9334_v3 = vpop.f32.mrf.mxu1  ;;  %v4006_v21 = vmul.f32 %v7288_v45, %v9311_v50  ;;  %v3998_v34 = vsel %vm3997_vm15, %v7282_v47, %v3994_v14  ;;  %v7290_v62 = vpop.eup %7289  ;;  %vm4011_vm1 = vweird.f32 %v7288_v45 }
 0x56c   : > { %7293 = vtanh.f32 %v3763_v41  ;;  %v3597_v49 = vsel %vm3591_vm7, %v3584_v29, %v3586_v37  ;;  %v4003_v1 = vsel %vm4000_vm0, %v4002_v53, %v3998_v34  ;;  %v4014_v47 = vand.u32 2147483647, %v9311_v50  ;;  %vm4012_vm4 = vmor %vm4010_vm3, %vm4011_vm1 }
 0x56d   : > { %v3731_v17 = vadd.f32 %v3597_v49, %v3551_v36  ;;  %v4007_v58 = vsub.f32 1.0, %v4006_v21  ;;  %7295 = vrcp.f32 %v9327_v26  ;;  %v4104_v60 = vmul.f32 %v7290_v62, %v4003_v1  ;;  %v3554_v21 = vpop.f32.mrf.mxu0 }
 0x56e   : > { %v3728_v29 = vadd.f32 %v3598_v28, %v3500_v9  ;;  %v3585_v36 = vrot.slane %v9314_v19, 4  ;;  %v3765_v8 = vadd.f32 %v9105_v15, %v3726_v46  ;;  %v3502_v9 = vpop.f32.mrf.mxu3  ;;  %v3587_v19 = vrot.slane %v9334_v3, 4 }
 0x56f   : > { %v3770_v41 = vadd.f32 %v9080_v5, %v3731_v17  ;;  %v4008_v4 = vmul.f32 %v7288_v45, %v4007_v58  ;;  %v9347_v39 = vpack.c.bf16 %v4104_v60, %v4103_v43  ;;  %v4017_v43 = vor.u32 1.1754944e-38, %v4016_v16  ;;  %v6448_v60 = vld [vmem:[#allocation7 + $0x140] sm:$0xf]  ;;  %v6869_v16 = vld [vmem:[#allocation7 + $0x144] sm:$0xf0] }
 0x570   : > { %vm4015_vm5 = vcmp.eq.f32.partialorder %v4014_v47, 8.507059e+37  ;;  %v3767_v58 = vadd.f32 %v9105_v15, %v3728_v29  ;;  %v3596_v28 = vsel %vm3591_vm7, %v3583_v30, %v3585_v36  ;;  %v6449_v47 = vor.u32 %v6869_v16, %v6448_v60  ;;  %v6867_v29 = vld [vmem:[#allocation7 + $0x134] sm:$0xf0] }
 0x571   : > { %v7292_v57 = vpop.eup %7291  ;;  %v6411_v24 = vmul.f32 -1.442695, %v3770_v41  ;;  %v9350_v14 = vpop.f32.mrf.mxu2  ;;  %v4009_v13 = vadd.f32 %v7288_v45, %v4008_v4  ;;  %v3730_v4 = vadd.f32 %v3596_v28, %v3502_v9  ;;  %v6432_v9 = vld [vmem:[#allocation7 + $0x120] sm:$0xf]  ;;  %vm4025_vm8 = vweird.f32 %v9327_v26 }
 0x572   : > { %v7294_v51 = vpop.eup %7293  ;;  %v9354_v53 = vadd.f32 1.0, %v7292_v57  ;;  %v3588_v49 = vrot.slane %v9350_v14, 4  ;;  %v6426_v57 = vld [vmem:[#allocation7 + $0x118] sm:$0xf0]  ;;  %4226 = vmatpush.bf16.msra.mxu1 %v6449_v47  ;;  %v3594_v47 = vsel %vm3591_vm7, %v3585_v36, %v3587_v19  ;;  %v6863_v36 = vld [vmem:[#allocation7 + $0x114] sm:$0xf0] }
 0x573   : > { %7297 = vpow2.f32 %v6411_v24  ;;  %v9359_v34 = vpop.f32.mrf.mxu1  ;;  %v4013_v62 = vsel %vm4012_vm4, %v7288_v45, %v4009_v13  ;;  %v9361_v50 = vpop.eup %7295  ;;  %v6862_v45 = vld [vmem:[#allocation7 + $0x114] sm:$0xf]  ;;  %v6440_v24 = vld [vmem:[#allocation7 + $0x130] sm:$0xf]  ;;  %v6860_v13 = vld [vmem:[#allocation7 + $0x104] sm:$0xf] }
 0x574   : > { %7299 = vrcp.f32 %v9354_v53  ;;  %v3595_v46 = vsel %vm3591_vm7, %v3586_v37, %v3588_v49  ;;  %v10110_v17 = vrot.slane %v9359_v34, 4  ;;  %v4018_v1 = vsel %vm4015_vm5, %v4017_v43, %v4013_v62  ;;  %v6865_v62 = vld [vmem:[#allocation7 + $0x124] sm:$0xf0] }
 0x575   : > { %v3733_v3 = vadd.f32 %v3595_v46, %v3554_v21  ;;  %v9370_v41 = vmul.f32 %v7294_v51, %v4018_v1  ;;  %v6429_v30 = vor.u32 %v6862_v45, %v6426_v57  ;;  %v6418_v21 = vld [vmem:[#allocation7 + $0x108] sm:$0xf0]  ;;  %v4021_v51 = vmul.f32 %v9361_v50, %v9327_v26 }
 0x576   : > { %v9376_v37 = vsel %vm3591_vm7, %v3587_v19, %v10110_v17  ;;  %7301 = vtanh.f32 %v3765_v8  ;;  %v6441_v43 = vor.u32 %v6867_v29, %v6440_v24  ;;  %v6421_v60 = vor.u32 %v6860_v13, %v6418_v21  ;;  %v3556_v29 = vpop.f32.mrf.mxu0  ;;  %v6424_v13 = vld [vmem:[#allocation7 + $0x110] sm:$0xf] }
 0x577   : > { %v3772_v14 = vadd.f32 %v9080_v5, %v3733_v3  ;;  %7303 = vtanh.f32 %v3767_v58  ;;  %4278 = vmatpush.bf16.msrb.mxu2 %v6429_v30  ;;  %v4029_v3 = vand.u32 2147483647, %v9327_v26  ;;  %v9388_v8 = vadd.f32 %v9105_v15, %v3730_v4 }
 0x578   : > { %v6433_v24 = vor.u32 %v6865_v62, %v6432_v9  ;;  %v4022_v58 = vsub.f32 1.0, %v4021_v51  ;;  %v10209_v30 = vrot.slane %v9071_v61, 4  ;;  %4227 = vmatpush.bf16.msra.mxu1 %v6441_v43  ;;  %v4031_v61 = vand.u32 2147483648, %v9327_v26  ;;  %v6416_v43 = vld [vmem:[#allocation7 + $0x100] sm:$0xf] }
 0x579   : > { %v7298_v46 = vpop.eup %7297  ;;  %v6412_v1 = vmul.f32 -1.442695, %v3772_v14  ;;  %v3458_v28 = vpop.f32.mrf.mxu2  ;;  %vm9404_vm9 = vcmp.eq.f32.partialorder %v4029_v3, 8.507059e+37  ;;  %vm4026_vm10 = vweird.f32 %v9361_v50  ;;  %v4046_v3 = vand.u32 2147483648, %v9354_v53 }
 0x57a   : > { %v9383_v16 = vpop.eup %7299  ;;  %v9385_v45 = vadd.f32 1.0, %v7298_v46  ;;  %v3590_v57 = vrot.slane %v3458_v28, 4  ;;  %v6861_v46 = vld [vmem:[#allocation7 + $0x104] sm:$0xf0]  ;;  %vm4027_vm12 = vmor %vm4025_vm8, %vm4026_vm10  ;;  %vm4040_vm13 = vweird.f32 %v9354_v53 }
 0x57b   : > { %7305 = vpow2.f32 %v6412_v1  ;;  %v4036_v19 = vmul.f32 %v9383_v16, %v9354_v53  ;;  %4279 = vmatpush.bf16.msrb.mxu2 %v6421_v60  ;;  %v4023_v1 = vmul.f32 %v9361_v50, %v4022_v58  ;;  %v6425_v60 = vor.u32 %v6863_v36, %v6424_v13 }
 0x57c   : > { %7307 = vrcp.f32 %v9385_v45  ;;  %v3593_v14 = vsel %vm3591_vm7, %v3588_v49, %v3590_v57  ;;  %v3623_v4 = vsel %vm3591_vm7, %v3590_v57, %v10209_v30  ;;  %v7302_v49 = vpop.eup %7301  ;;  %vm4041_vm11 = vweird.f32 %v9383_v16  ;;  %4228 = vmatpush.bf16.msra.mxu1 %v6433_v24 }
 0x57d   : > { %v3673_v21 = vsel %vm3624_vm6, %v3623_v4, 0.0  ;;  %v3735_v51 = vadd.f32 %v3593_v14, %v3556_v29  ;;  %v4037_v28 = vsub.f32 1.0, %v4036_v19  ;;  %v7304_v57 = vpop.eup %7303  ;;  %v4044_v58 = vand.u32 2147483647, %v9354_v53  ;;  %vm4042_vm14 = vmor %vm4040_vm13, %vm4041_vm11 }
 0x57e   : > { %v3705_v62 = vadd.f32 %v3673_v21, %v9069_v10  ;;  %v4024_v10 = vadd.f32 %v9361_v50, %v4023_v1  ;;  %v3505_v21 = vpop.f32.mrf.mxu3  ;;  %v6417_v17 = vor.u32 %v6861_v46, %v6416_v43  ;;  %v4032_v13 = vor.u32 1.1754944e-38, %v4031_v61 }
 0x57f   : > { %v3774_v29 = vadd.f32 %v9080_v5, %v3735_v51  ;;  %v4038_v30 = vmul.f32 %v9383_v16, %v4037_v28  ;;  %v4047_v26 = vor.u32 1.1754944e-38, %v4046_v3  ;;  %vm4045_vm2 = vcmp.eq.f32.partialorder %v4044_v58, 8.507059e+37 }
 0x580   : > { %v3744_v14 = vadd.f32 %v9080_v5, %v3705_v62  ;;  %v4028_v51 = vsel %vm4027_vm12, %v9361_v50, %v4024_v10  ;;  %4229 = vmatpush.bf16.msra.mxu1 %v6425_v60  ;;  %v3732_v50 = vadd.f32 %v3594_v47, %v3505_v21  ;;  %v4059_v60 = vand.u32 2147483647, %v9385_v45 }
 0x581   : > { %v7306_v4 = vpop.eup %7305  ;;  %v6413_v19 = vmul.f32 -1.442695, %v3774_v29  ;;  %v4039_v62 = vadd.f32 %v9383_v16, %v4038_v30  ;;  %v4033_v43 = vsel %vm9404_vm9, %v4032_v13, %v4028_v51  ;;  %v4061_v29 = vand.u32 2147483648, %v9385_v45 }
 0x582   : > { %v7308_v5 = vpop.eup %7307  ;;  %v9424_v24 = vadd.f32 1.0, %v7306_v4  ;;  %v6398_v36 = vmul.f32 -1.442695, %v3744_v14  ;;  %v4106_v53 = vmul.f32 %v7302_v49, %v4033_v43  ;;  %vm4055_vm0 = vweird.f32 %v9385_v45 }
 0x583   : > { %7309 = vpow2.f32 %v6413_v19  ;;  %v4051_v61 = vmul.f32 %v7308_v5, %v9385_v45  ;;  %v4043_v46 = vsel %vm4042_vm14, %v9383_v16, %v4039_v62  ;;  %vm4056_vm15 = vweird.f32 %v7308_v5 }
 0x584   : > { %7311 = vrcp.f32 %v9424_v24  ;;  %v4048_v1 = vsel %vm4045_vm2, %v4047_v26, %v4043_v46  ;;  %v9437_v9 = vpack.c.bf16 %v4106_v53, %v9370_v41  ;;  %4230 = vmatpush.bf16.msra.mxu1 %v6417_v17  ;;  %v3771_v16 = vadd.f32 %v9105_v15, %v3732_v50  ;;  %vm4057_vm1 = vmor %vm4055_vm0, %vm4056_vm15 }
 0x585   : > { %7313 = vpow2.f32 %v6398_v36  ;;  %v4052_v28 = vsub.f32 1.0, %v4051_v61  ;;  %v4107_v3 = vmul.f32 %v7304_v57, %v4048_v1  ;;  %v10213_v41 = vrot.slane %v9359_v34, 4 }
 0x586   : > { %7315 = vtanh.f32 %v9388_v8  ;;  %v10212_v8 = vrot.slane %v9067_v33, 4  ;;  %v4062_v58 = vor.u32 1.1754944e-38, %v4061_v29  ;;  %v3507_v17 = vpop.f32.mrf.mxu3  ;;  %vm4060_vm3 = vcmp.eq.f32.partialorder %v4059_v60, 8.507059e+37 }
 0x587   : > { %v4053_v14 = vmul.f32 %v7308_v5, %v4052_v28  ;;  %v3734_v51 = vadd.f32 %v9376_v37, %v3507_v17  ;;  %v4076_v62 = vand.u32 2147483648, %v9424_v24  ;;  %v4074_v26 = vand.u32 2147483647, %v9424_v24  ;;  %v6905_v37 = vld [vmem:[#allocation5 + $0x3ec] sm:$0xf] }
 0x588   : > { %v3622_v30 = vsel %vm3591_vm7, %v10213_v41, %v10212_v8  ;;  %vm4070_vm4 = vweird.f32 %v9424_v24  ;;  %v6602_v28 = vld [vmem:[#allocation5 + $0x3f8] sm:$0xf0] }
 0x589   : > { %v7310_v49 = vpop.eup %7309  ;;  %v4054_v47 = vadd.f32 %v7308_v5, %v4053_v14  ;;  %v3672_v63 = vsel %vm3624_vm6, %v3622_v30, 0.0  ;;  %v3773_v46 = vadd.f32 %v9105_v15, %v3734_v51  ;;  %v4077_v50 = vor.u32 1.1754944e-38, %v4076_v62 }
 0x58a   : > { %v7312_v10 = vpop.eup %7311  ;;  %v9449_v57 = vadd.f32 1.0, %v7310_v49  ;;  %v3704_v61 = vadd.f32 %v3672_v63, %v9073_v40  ;;  %vm4075_vm6 = vcmp.eq.f32.partialorder %v4074_v26, 8.507059e+37  ;;  %v6605_v49 = vor.u32 %v6905_v37, %v6602_v28  ;;  %v6907_v37 = vld [vmem:[#allocation5 + $0x3f4] sm:$0xf0] }
 0x58b   : > { %v7314_v4 = vpop.eup %7313  ;;  %v4058_v21 = vsel %vm4057_vm1, %v7308_v5, %v4054_v47  ;;  %v4066_v19 = vmul.f32 %v7312_v10, %v9424_v24  ;;  %vm4071_vm7 = vweird.f32 %v7312_v10 }
 0x58c   : > { %v7316_v13 = vpop.eup %7315  ;;  %v3839_v45 = vadd.f32 1.0, %v7314_v4  ;;  %7317 = vrcp.f32 %v9449_v57  ;;  %v4063_v33 = vsel %vm4060_vm3, %v4062_v58, %v4058_v21  ;;  %vm4072_vm5 = vmor %vm4070_vm4, %vm4071_vm7  ;;  %v3743_v60 = vadd.f32 %v9105_v15, %v3704_v61  ;;  %4701 = vmatpush.bf16.msra.mxu2 %v6605_v49  ;;  %v6578_v49 = vld [vmem:[#allocation5 + $0x3d0] sm:$0xf0] }
 0x58d   : > { %7319 = vtanh.f32 %v3771_v16  ;;  %v4108_v34 = vmul.f32 %v7316_v13, %v4063_v33  ;;  %v4067_v36 = vsub.f32 1.0, %v4066_v19  ;;  %v4091_v8 = vand.u32 2147483648, %v9449_v57 }
 0x58e   : > { %7321 = vrcp.f32 %v3839_v45  ;;  %v3866_v58 = vand.u32 2147483648, %v3839_v45  ;;  %vm4085_vm9 = vweird.f32 %v9449_v57  ;;  %v3864_v15 = vand.u32 2147483647, %v3839_v45 }
 0x58f   : > { %v9457_v5 = vpack.c.bf16 %v4108_v34, %v4107_v3  ;;  %v4068_v43 = vmul.f32 %v7312_v10, %v4067_v36  ;;  %7323 = vtanh.f32 %v3773_v46  ;;  %v4092_v21 = vor.u32 1.1754944e-38, %v4091_v8  ;;  %v6903_v8 = vld [vmem:[#allocation5 + $0x3d4] sm:$0xf0] }
 0x590   : > { %7325 = vtanh.f32 %v3743_v60  ;;  %vm3860_vm12 = vweird.f32 %v3839_v45  ;;  %v3867_v63 = vor.u32 1.1754944e-38, %v3866_v58  ;;  %vm3865_vm2 = vcmp.eq.f32.partialorder %v3864_v15, 8.507059e+37  ;;  %v6902_v58 = vld [vmem:[#allocation5 + $0x3cc] sm:$0xf0]  ;;  %v6562_v15 = vld [vmem:[#allocation5 + $0x3b0] sm:$0xf0] }
 0x591   : > { %v4069_v53 = vadd.f32 %v7312_v10, %v4068_v43 }
 0x592   : > { %v7318_v52 = vpop.eup %7317 }
 0x593   : > { %v7320_v1 = vpop.eup %7319  ;;  %v4073_v29 = vsel %vm4072_vm5, %v7312_v10, %v4069_v53  ;;  %v4081_v3 = vmul.f32 %v7318_v52, %v9449_v57  ;;  %vm4086_vm8 = vweird.f32 %v7318_v52  ;;  %v4089_v10 = vand.u32 2147483647, %v9449_v57  ;;  %v6904_v53 = vld [vmem:[#allocation5 + $0x3e4] sm:$0xf] }
 0x594   : > { %v7322_v14 = vpop.eup %7321  ;;  %v4078_v40 = vsel %vm4075_vm6, %v4077_v50, %v4073_v29  ;;  %vm4087_vm11 = vmor %vm4085_vm9, %vm4086_vm8  ;;  %v6586_v50 = vld [vmem:[#allocation5 + $0x3d8] sm:$0xf0] }
 0x595   : > { %v3856_v16 = vmul.f32 %v7322_v14, %v3839_v45  ;;  %v4082_v47 = vsub.f32 1.0, %v4081_v3  ;;  %v4109_v24 = vmul.f32 %v7320_v1, %v4078_v40  ;;  %vm3861_vm10 = vweird.f32 %v7322_v14  ;;  %v7324_v33 = vpop.eup %7323  ;;  %v6594_v45 = vld [vmem:[#allocation5 + $0x3f0] sm:$0xf0]  ;;  %v6600_v1 = vld [vmem:[#allocation5 + $0x3e8] sm:$0xf] }
 0x596   : > { %vm4090_vm13 = vcmp.eq.f32.partialorder %v4089_v10, 8.507059e+37  ;;  %vm3862_vm14 = vmor %vm3860_vm12, %vm3861_vm10  ;;  %v7326_v62 = vpop.eup %7325  ;;  %v6597_v46 = vor.u32 %v6904_v53, %v6594_v45  ;;  %v6601_v29 = vor.u32 %v6907_v37, %v6600_v1  ;;  %v6592_v3 = vld [vmem:[#allocation5 + $0x3e0] sm:$0xf]  ;;  %v6897_v40 = vld [vmem:[#allocation5 + $0x3ac] sm:$0xf] }
 0x597   : > { %v3857_v41 = vsub.f32 1.0, %v3856_v16  ;;  %v4083_v30 = vmul.f32 %v7318_v52, %v4082_v47  ;;  %v6570_v47 = vld [vmem:[#allocation5 + $0x3b8] sm:$0xf0]  ;;  %v6576_v10 = vld [vmem:[#allocation5 + $0x3c0] sm:$0xf] }
 0x598   : > { %4603 = vmatpush.bf16.msrb.mxu0 %v6597_v46  ;;  %4652 = vmatpush.bf16.msrb.mxu1 %v6601_v29  ;;  %v6538_v53 = vld [vmem:[#allocation5 + $0x378] sm:$0xf0]  ;;  %v6552_v45 = vld [vmem:[#allocation5 + $0x388] sm:$0xf]  ;;  %v6544_v1 = vld [vmem:[#allocation5 + $0x380] sm:$0xf] }
 0x599   : > { %v3858_v4 = vmul.f32 %v7322_v14, %v3857_v41  ;;  %v4084_v17 = vadd.f32 %v7318_v52, %v4083_v30  ;;  %v6573_v41 = vor.u32 %v6897_v40, %v6570_v47  ;;  %v6894_v37 = vld [vmem:[#allocation5 + $0x38c] sm:$0xf0]  ;;  %v6530_v29 = vld [vmem:[#allocation5 + $0x370] sm:$0xf0]  ;;  %v6528_v47 = vld [vmem:[#allocation5 + $0x360] sm:$0xf] }
 0x59b   : > { %v3859_v19 = vadd.f32 %v7322_v14, %v3858_v4  ;;  %v4088_v13 = vsel %vm4087_vm11, %v7318_v52, %v4084_v17  ;;  %v6901_v52 = vld [vmem:[#allocation5 + $0x3cc] sm:$0xf]  ;;  %v6577_v4 = vor.u32 %v6902_v58, %v6576_v10  ;;  %v6506_v58 = vld [vmem:[#allocation5 + $0x338] sm:$0xf0] }
 0x59c   : > { %v4093_v34 = vsel %vm4090_vm13, %v4092_v21, %v4088_v13  ;;  %v6589_v28 = vor.u32 %v6901_v52, %v6586_v50  ;;  %v6893_v17 = vld [vmem:[#allocation5 + $0x38c] sm:$0xf]  ;;  %v6568_v13 = vld [vmem:[#allocation5 + $0x3a8] sm:$0xf]  ;;  %v6895_v52 = vld [vmem:[#allocation5 + $0x394] sm:$0xf0] }
 0x59d   : > { %v3863_v36 = vsel %vm3862_vm14, %v7322_v14, %v3859_v19  ;;  %v4110_v51 = vmul.f32 %v7324_v33, %v4093_v34  ;;  %v6906_v14 = vld [vmem:[#allocation5 + $0x3ec] sm:$0xf0]  ;;  %v6554_v19 = vld [vmem:[#allocation5 + $0x398] sm:$0xf0]  ;;  %v6899_v33 = vld [vmem:[#allocation5 + $0x3b4] sm:$0xf0]  ;;  %v6553_v50 = vor.u32 %v6895_v52, %v6552_v45 }
 0x59e   : > { %v3868_v43 = vsel %vm3865_vm2, %v3867_v63, %v3863_v36  ;;  %v6593_v60 = vor.u32 %v6906_v14, %v6592_v3  ;;  %4702 = vmatpush.bf16.msra.mxu2 %v6589_v28  ;;  %v6557_v63 = vor.u32 %v6893_v17, %v6554_v19  ;;  %v6569_v34 = vor.u32 %v6899_v33, %v6568_v13  ;;  %v6560_v36 = vld [vmem:[#allocation5 + $0x3a0] sm:$0xf]  ;;  %v6885_v3 = vld [vmem:[#allocation5 + $0x34c] sm:$0xf]  ;;  %v6886_v19 = vld [vmem:[#allocation5 + $0x34c] sm:$0xf0] }
 0x59f   : > { %v4095_v57 = vmul.f32 %v7326_v62, %v3868_v43  ;;  %v9468_v26 = vpack.c.bf16 %v4110_v51, %v4109_v24  ;;  %v6584_v24 = vld [vmem:[#allocation5 + $0x3c8] sm:$0xf]  ;;  %v6898_v51 = vld [vmem:[#allocation5 + $0x3ac] sm:$0xf0]  ;;  %v6546_v43 = vld [vmem:[#allocation5 + $0x390] sm:$0xf0]  ;;  %v6545_v28 = vor.u32 %v6894_v37, %v6544_v1 }
 0x5a0   : > { %4554 = vmatpush.bf16.msra.mxu3 %v6593_v60  ;;  %v6585_v30 = vor.u32 %v6903_v8, %v6584_v24  ;;  %v6561_v62 = vor.u32 %v6898_v51, %v6560_v36  ;;  %v6522_v60 = vld [vmem:[#allocation5 + $0x358] sm:$0xf0]  ;;  %v6890_v24 = vld [vmem:[#allocation5 + $0x36c] sm:$0xf0]  ;;  %v6512_v17 = vld [vmem:[#allocation5 + $0x340] sm:$0xf] }
 0x5a1   : > { %v4128_v61 = vpack.c.bf16 %v9135_v25, %v4095_v57  ;;  %v6900_v25 = vld [vmem:[#allocation5 + $0x3c4] sm:$0xf]  ;;  %v6889_v57 = vld [vmem:[#allocation5 + $0x36c] sm:$0xf]  ;;  %v6525_v40 = vor.u32 %v6885_v3, %v6522_v60  ;;  %v6529_v8 = vor.u32 %v6890_v24, %v6528_v47  ;;  %v6498_v33 = vld [vmem:[#allocation5 + $0x330] sm:$0xf0] }
 0x5a2   : > { %v6581_v16 = vor.u32 %v6900_v25, %v6578_v49  ;;  %4703 = vmatpush.bf16.msra.mxu2 %v6573_v41  ;;  %4653 = vmatpush.bf16.msrb.mxu1 %v6585_v30  ;;  %v6541_v46 = vor.u32 %v6889_v57, %v6538_v53  ;;  %v6536_v25 = vld [vmem:[#allocation5 + $0x368] sm:$0xf]  ;;  %v6891_v49 = vld [vmem:[#allocation5 + $0x374] sm:$0xf0]  ;;  %v6514_v41 = vld [vmem:[#allocation5 + $0x350] sm:$0xf0] }
 0x5a3   : > { %4231 = vmatmul.bf16.vlgmr.msra.gmra.mxu1 %v4128_v61  ;;  %4280 = vmatmul.bf16.vlgmr.msrb.gmra.mxu2 %v4128_v61  ;;  %v6881_v30 = vld [vmem:[#allocation5 + $0x32c] sm:$0xf]  ;;  %v6880_v13 = vld [vmem:[#allocation5 + $0x324] sm:$0xf]  ;;  %v6490_v36 = vld [vmem:[#allocation5 + $0x318] sm:$0xf0] }
 0x5a4   : > { %4604 = vmatpush.bf16.msrb.mxu0 %v6581_v16  ;;  %4555 = vmatpush.bf16.msra.mxu3 %v6577_v4  ;;  %v6537_v16 = vor.u32 %v6891_v49, %v6536_v25  ;;  %v6509_v4 = vor.u32 %v6881_v30, %v6506_v58  ;;  %v6883_v57 = vld [vmem:[#allocation5 + $0x334] sm:$0xf0]  ;;  %v6878_v53 = vld [vmem:[#allocation5 + $0x30c] sm:$0xf0]  ;;  %v6876_v52 = vld [vmem:[#allocation5 + $0x304] sm:$0xf] }
 0x5a6   : > { %4704 = vmatpush.bf16.msra.mxu2 %v6557_v63  ;;  %4654 = vmatpush.bf16.msrb.mxu1 %v6569_v34  ;;  %v6501_v63 = vor.u32 %v6880_v13, %v6498_v33  ;;  %v6877_v34 = vld [vmem:[#allocation5 + $0x30c] sm:$0xf] }
 0x5a7   : > { %v6493_v51 = vor.u32 %v6877_v34, %v6490_v36 }
 0x5a8   : > { %4556 = vmatpush.bf16.msra.mxu3 %v6561_v62  ;;  %v6882_v62 = vld [vmem:[#allocation5 + $0x32c] sm:$0xf0] }
 0x5aa   : > { %4705 = vmatpush.bf16.msra.mxu2 %v6541_v46  ;;  %4655 = vmatpush.bf16.msrb.mxu1 %v6553_v50  ;;  %v6482_v46 = vld [vmem:[#allocation5 + $0x310] sm:$0xf0]  ;;  %v6488_v50 = vld [vmem:[#allocation5 + $0x308] sm:$0xf] }
 0x5ab   : > { %v6485_v37 = vor.u32 %v6876_v52, %v6482_v46 }
 0x5ac   : > { %4557 = vmatpush.bf16.msra.mxu3 %v6545_v28  ;;  %v6879_v28 = vld [vmem:[#allocation5 + $0x314] sm:$0xf0] }
 0x5ae   : > { %4706 = vmatpush.bf16.msra.mxu2 %v6525_v40  ;;  %4656 = vmatpush.bf16.msrb.mxu1 %v6537_v16 }
 0x5b0   : > { %4558 = vmatpush.bf16.msra.mxu3 %v6529_v8 }
 0x5b2   : > { %4707 = vmatpush.bf16.msra.mxu2 %v6509_v4 }
 0x5b3   : > { %4236 = vmatmul.bf16.gmra.mxu1 %v9198_v7  ;;  %4285 = vmatmul.bf16.gmra.mxu2 %v9198_v7  ;;  %v6896_v7 = vld [vmem:[#allocation5 + $0x3a4] sm:$0xf] }
 0x5b4   : > { %v6565_v21 = vor.u32 %v6896_v7, %v6562_v15  ;;  %v6520_v7 = vld [vmem:[#allocation5 + $0x348] sm:$0xf]  ;;  %v6887_v15 = vld [vmem:[#allocation5 + $0x354] sm:$0xf0] }
 0x5b6   : > { %4605 = vmatpush.bf16.msrb.mxu0 %v6565_v21  ;;  %v6521_v21 = vor.u32 %v6887_v15, %v6520_v7  ;;  %4708 = vmatpush.bf16.msra.mxu2 %v6493_v51 }
 0x5b8   : > { %4657 = vmatpush.bf16.msrb.mxu1 %v6521_v21 }
 0x5c3   : > { %4241 = vmatmul.bf16.gmra.mxu1 %v9252_v48  ;;  %4290 = vmatmul.bf16.gmra.mxu2 %v9252_v48  ;;  %v6892_v48 = vld [vmem:[#allocation5 + $0x384] sm:$0xf] }
 0x5c4   : > { %v6549_v61 = vor.u32 %v6892_v48, %v6546_v43  ;;  %v6504_v48 = vld [vmem:[#allocation5 + $0x328] sm:$0xf] }
 0x5c5   : > { %v6505_v45 = vor.u32 %v6883_v57, %v6504_v48 }
 0x5c6   : > { %4606 = vmatpush.bf16.msrb.mxu0 %v6549_v61  ;;  %v6480_v61 = vld [vmem:[#allocation5 + $0x300] sm:$0xf] }
 0x5c7   : > { %v6481_v1 = vor.u32 %v6878_v53, %v6480_v61  ;;  %4658 = vmatpush.bf16.msrb.mxu1 %v6505_v45  ;;  %v6649_v53 = vld [vmem:[#allocation7 + $0x1e0] sm:$0xf]  ;;  %v6914_v45 = vld [vmem:[#allocation7 + $0x1e4] sm:$0xf0] }
 0x5c8   : > { %v6650_v52 = vor.u32 %v6914_v45, %v6649_v53  ;;  %v10216_v45 = vld [vmem:[#allocation31_spill] sm:$0xff] }
 0x5d3   : > { %4246 = vmatmul.bf16.gmra.mxu1 %v9303_v44  ;;  %4295 = vmatmul.bf16.gmra.mxu2 %v9303_v44  ;;  %v6888_v44 = vld [vmem:[#allocation5 + $0x364] sm:$0xf] }
 0x5d4   : > { %v6533_v14 = vor.u32 %v6888_v44, %v6530_v29  ;;  %v6489_v44 = vor.u32 %v6879_v28, %v6488_v50  ;;  %v4137_v29 = vld [vmem:[#allocation8 + $0x2] ss:$4 sm:$0x3] }
 0x5d5   : > { %v9493_v40 = vperm.slane %v4137_v29, 1 }
 0x5d6   : > { %4607 = vmatpush.bf16.msrb.mxu0 %v6533_v14  ;;  %4659 = vmatpush.bf16.msrb.mxu1 %v6489_v44 }
 0x5e3   : > { %4251 = vmatmul.bf16.gmra.mxu1 %v9347_v39  ;;  %4300 = vmatmul.bf16.gmra.mxu2 %v9347_v39  ;;  %v6884_v39 = vld [vmem:[#allocation5 + $0x344] sm:$0xf] }
 0x5e4   : > { %v6517_v10 = vor.u32 %v6884_v39, %v6514_v41 }
 0x5e6   : > { %4608 = vmatpush.bf16.msrb.mxu0 %v6517_v10 }
 0x5ea   : > { %4609 = vmatpush.bf16.msrb.mxu0 %v6501_v63  ;;  %v6915_v63 = vld [vmem:[#allocation7 + $0x1f4] sm:$0xf0] }
 0x5ee   : > { %4610 = vmatpush.bf16.msrb.mxu0 %v6485_v37 }
 0x5f3   : > { %4256 = vmatmul.bf16.gmra.mxu1 %v9437_v9  ;;  %4305 = vmatmul.bf16.gmra.mxu2 %v9437_v9  ;;  %v6513_v9 = vor.u32 %v6886_v19, %v6512_v17 }
 0x5f5   : > { %4559 = vmatpush.bf16.msra.mxu3 %v6513_v9  ;;  %v6653_v9 = vld [vmem:[#allocation7 + $0x1f0] sm:$0xf] }
 0x5f6   : > { %v6654_v34 = vor.u32 %v6915_v63, %v6653_v9 }
 0x603   : > { %4261 = vmatmul.bf16.gmra.mxu1 %v9457_v5  ;;  %4310 = vmatmul.bf16.gmra.mxu2 %v9457_v5  ;;  %v6496_v5 = vld [vmem:[#allocation5 + $0x320] sm:$0xf] }
 0x604   : > { %v6497_v43 = vor.u32 %v6882_v62, %v6496_v5 }
 0x606   : > { %4560 = vmatpush.bf16.msra.mxu3 %v6497_v43 }
 0x60a   : > { %4561 = vmatpush.bf16.msra.mxu3 %v6481_v1 }
 0x60e   : > { %5315 = vmatpush.bf16.msrb.mxu3 %v6654_v34  ;;  %v6637_v34 = vld [vmem:[#allocation7 + $0x1b0] sm:$0xf] }
 0x612   : > { %5316 = vmatpush.bf16.msrb.mxu3 %v6650_v52 }
 0x613   : > { %4266 = vmatmul.bf16.gmra.mxu1 %v9468_v26  ;;  %4315 = vmatmul.bf16.gmra.mxu2 %v9468_v26  ;;  %v9485_v26 = vperm.slane %v4137_v29, 0 }
 0x620   : > { %v4232_v3 = vpop.f32.mrf.mxu1 }
 0x621   : > { %v4233_v14 = vadd.f32 %v4232_v3, %v9485_v26 }
 0x623   : > { %v9489_v60 = vadd.f32 %v4233_v14, %v8935_v38  ;;  %v6645_v14 = vld [vmem:[#allocation7 + $0x1d0] sm:$0xf] }
 0x626   : > { %v4281_v25 = vpop.f32.mrf.mxu2 }
 0x627   : > { %v4282_v16 = vadd.f32 %v4281_v25, %v9493_v40  ;;  %v6913_v25 = vld [vmem:[#allocation7 + $0x1d4] sm:$0xf0] }
 0x628   : > { %v9491_v49 = vpop.f32.mrf.mxu1 }
 0x629   : > { %v4337_v39 = vadd.f32 %v4282_v16, %v8939_v27  ;;  %v6646_v16 = vor.u32 %v6913_v25, %v6645_v14  ;;  %v10218_v14 = vld [vmem:[#allocation22_spill] sm:$0xff] }
 0x62b   : > { %5317 = vmatpush.bf16.msrb.mxu3 %v6646_v16 }
 0x62e   : > { %v4283_v47 = vpop.f32.mrf.mxu2 }
 0x62f   : > { %v4284_v24 = vadd.f32 %v4283_v47, %v9493_v40 }
 0x630   : > { %v4237_v8 = vpop.f32.mrf.mxu1 }
 0x631   : > { %v4338_v41 = vadd.f32 %v4284_v24, %v8942_v6  ;;  %v4238_v30 = vadd.f32 %v4237_v8, %v9485_v26 }
 0x633   : > { %v4386_v10 = vpack.c.bf16 %v4338_v41, %v4337_v39  ;;  %v9501_v38 = vadd.f32 %v4238_v30, %v8952_v22 }
 0x635   : > { %4562 = vmatmul.bf16.vlgmr.msra.gmra.mxu3 %v4386_v10  ;;  %4611 = vmatmul.bf16.vlgmr.msrb.gmra.mxu0 %v4386_v10 }
 0x636   : > { %4660 = vmatmul.bf16.vlgmr.msrb.gmra.mxu1 %v4386_v10  ;;  %4709 = vmatmul.bf16.vlgmr.msra.gmra.mxu2 %v4386_v10  ;;  %v4286_v58 = vpop.f32.mrf.mxu2 }
 0x637   : > { %v4287_v7 = vadd.f32 %v4286_v58, %v9493_v40 }
 0x638   : > { %v9503_v4 = vpop.f32.mrf.mxu1 }
 0x639   : > { %v4339_v6 = vadd.f32 %v4287_v7, %v8956_v35  ;;  %v6641_v7 = vld [vmem:[#allocation7 + $0x1c0] sm:$0xf] }
 0x63e   : > { %v4288_v15 = vpop.f32.mrf.mxu2 }
 0x63f   : > { %v4289_v27 = vadd.f32 %v4288_v15, %v9493_v40  ;;  %v6912_v15 = vld [vmem:[#allocation7 + $0x1c4] sm:$0xf0] }
 0x640   : > { %v4242_v17 = vpop.f32.mrf.mxu1 }
 0x641   : > { %v4340_v21 = vadd.f32 %v4289_v27, %v8959_v23  ;;  %v4243_v22 = vadd.f32 %v4242_v17, %v9485_v26  ;;  %v6642_v27 = vor.u32 %v6912_v15, %v6641_v7  ;;  %v6629_v15 = vld [vmem:[#allocation7 + $0x190] sm:$0xf] }
 0x643   : > { %v4387_v19 = vpack.c.bf16 %v4340_v21, %v4339_v6  ;;  %v9511_v13 = vadd.f32 %v4243_v22, %v8969_v59  ;;  %5318 = vmatpush.bf16.msrb.mxu3 %v6642_v27  ;;  %v6909_v27 = vld [vmem:[#allocation7 + $0x194] sm:$0xf0] }
 0x645   : > { %4567 = vmatmul.bf16.gmra.mxu3 %v4387_v19  ;;  %4616 = vmatmul.bf16.gmra.mxu0 %v4387_v19 }
 0x646   : > { %4665 = vmatmul.bf16.gmra.mxu1 %v4387_v19  ;;  %4714 = vmatmul.bf16.gmra.mxu2 %v4387_v19  ;;  %v4291_v33 = vpop.f32.mrf.mxu2 }
 0x647   : > { %v4292_v35 = vadd.f32 %v4291_v33, %v9493_v40 }
 0x648   : > { %v9513_v36 = vpop.f32.mrf.mxu1 }
 0x649   : > { %v4341_v59 = vadd.f32 %v4292_v35, %v8973_v18  ;;  %v6911_v35 = vld [vmem:[#allocation7 + $0x1b4] sm:$0xf0] }
 0x64e   : > { %v4293_v23 = vpop.f32.mrf.mxu2 }
 0x64f   : > { %v4294_v51 = vadd.f32 %v4293_v23, %v9493_v40  ;;  %v6638_v23 = vor.u32 %v6911_v35, %v6637_v34 }
 0x650   : > { %v4247_v5 = vpop.f32.mrf.mxu1 }
 0x651   : > { %v4342_v62 = vadd.f32 %v4294_v51, %v8976_v0  ;;  %v4248_v48 = vadd.f32 %v4247_v5, %v9485_v26  ;;  %5319 = vmatpush.bf16.msrb.mxu3 %v6638_v23  ;;  %v6625_v23 = vld [vmem:[#allocation7 + $0x180] sm:$0xf] }
 0x653   : > { %v4388_v43 = vpack.c.bf16 %v4342_v62, %v4341_v59  ;;  %v9521_v57 = vadd.f32 %v4248_v48, %v8986_v2  ;;  %v10214_v62 = vld [vmem:[#allocation28_spill] sm:$0xff]  ;;  %v10215_v48 = vld [vmem:[#allocation29_spill] sm:$0xff] }
 0x655   : > { %4572 = vmatmul.bf16.gmra.mxu3 %v4388_v43  ;;  %4621 = vmatmul.bf16.gmra.mxu0 %v4388_v43 }
 0x656   : > { %4670 = vmatmul.bf16.gmra.mxu1 %v4388_v43  ;;  %4719 = vmatmul.bf16.gmra.mxu2 %v4388_v43  ;;  %v4296_v61 = vpop.f32.mrf.mxu2 }
 0x657   : > { %v4297_v18 = vadd.f32 %v4296_v61, %v9493_v40 }
 0x658   : > { %v9523_v46 = vpop.f32.mrf.mxu1 }
 0x659   : > { %v4343_v2 = vadd.f32 %v4297_v18, %v8990_v32 }
 0x65e   : > { %v4298_v0 = vpop.f32.mrf.mxu2 }
 0x65f   : > { %v4299_v50 = vadd.f32 %v4298_v0, %v9493_v40  ;;  %v6633_v0 = vld [vmem:[#allocation7 + $0x1a0] sm:$0xf] }
 0x660   : > { %v4252_v1 = vpop.f32.mrf.mxu1 }
 0x661   : > { %v4344_v37 = vadd.f32 %v4299_v50, %v8993_v55  ;;  %v4253_v28 = vadd.f32 %v4252_v1, %v9485_v26  ;;  %v6910_v50 = vld [vmem:[#allocation7 + $0x1a4] sm:$0xf0] }
 0x662   : > { %v6634_v1 = vor.u32 %v6910_v50, %v6633_v0 }
 0x663   : > { %v4389_v44 = vpack.c.bf16 %v4344_v37, %v4343_v2  ;;  %v9531_v29 = vadd.f32 %v4253_v28, %v9003_v54 }
 0x664   : > { %5320 = vmatpush.bf16.msrb.mxu3 %v6634_v1 }
 0x665   : > { %4577 = vmatmul.bf16.gmra.mxu3 %v4389_v44  ;;  %4626 = vmatmul.bf16.gmra.mxu0 %v4389_v44 }
 0x666   : > { %4675 = vmatmul.bf16.gmra.mxu1 %v4389_v44  ;;  %4724 = vmatmul.bf16.gmra.mxu2 %v4389_v44  ;;  %v4301_v3 = vpop.f32.mrf.mxu2  ;;  %v10217_v44 = vld [vmem:[#allocation21_spill] sm:$0xff] }
 0x667   : > { %v4302_v32 = vadd.f32 %v4301_v3, %v9493_v40 }
 0x668   : > { %v9533_v47 = vpop.f32.mrf.mxu1 }
 0x669   : > { %v4345_v54 = vadd.f32 %v4302_v32, %v9007_v20 }
 0x66e   : > { %v4303_v55 = vpop.f32.mrf.mxu2 }
 0x66f   : > { %v4304_v24 = vadd.f32 %v4303_v55, %v9493_v40 }
 0x670   : > { %v4257_v8 = vpop.f32.mrf.mxu1 }
 0x671   : > { %v4346_v39 = vadd.f32 %v4304_v24, %v9010_v31  ;;  %v4258_v41 = vadd.f32 %v4257_v8, %v9485_v26  ;;  %v6606_v8 = vld [vmem:[%s10060_s4 + $0x3] ss:$4 sm:$0x3] }
 0x673   : > { %v4390_v30 = vpack.c.bf16 %v4346_v39, %v4345_v54  ;;  %v9541_v10 = vadd.f32 %v4258_v41, %v9020_v12  ;;  %v9572_v54 = vperm.slane %v6606_v8, 1 }
 0x675   : > { %4582 = vmatmul.bf16.gmra.mxu3 %v4390_v30  ;;  %4631 = vmatmul.bf16.gmra.mxu0 %v4390_v30 }
 0x676   : > { %4680 = vmatmul.bf16.gmra.mxu1 %v4390_v30  ;;  %4729 = vmatmul.bf16.gmra.mxu2 %v4390_v30  ;;  %v4306_v58 = vpop.f32.mrf.mxu2 }
 0x677   : > { %v4307_v20 = vadd.f32 %v4306_v58, %v9493_v40 }
 0x678   : > { %v9543_v17 = vpop.f32.mrf.mxu1 }
 0x679   : > { %v4347_v12 = vadd.f32 %v4307_v20, %v9024_v42  ;;  %v6630_v20 = vor.u32 %v6909_v27, %v6629_v15 }
 0x67b   : > { %5321 = vmatpush.bf16.msrb.mxu3 %v6630_v20 }
 0x67e   : > { %v4308_v31 = vpop.f32.mrf.mxu2 }
 0x67f   : > { %v4309_v6 = vadd.f32 %v4308_v31, %v9493_v40 }
 0x680   : > { %v4262_v21 = vpop.f32.mrf.mxu1 }
 0x681   : > { %v4348_v22 = vadd.f32 %v4309_v6, %v9027_v56  ;;  %v4263_v19 = vadd.f32 %v4262_v21, %v9485_v26 }
 0x683   : > { %v4391_v33 = vpack.c.bf16 %v4348_v22, %v4347_v12  ;;  %v9551_v9 = vadd.f32 %v4263_v19, %v9037_v11 }
 0x685   : > { %4587 = vmatmul.bf16.gmra.mxu3 %v4391_v33  ;;  %4636 = vmatmul.bf16.gmra.mxu0 %v4391_v33 }
 0x686   : > { %4685 = vmatmul.bf16.gmra.mxu1 %v4391_v33  ;;  %4734 = vmatmul.bf16.gmra.mxu2 %v4391_v33  ;;  %v4311_v63 = vpop.f32.mrf.mxu2 }
 0x687   : > { %v4312_v42 = vadd.f32 %v4311_v63, %v9493_v40 }
 0x688   : > { %v9553_v51 = vpop.f32.mrf.mxu1 }
 0x689   : > { %v4349_v11 = vadd.f32 %v4312_v42, %v10214_v62  ;;  %v6908_v42 = vld [vmem:[#allocation7 + $0x184] sm:$0xf0] }
 0x68e   : > { %v4313_v56 = vpop.f32.mrf.mxu2 }
 0x68f   : > { %v4314_v5 = vadd.f32 %v4313_v56, %v9493_v40 }
 0x690   : > { %v4267_v59 = vpop.f32.mrf.mxu1 }
 0x691   : > { %v4350_v43 = vadd.f32 %v4314_v5, %v10215_v48  ;;  %v4268_v61 = vadd.f32 %v4267_v59, %v9485_v26  ;;  %v6626_v5 = vor.u32 %v6908_v42, %v6625_v23 }
 0x693   : > { %v4392_v53 = vpack.c.bf16 %v4350_v43, %v4349_v11  ;;  %v9561_v52 = vadd.f32 %v4268_v61, %v10216_v45  ;;  %5322 = vmatpush.bf16.msrb.mxu3 %v6626_v5 }
 0x695   : > { %4592 = vmatmul.bf16.gmra.mxu3 %v4392_v53  ;;  %4641 = vmatmul.bf16.gmra.mxu0 %v4392_v53 }
 0x696   : > { %4690 = vmatmul.bf16.gmra.mxu1 %v4392_v53  ;;  %4739 = vmatmul.bf16.gmra.mxu2 %v4392_v53  ;;  %v4316_v18 = vpop.f32.mrf.mxu2 }
 0x697   : > { %v4317_v2 = vadd.f32 %v4316_v18, %v9493_v40  ;;  %v9589_v18 = vperm.slane %v6606_v8, 0 }
 0x698   : > { %v9567_v32 = vpop.f32.mrf.mxu1 }
 0x699   : > { %v4351_v3 = vadd.f32 %v4317_v2, %v10217_v44 }
 0x69e   : > { %v4318_v37 = vpop.f32.mrf.mxu2 }
 0x69f   : > { %v4319_v28 = vadd.f32 %v4318_v37, %v9493_v40 }
 0x6a1   : > { %v4352_v25 = vadd.f32 %v4319_v28, %v10218_v14 }
 0x6a3   : > { %v4393_v16 = vpack.c.bf16 %v4352_v25, %v4351_v3 }
 0x6a5   : > { %4597 = vmatmul.bf16.gmra.mxu3 %v4393_v16  ;;  %4646 = vmatmul.bf16.gmra.mxu0 %v4393_v16 }
 0x6a6   : > { %4695 = vmatmul.bf16.gmra.mxu1 %v4393_v16  ;;  %4744 = vmatmul.bf16.gmra.mxu2 %v4393_v16 }
 0x6b2   : > { %v4612_v55 = vpop.f32.mrf.mxu0 }
 0x6b3   : > { %v4661_v24 = vpop.f32.mrf.mxu1 }
 0x6b4   : > { %v4869_v44 = vadd.f32 %v9589_v18, %v4661_v24 }
 0x6b8   : > { %v4563_v40 = vpop.f32.mrf.mxu3 }
 0x6b9   : > { %v4710_v39 = vpop.f32.mrf.mxu2 }
 0x6ba   : > { %v4870_v41 = vadd.f32 %v9572_v54, %v4710_v39  ;;  %v4614_v30 = vpop.f32.mrf.mxu0 }
 0x6bb   : > { %v4663_v58 = vpop.f32.mrf.mxu1 }
 0x6bc   : > { %v6607_v7 = vmul.f32 -1.442695, %v4870_v41  ;;  %v4832_v3 = vadd.f32 %v4663_v58, %v4563_v40 }
 0x6be   : > { %7327 = vpow2.f32 %v6607_v7  ;;  %v4871_v41 = vadd.f32 %v9589_v18, %v4832_v3 }
 0x6c0   : > { %v9575_v31 = vpop.f32.mrf.mxu3 }
 0x6c1   : > { %v4712_v6 = vpop.f32.mrf.mxu2 }
 0x6c2   : > { %v4833_v21 = vadd.f32 %v4712_v6, %v4612_v55  ;;  %v4617_v12 = vpop.f32.mrf.mxu0 }
 0x6c3   : > { %v9577_v22 = vpop.f32.mrf.mxu1 }
 0x6c4   : > { %v7328_v19 = vpop.eup %7327  ;;  %v4872_v33 = vadd.f32 %v9572_v54, %v4833_v21 }
 0x6c5   : > { %v9580_v63 = vadd.f32 1.0, %v7328_v19 }
 0x6c6   : > { %v6608_v34 = vmul.f32 -1.442695, %v4872_v33 }
 0x6c7   : > { %7329 = vrcp.f32 %v9580_v63  ;;  %v4992_v24 = vand.u32 2147483648, %v9580_v63  ;;  %vm4986_vm0 = vweird.f32 %v9580_v63  ;;  %v4990_v58 = vand.u32 2147483647, %v9580_v63 }
 0x6c8   : > { %7331 = vpow2.f32 %v6608_v34  ;;  %v9583_v35 = vpop.f32.mrf.mxu3 }
 0x6c9   : > { %v4715_v56 = vpop.f32.mrf.mxu2  ;;  %v4993_v5 = vor.u32 1.1754944e-38, %v4992_v24  ;;  %vm4991_vm7 = vcmp.eq.f32.partialorder %v4990_v58, 8.507059e+37 }
 0x6ca   : > { %v4835_v59 = vadd.f32 %v4715_v56, %v4614_v30  ;;  %v4619_v62 = vpop.f32.mrf.mxu0 }
 0x6cb   : > { %v9585_v11 = vpop.f32.mrf.mxu1 }
 0x6cc   : > { %v4874_v48 = vadd.f32 %v9572_v54, %v4835_v59 }
 0x6cd   : > { %v7330_v43 = vpop.eup %7329 }
 0x6ce   : > { %v7332_v61 = vpop.eup %7331  ;;  %v4982_v53 = vmul.f32 %v7330_v43, %v9580_v63  ;;  %v6609_v45 = vmul.f32 -1.442695, %v4874_v48  ;;  %vm4987_vm15 = vweird.f32 %v7330_v43 }
 0x6cf   : > { %v4966_v0 = vadd.f32 1.0, %v7332_v61  ;;  %vm9606_vm1 = vmor %vm4986_vm0, %vm4987_vm15 }
 0x6d0   : > { %v4983_v50 = vsub.f32 1.0, %v4982_v53  ;;  %7333 = vpow2.f32 %v6609_v45  ;;  %v9591_v1 = vpop.f32.mrf.mxu3  ;;  %v4834_v45 = vadd.f32 %v9577_v22, %v9575_v31 }
 0x6d1   : > { %7335 = vrcp.f32 %v4966_v0  ;;  %v4717_v2 = vpop.f32.mrf.mxu2  ;;  %v5007_v19 = vand.u32 2147483648, %v4966_v0  ;;  %v5005_v33 = vand.u32 2147483647, %v4966_v0  ;;  %vm5001_vm4 = vweird.f32 %v4966_v0 }
 0x6d2   : > { %v4837_v37 = vadd.f32 %v4717_v2, %v4617_v12  ;;  %v4622_v28 = vpop.f32.mrf.mxu0  ;;  %v4984_v25 = vmul.f32 %v7330_v43, %v4983_v50  ;;  %7337 = vtanh.f32 %v4869_v44 }
 0x6d3   : > { %v9594_v14 = vpop.f32.mrf.mxu1  ;;  %v5008_v53 = vor.u32 1.1754944e-38, %v5007_v19  ;;  %vm5006_vm6 = vcmp.eq.f32.partialorder %v5005_v33, 8.507059e+37 }
 0x6d4   : > { %v4876_v16 = vadd.f32 %v9572_v54, %v4837_v37  ;;  %v4985_v7 = vadd.f32 %v7330_v43, %v4984_v25 }
 0x6d6   : > { %v7334_v55 = vpop.eup %7333  ;;  %v6610_v8 = vmul.f32 -1.442695, %v4876_v16  ;;  %v4989_v56 = vsel %vm9606_vm1, %v7330_v43, %v4985_v7  ;;  %v4836_v7 = vadd.f32 %v9585_v11, %v9583_v35 }
 0x6d7   : > { %v7336_v39 = vpop.eup %7335  ;;  %v9598_v30 = vadd.f32 1.0, %v7334_v55  ;;  %v4994_v2 = vsel %vm4991_vm7, %v4993_v5, %v4989_v56 }
 0x6d8   : > { %v4997_v15 = vmul.f32 %v7336_v39, %v4966_v0  ;;  %7339 = vpow2.f32 %v6610_v8  ;;  %v9600_v27 = vpop.f32.mrf.mxu3  ;;  %vm5002_vm3 = vweird.f32 %v7336_v39  ;;  %v7338_v63 = vpop.eup %7337 }
 0x6d9   : > { %7341 = vrcp.f32 %v9598_v30  ;;  %v4720_v40 = vpop.f32.mrf.mxu2  ;;  %vm5003_vm5 = vmor %vm5001_vm4, %vm5002_vm3  ;;  %v5221_v31 = vmul.f32 %v7338_v63, %v4994_v2  ;;  %vm5016_vm9 = vweird.f32 %v9598_v30  ;;  %v5020_v63 = vand.u32 2147483647, %v9598_v30 }
 0x6da   : > { %v4998_v20 = vsub.f32 1.0, %v4997_v15  ;;  %v4839_v6 = vadd.f32 %v4720_v40, %v4619_v62  ;;  %v4624_v21 = vpop.f32.mrf.mxu0  ;;  %7343 = vtanh.f32 %v4871_v41  ;;  %v4873_v41 = vadd.f32 %v9589_v18, %v4834_v45 }
 0x6db   : > { %v9611_v42 = vpop.f32.mrf.mxu1  ;;  %vm5021_vm12 = vcmp.eq.f32.partialorder %v5020_v63, 8.507059e+37 }
 0x6dc   : > { %v4999_v34 = vmul.f32 %v7336_v39, %v4998_v20  ;;  %v4878_v23 = vadd.f32 %v9572_v54, %v4839_v6  ;;  %v4875_v6 = vadd.f32 %v9589_v18, %v4836_v7 }
 0x6de   : > { %v7340_v59 = vpop.eup %7339  ;;  %v6611_v62 = vmul.f32 -1.442695, %v4878_v23  ;;  %v5000_v48 = vadd.f32 %v7336_v39, %v4999_v34  ;;  %v5022_v34 = vand.u32 2147483648, %v9598_v30 }
 0x6df   : > { %v9615_v61 = vpop.eup %7341  ;;  %v9619_v50 = vadd.f32 1.0, %v7340_v59 }
 0x6e0   : > { %v5012_v43 = vmul.f32 %v9615_v61, %v9598_v30  ;;  %7345 = vpow2.f32 %v6611_v62  ;;  %v9623_v37 = vpop.f32.mrf.mxu3  ;;  %v5004_v44 = vsel %vm5003_vm5, %v7336_v39, %v5000_v48  ;;  %v7344_v0 = vpop.eup %7343  ;;  %vm5017_vm8 = vweird.f32 %v9615_v61 }
 0x6e1   : > { %7347 = vrcp.f32 %v9619_v50  ;;  %v4722_v3 = vpop.f32.mrf.mxu2  ;;  %v5009_v25 = vsel %vm5006_vm6, %v5008_v53, %v5004_v44  ;;  %vm9649_vm10 = vmor %vm5016_vm9, %vm5017_vm8  ;;  %v5035_v62 = vand.u32 2147483647, %v9619_v50  ;;  %v5037_v48 = vand.u32 2147483648, %v9619_v50 }
 0x6e2   : > { %v4841_v16 = vadd.f32 %v4722_v3, %v4622_v28  ;;  %v9626_v55 = vpop.f32.mrf.mxu0  ;;  %v5222_v22 = vmul.f32 %v7344_v0, %v5009_v25  ;;  %v5013_v8 = vsub.f32 1.0, %v5012_v43  ;;  %7349 = vtanh.f32 %v4873_v41 }
 0x6e3   : > { %v9633_v20 = vpop.f32.mrf.mxu1  ;;  %v5023_v30 = vor.u32 1.1754944e-38, %v5022_v34  ;;  %vm5031_vm13 = vweird.f32 %v9619_v50  ;;  %v4838_v25 = vadd.f32 %v9594_v14, %v9591_v1  ;;  %vm5036_vm2 = vcmp.eq.f32.partialorder %v5035_v62, 8.507059e+37 }
 0x6e4   : > { %v4880_v15 = vadd.f32 %v9572_v54, %v4841_v16  ;;  %v5254_v39 = vpack.c.bf16 %v5222_v22, %v5221_v31  ;;  %v5014_v24 = vmul.f32 %v9615_v61, %v5013_v8 }
 0x6e6   : > { %v7346_v40 = vpop.eup %7345  ;;  %v6612_v58 = vmul.f32 -1.442695, %v4880_v15  ;;  %5323 = vmatmul.bf16.vlgmr.msrb.gmra.mxu3 %v5254_v39  ;;  %v5015_v11 = vadd.f32 %v9615_v61, %v5014_v24 }
 0x6e7   : > { %v7348_v28 = vpop.eup %7347  ;;  %v9636_v12 = vadd.f32 1.0, %v7346_v40 }
 0x6e8   : > { %v5027_v19 = vmul.f32 %v7348_v28, %v9619_v50  ;;  %7351 = vpow2.f32 %v6612_v58  ;;  %v9639_v35 = vpop.f32.mrf.mxu3  ;;  %vm5032_vm11 = vweird.f32 %v7348_v28  ;;  %v7350_v2 = vpop.eup %7349  ;;  %v6923_v50 = vld [vmem:[%s10063_s7 + $0x38] sm:$0xff] }
 0x6e9   : > { %7353 = vrcp.f32 %v9636_v12  ;;  %v4725_v33 = vpop.f32.mrf.mxu2  ;;  %vm5033_vm14 = vmor %vm5031_vm13, %vm5032_vm11  ;;  %5472 = vmatpush.bf16.msra.mxu0 %v6923_v50  ;;  %vm5046_vm0 = vweird.f32 %v9636_v12 }
 0x6ea   : > { %v4843_v23 = vadd.f32 %v4725_v33, %v4624_v21  ;;  %v9645_v56 = vpop.f32.mrf.mxu0  ;;  %v5028_v5 = vsub.f32 1.0, %v5027_v19  ;;  %7355 = vtanh.f32 %v4875_v6  ;;  %v5019_v21 = vsel %vm9649_vm10, %v9615_v61, %v5015_v11 }
 0x6eb   : > { %v5024_v31 = vsel %vm5021_vm12, %v5023_v30, %v5019_v21  ;;  %v5038_v61 = vor.u32 1.1754944e-38, %v5037_v48  ;;  %v9668_v8 = vpop.f32.mrf.mxu1  ;;  %v4840_v19 = vadd.f32 %v9611_v42, %v9600_v27  ;;  %v5050_v30 = vand.u32 2147483647, %v9636_v12 }
 0x6ec   : > { %v4882_v53 = vadd.f32 %v9572_v54, %v4843_v23  ;;  %v5029_v45 = vmul.f32 %v7348_v28, %v5028_v5  ;;  %v5223_v40 = vmul.f32 %v7350_v2, %v5024_v31 }
 0x6ed   : > { %v4879_v5 = vadd.f32 %v9589_v18, %v4840_v19  ;;  %vm5051_vm7 = vcmp.eq.f32.partialorder %v5050_v30, 8.507059e+37 }
 0x6ee   : > { %v7352_v43 = vpop.eup %7351  ;;  %v6613_v44 = vmul.f32 -1.442695, %v4882_v53  ;;  %v5030_v0 = vadd.f32 %v7348_v28, %v5029_v45  ;;  %v5052_v53 = vand.u32 2147483648, %v9636_v12 }
 0x6ef   : > { %v9660_v3 = vpop.eup %7353  ;;  %v9664_v16 = vadd.f32 1.0, %v7352_v43 }
 0x6f0   : > { %v5042_v22 = vmul.f32 %v9660_v3, %v9636_v12  ;;  %7357 = vpow2.f32 %v6613_v44  ;;  %v9670_v41 = vpop.f32.mrf.mxu3  ;;  %v5034_v7 = vsel %vm5033_vm14, %v7348_v28, %v5030_v0  ;;  %v7356_v1 = vpop.eup %7355  ;;  %v4877_v28 = vadd.f32 %v9589_v18, %v4838_v25 }
 0x6f1   : > { %7359 = vrcp.f32 %v9664_v16  ;;  %v4727_v14 = vpop.f32.mrf.mxu2  ;;  %v5039_v15 = vsel %vm5036_vm2, %v5038_v61, %v5034_v7  ;;  %vm5047_vm15 = vweird.f32 %v9660_v3  ;;  %v5065_v0 = vand.u32 2147483647, %v9664_v16 }
 0x6f2   : > { %v4845_v39 = vadd.f32 %v4727_v14, %v9626_v55  ;;  %v9677_v24 = vpop.f32.mrf.mxu0  ;;  %v5224_v58 = vmul.f32 %v7356_v1, %v5039_v15  ;;  %v5043_v6 = vsub.f32 1.0, %v5042_v22  ;;  %7361 = vtanh.f32 %v4877_v28  ;;  %vm9699_vm1 = vmor %vm5046_vm0, %vm5047_vm15 }
 0x6f3   : > { %v9694_v21 = vpop.f32.mrf.mxu1  ;;  %v5067_v25 = vand.u32 2147483648, %v9664_v16  ;;  %v5053_v12 = vor.u32 1.1754944e-38, %v5052_v53  ;;  %vm5061_vm4 = vweird.f32 %v9664_v16  ;;  %v4842_v15 = vadd.f32 %v9633_v20, %v9623_v37 }
 0x6f4   : > { %v4884_v11 = vadd.f32 %v9572_v54, %v4845_v39  ;;  %v5255_v33 = vpack.c.bf16 %v5224_v58, %v5223_v40  ;;  %v5044_v34 = vmul.f32 %v9660_v3, %v5043_v6  ;;  %vm5066_vm6 = vcmp.eq.f32.partialorder %v5065_v0, 8.507059e+37 }
 0x6f6   : > { %v7358_v23 = vpop.eup %7357  ;;  %v6614_v63 = vmul.f32 -1.442695, %v4884_v11  ;;  %5328 = vmatmul.bf16.gmra.mxu3 %v5255_v33  ;;  %v5045_v27 = vadd.f32 %v9660_v3, %v5044_v34 }
 0x6f7   : > { %v7360_v55 = vpop.eup %7359  ;;  %v9685_v59 = vadd.f32 1.0, %v7358_v23 }
 0x6f8   : > { %v5057_v62 = vmul.f32 %v7360_v55, %v9664_v16  ;;  %7363 = vpow2.f32 %v6614_v63  ;;  %v9688_v48 = vpop.f32.mrf.mxu3  ;;  %vm5062_vm3 = vweird.f32 %v7360_v55  ;;  %v7362_v22 = vpop.eup %7361  ;;  %v6922_v16 = vld [vmem:[%s10063_s7 + $0x30] sm:$0xff] }
 0x6f9   : > { %7365 = vrcp.f32 %v9685_v59  ;;  %v4730_v42 = vpop.f32.mrf.mxu2  ;;  %vm5063_vm5 = vmor %vm5061_vm4, %vm5062_vm3  ;;  %5473 = vmatpush.bf16.msra.mxu0 %v6922_v16  ;;  %vm5076_vm9 = vweird.f32 %v9685_v59 }
 0x6fa   : > { %v4847_v45 = vadd.f32 %v4730_v42, %v9645_v56  ;;  %v4634_v2 = vpop.f32.mrf.mxu0  ;;  %v5058_v43 = vsub.f32 1.0, %v5057_v62  ;;  %7367 = vtanh.f32 %v4879_v5  ;;  %v5049_v56 = vsel %vm9699_vm1, %v9660_v3, %v5045_v27 }
 0x6fb   : > { %v5054_v40 = vsel %vm5051_vm7, %v5053_v12, %v5049_v56  ;;  %v5068_v3 = vor.u32 1.1754944e-38, %v5067_v25  ;;  %v4844_v5 = vadd.f32 %v9668_v8, %v9639_v35  ;;  %v9730_v62 = vpop.f32.mrf.mxu1 }
 0x6fc   : > { %v4886_v31 = vadd.f32 %v9572_v54, %v4847_v45  ;;  %v5059_v61 = vmul.f32 %v7360_v55, %v5058_v43  ;;  %v5225_v34 = vmul.f32 %v7362_v22, %v5054_v40  ;;  %v5080_v22 = vand.u32 2147483647, %v9685_v59 }
 0x6fd   : > { %v4883_v43 = vadd.f32 %v9589_v18, %v4844_v5 }
 0x6fe   : > { %v7364_v7 = vpop.eup %7363  ;;  %v6615_v50 = vmul.f32 -1.442695, %v4886_v31  ;;  %v5060_v1 = vadd.f32 %v7360_v55, %v5059_v61  ;;  %v5082_v31 = vand.u32 2147483648, %v9685_v59  ;;  %vm5081_vm12 = vcmp.eq.f32.partialorder %v5080_v22, 8.507059e+37 }
 0x6ff   : > { %v9710_v14 = vpop.eup %7365  ;;  %v9714_v39 = vadd.f32 1.0, %v7364_v7 }
 0x700   : > { %v5072_v58 = vmul.f32 %v9710_v14, %v9685_v59  ;;  %7369 = vpow2.f32 %v6615_v50  ;;  %v9718_v6 = vpop.f32.mrf.mxu3  ;;  %v5064_v28 = vsel %vm5063_vm5, %v7360_v55, %v5060_v1  ;;  %v7368_v19 = vpop.eup %7367  ;;  %v4881_v55 = vadd.f32 %v9589_v18, %v4842_v15 }
 0x701   : > { %7371 = vrcp.f32 %v9714_v39  ;;  %v4732_v37 = vpop.f32.mrf.mxu2  ;;  %v5069_v20 = vsel %vm5066_vm6, %v5068_v3, %v5064_v28  ;;  %vm5077_vm8 = vweird.f32 %v9710_v14  ;;  %v5095_v50 = vand.u32 2147483647, %v9714_v39 }
 0x702   : > { %v4849_v11 = vadd.f32 %v4732_v37, %v9677_v24  ;;  %v9725_v33 = vpop.f32.mrf.mxu0  ;;  %v5226_v23 = vmul.f32 %v7368_v19, %v5069_v20  ;;  %v5073_v63 = vsub.f32 1.0, %v5072_v58  ;;  %7373 = vtanh.f32 %v4881_v55  ;;  %vm9748_vm10 = vmor %vm5076_vm9, %vm5077_vm8 }
 0x703   : > { %v5097_v1 = vand.u32 2147483648, %v9714_v39  ;;  %v5083_v59 = vor.u32 1.1754944e-38, %v5082_v31  ;;  %v9758_v28 = vpop.f32.mrf.mxu1  ;;  %vm5091_vm13 = vweird.f32 %v9714_v39  ;;  %v4846_v20 = vadd.f32 %v9694_v21, %v9670_v41 }
 0x704   : > { %v4888_v27 = vadd.f32 %v9572_v54, %v4849_v11  ;;  %v5256_v42 = vpack.c.bf16 %v5226_v23, %v5225_v34  ;;  %v5074_v53 = vmul.f32 %v9710_v14, %v5073_v63  ;;  %vm5096_vm2 = vcmp.eq.f32.partialorder %v5095_v50, 8.507059e+37 }
 0x705   : > { %v5098_v34 = vor.u32 1.1754944e-38, %v5097_v1 }
 0x706   : > { %v7370_v45 = vpop.eup %7369  ;;  %v6616_v24 = vmul.f32 -1.442695, %v4888_v27  ;;  %5333 = vmatmul.bf16.gmra.mxu3 %v5256_v42  ;;  %v5075_v8 = vadd.f32 %v9710_v14, %v5074_v53 }
 0x707   : > { %v7372_v30 = vpop.eup %7371  ;;  %v9735_v44 = vadd.f32 1.0, %v7370_v45 }
 0x708   : > { %v5087_v0 = vmul.f32 %v7372_v30, %v9714_v39  ;;  %7375 = vpow2.f32 %v6616_v24  ;;  %v9738_v35 = vpop.f32.mrf.mxu3  ;;  %vm5092_vm11 = vweird.f32 %v7372_v30  ;;  %v7374_v3 = vpop.eup %7373  ;;  %v6921_v39 = vld [vmem:[%s10063_s7 + $0x28] sm:$0xff] }
 0x709   : > { %7377 = vrcp.f32 %v9735_v44  ;;  %v4735_v25 = vpop.f32.mrf.mxu2  ;;  %vm5093_vm14 = vmor %vm5091_vm13, %vm5092_vm11  ;;  %5474 = vmatpush.bf16.msra.mxu0 %v6921_v39  ;;  %vm5106_vm0 = vweird.f32 %v9735_v44 }
 0x70a   : > { %v4851_v56 = vadd.f32 %v4735_v25, %v4634_v2  ;;  %v9744_v61 = vpop.f32.mrf.mxu0  ;;  %v5088_v12 = vsub.f32 1.0, %v5087_v0  ;;  %7379 = vtanh.f32 %v4883_v43  ;;  %v5079_v2 = vsel %vm9748_vm10, %v9710_v14, %v5075_v8 }
 0x70b   : > { %v5084_v14 = vsel %vm5081_vm12, %v5083_v59, %v5079_v2  ;;  %v4848_v43 = vadd.f32 %v9730_v62, %v9688_v48  ;;  %v4688_v50 = vpop.f32.mrf.mxu1 }
 0x70c   : > { %v4890_v15 = vadd.f32 %v9572_v54, %v4851_v56  ;;  %v5089_v40 = vmul.f32 %v7372_v30, %v5088_v12  ;;  %v5227_v53 = vmul.f32 %v7374_v3, %v5084_v14  ;;  %v5110_v3 = vand.u32 2147483647, %v9735_v44 }
 0x70d   : > { %v4887_v22 = vadd.f32 %v9589_v18, %v4848_v43 }
 0x70e   : > { %v7376_v58 = vpop.eup %7375  ;;  %v6617_v16 = vmul.f32 -1.442695, %v4890_v15  ;;  %v5090_v19 = vadd.f32 %v7372_v30, %v5089_v40  ;;  %v5112_v15 = vand.u32 2147483648, %v9735_v44  ;;  %vm5111_vm7 = vcmp.eq.f32.partialorder %v5110_v3, 8.507059e+37 }
 0x70f   : > { %v9761_v37 = vpop.eup %7377  ;;  %v9765_v11 = vadd.f32 1.0, %v7376_v58 }
 0x710   : > { %v5102_v23 = vmul.f32 %v9761_v37, %v9735_v44  ;;  %7381 = vpow2.f32 %v6617_v16  ;;  %v9769_v63 = vpop.f32.mrf.mxu3  ;;  %v5094_v55 = vsel %vm5093_vm14, %v7372_v30, %v5090_v19  ;;  %v7380_v5 = vpop.eup %7379  ;;  %v4885_v30 = vadd.f32 %v9589_v18, %v4846_v20 }
 0x711   : > { %7383 = vrcp.f32 %v9765_v11  ;;  %v4737_v41 = vpop.f32.mrf.mxu2  ;;  %v5099_v21 = vsel %vm5096_vm2, %v5098_v34, %v5094_v55  ;;  %vm5107_vm15 = vweird.f32 %v9761_v37  ;;  %v5125_v16 = vand.u32 2147483647, %v9765_v11 }
 0x712   : > { %v4853_v27 = vadd.f32 %v4737_v41, %v9725_v33  ;;  %v9776_v42 = vpop.f32.mrf.mxu0  ;;  %v5228_v45 = vmul.f32 %v7380_v5, %v5099_v21  ;;  %v5103_v24 = vsub.f32 1.0, %v5102_v23  ;;  %7385 = vtanh.f32 %v4885_v30  ;;  %vm9798_vm1 = vmor %vm5106_vm0, %vm5107_vm15 }
 0x713   : > { %v5127_v19 = vand.u32 2147483648, %v9765_v11  ;;  %v5113_v44 = vor.u32 1.1754944e-38, %v5112_v15  ;;  %vm5121_vm4 = vweird.f32 %v9765_v11  ;;  %v4850_v41 = vadd.f32 %v9758_v28, %v9718_v6  ;;  %v9823_v43 = vpop.f32.mrf.mxu1 }
 0x714   : > { %v4892_v0 = vadd.f32 %v9572_v54, %v4853_v27  ;;  %v5257_v8 = vpack.c.bf16 %v5228_v45, %v5227_v53  ;;  %v5104_v25 = vmul.f32 %v9761_v37, %v5103_v24  ;;  %vm5126_vm6 = vcmp.eq.f32.partialorder %v5125_v16, 8.507059e+37 }
 0x716   : > { %v7382_v31 = vpop.eup %7381  ;;  %v6618_v56 = vmul.f32 -1.442695, %v4892_v0  ;;  %5338 = vmatmul.bf16.gmra.mxu3 %v5257_v8  ;;  %v5105_v48 = vadd.f32 %v9761_v37, %v5104_v25 }
 0x717   : > { %v7384_v33 = vpop.eup %7383  ;;  %v9784_v12 = vadd.f32 1.0, %v7382_v31 }
 0x718   : > { %v5117_v7 = vmul.f32 %v7384_v33, %v9765_v11  ;;  %7387 = vpow2.f32 %v6618_v56  ;;  %v9787_v1 = vpop.f32.mrf.mxu3  ;;  %vm5122_vm3 = vweird.f32 %v7384_v33  ;;  %v7386_v34 = vpop.eup %7385  ;;  %v6920_v11 = vld [vmem:[%s10063_s7 + $0x20] sm:$0xff] }
 0x719   : > { %7389 = vrcp.f32 %v9784_v12  ;;  %v4740_v62 = vpop.f32.mrf.mxu2  ;;  %vm5123_vm5 = vmor %vm5121_vm4, %vm5122_vm3  ;;  %5475 = vmatpush.bf16.msra.mxu0 %v6920_v11  ;;  %vm5136_vm9 = vweird.f32 %v9784_v12 }
 0x71a   : > { %v4855_v2 = vadd.f32 %v4740_v62, %v9744_v61  ;;  %v9794_v40 = vpop.f32.mrf.mxu0  ;;  %v5118_v59 = vsub.f32 1.0, %v5117_v7  ;;  %7391 = vtanh.f32 %v4887_v22  ;;  %v5109_v61 = vsel %vm9798_vm1, %v9761_v37, %v5105_v48 }
 0x71b   : > { %v5114_v27 = vsel %vm5111_vm7, %v5113_v44, %v5109_v61  ;;  %v5128_v37 = vor.u32 1.1754944e-38, %v5127_v19  ;;  %v4852_v22 = vadd.f32 %v4688_v50, %v9738_v35  ;;  %v6919_v50 = vld [vmem:[%s10063_s7 + $0x18] sm:$0xff] }
 0x71c   : > { %v4894_v20 = vadd.f32 %v9572_v54, %v4855_v2  ;;  %v5119_v14 = vmul.f32 %v7384_v33, %v5118_v59  ;;  %v5229_v25 = vmul.f32 %v7386_v34, %v5114_v27  ;;  %v5140_v34 = vand.u32 2147483647, %v9784_v12 }
 0x71d   : > { %5476 = vmatpush.bf16.msra.mxu0 %v6919_v50 }
 0x71e   : > { %v7388_v23 = vpop.eup %7387  ;;  %v6619_v55 = vmul.f32 -1.442695, %v4894_v20  ;;  %v5120_v39 = vadd.f32 %v7384_v33, %v5119_v14  ;;  %v5142_v20 = vand.u32 2147483648, %v9784_v12  ;;  %vm5141_vm12 = vcmp.eq.f32.partialorder %v5140_v34, 8.507059e+37 }
 0x71f   : > { %v9809_v5 = vpop.eup %7389  ;;  %v9813_v21 = vadd.f32 1.0, %v7388_v23  ;;  %v6918_v23 = vld [vmem:[%s10063_s7 + $0x10] sm:$0xff] }
 0x720   : > { %v5132_v53 = vmul.f32 %v9809_v5, %v9784_v12  ;;  %7393 = vpow2.f32 %v6619_v55  ;;  %v9817_v45 = vpop.f32.mrf.mxu3  ;;  %v5124_v24 = vsel %vm5123_vm5, %v7384_v33, %v5120_v39  ;;  %v7392_v30 = vpop.eup %7391  ;;  %v4889_v33 = vadd.f32 %v9589_v18, %v4850_v41 }
 0x721   : > { %7395 = vrcp.f32 %v9813_v21  ;;  %v4742_v6 = vpop.f32.mrf.mxu2  ;;  %v5129_v28 = vsel %vm5126_vm6, %v5128_v37, %v5124_v24  ;;  %vm5137_vm8 = vweird.f32 %v9809_v5  ;;  %v5155_v39 = vand.u32 2147483647, %v9813_v21  ;;  %v4693_v41 = vpop.f32.mrf.mxu1  ;;  %5477 = vmatpush.bf16.msra.mxu0 %v6918_v23 }
 0x722   : > { %v4857_v0 = vadd.f32 %v4742_v6, %v9776_v42  ;;  %v9826_v8 = vpop.f32.mrf.mxu0  ;;  %v5230_v31 = vmul.f32 %v7392_v30, %v5129_v28  ;;  %v5133_v56 = vsub.f32 1.0, %v5132_v53  ;;  %7397 = vtanh.f32 %v4889_v33  ;;  %vm9851_vm10 = vmor %vm5136_vm9, %vm5137_vm8 }
 0x723   : > { %v4891_v42 = vadd.f32 %v9589_v18, %v4852_v22  ;;  %v5143_v24 = vor.u32 1.1754944e-38, %v5142_v20  ;;  %vm5151_vm13 = vweird.f32 %v9813_v21  ;;  %vm5156_vm2 = vcmp.eq.f32.partialorder %v5155_v39, 8.507059e+37 }
 0x724   : > { %v4896_v7 = vadd.f32 %v9572_v54, %v4857_v0  ;;  %v5258_v48 = vpack.c.bf16 %v5230_v31, %v5229_v25  ;;  %v5134_v62 = vmul.f32 %v9809_v5, %v5133_v56 }
 0x726   : > { %v7394_v15 = vpop.eup %7393  ;;  %v6620_v2 = vmul.f32 -1.442695, %v4896_v7  ;;  %5343 = vmatmul.bf16.gmra.mxu3 %v5258_v48  ;;  %v5135_v35 = vadd.f32 %v9809_v5, %v5134_v62  ;;  %v4854_v7 = vadd.f32 %v9823_v43, %v9769_v63  ;;  %v6917_v43 = vld [vmem:[%s10063_s7 + $0x8] sm:$0xff] }
 0x727   : > { %v7396_v3 = vpop.eup %7395  ;;  %v9833_v59 = vadd.f32 1.0, %v7394_v15  ;;  %5478 = vmatpush.bf16.msra.mxu0 %v6917_v43  ;;  %v6916_v43 = vld [vmem:[%s10063_s7] sm:$0xff] }
 0x728   : > { %v5147_v58 = vmul.f32 %v7396_v3, %v9813_v21  ;;  %7399 = vpow2.f32 %v6620_v2  ;;  %v9836_v16 = vpop.f32.mrf.mxu3  ;;  %v5139_v12 = vsel %vm9851_vm10, %v9809_v5, %v5135_v35  ;;  %vm5152_vm11 = vweird.f32 %v7396_v3  ;;  %v7398_v53 = vpop.eup %7397 }
 0x729   : > { %7401 = vrcp.f32 %v9833_v59  ;;  %v4745_v19 = vpop.f32.mrf.mxu2  ;;  %v5144_v25 = vsel %vm5141_vm12, %v5143_v24, %v5139_v12  ;;  %vm5153_vm14 = vmor %vm5151_vm13, %vm5152_vm11  ;;  %v4893_v20 = vadd.f32 %v9589_v18, %v4854_v7  ;;  %vm5166_vm0 = vweird.f32 %v9833_v59 }
 0x72a   : > { %v4859_v61 = vadd.f32 %v4745_v19, %v9794_v40  ;;  %v4649_v14 = vpop.f32.mrf.mxu0  ;;  %v5148_v44 = vsub.f32 1.0, %v5147_v58  ;;  %7403 = vtanh.f32 %v4891_v42  ;;  %v5157_v40 = vand.u32 2147483648, %v9813_v21 }
 0x72b   : > { %v5231_v15 = vmul.f32 %v7398_v53, %v5144_v25  ;;  %v4856_v58 = vadd.f32 %v4693_v41, %v9787_v1  ;;  %v5170_v23 = vand.u32 2147483647, %v9833_v59  ;;  %5479 = vmatpush.bf16.msra.mxu0 %v6916_v43 }
 0x72c   : > { %v4898_v27 = vadd.f32 %v9572_v54, %v4859_v61  ;;  %v5149_v37 = vmul.f32 %v7396_v3, %v5148_v44  ;;  %v5158_v31 = vor.u32 1.1754944e-38, %v5157_v40  ;;  %v4696_v61 = vpop.f32.mrf.mxu1  ;;  %v5172_v44 = vand.u32 2147483648, %v9833_v59 }
 0x72d   : > { %v4895_v14 = vadd.f32 %v9589_v18, %v4856_v58  ;;  %vm5171_vm7 = vcmp.eq.f32.partialorder %v5170_v23, 8.507059e+37 }
 0x72e   : > { %v7400_v11 = vpop.eup %7399  ;;  %v6621_v30 = vmul.f32 -1.442695, %v4898_v27  ;;  %v5150_v6 = vadd.f32 %v7396_v3, %v5149_v37  ;;  %v5173_v12 = vor.u32 1.1754944e-38, %v5172_v44 }
 0x72f   : > { %v7402_v28 = vpop.eup %7401  ;;  %v9862_v0 = vadd.f32 1.0, %v7400_v11 }
 0x730   : > { %v5162_v56 = vmul.f32 %v7402_v28, %v9833_v59  ;;  %7405 = vpow2.f32 %v6621_v30  ;;  %v4600_v5 = vpop.f32.mrf.mxu3  ;;  %v5154_v33 = vsel %vm5153_vm14, %v7396_v3, %v5150_v6  ;;  %v7404_v22 = vpop.eup %7403  ;;  %vm5167_vm15 = vweird.f32 %v7402_v28 }
 0x731   : > { %7407 = vrcp.f32 %v9862_v0  ;;  %v4747_v21 = vpop.f32.mrf.mxu2  ;;  %v5159_v48 = vsel %vm5156_vm2, %v5158_v31, %v5154_v33  ;;  %vm5168_vm1 = vmor %vm5166_vm0, %vm5167_vm15  ;;  %v5187_v39 = vand.u32 2147483648, %v9862_v0  ;;  %v5185_v27 = vand.u32 2147483647, %v9862_v0 }
 0x732   : > { %v4861_v62 = vadd.f32 %v4747_v21, %v9826_v8  ;;  %v5232_v2 = vmul.f32 %v7404_v22, %v5159_v48  ;;  %v5163_v42 = vsub.f32 1.0, %v5162_v56  ;;  %vm5181_vm4 = vweird.f32 %v9862_v0 }
 0x733   : > { %v5188_v59 = vor.u32 1.1754944e-38, %v5187_v39  ;;  %vm5186_vm6 = vcmp.eq.f32.partialorder %v5185_v27, 8.507059e+37  ;;  %v4858_v33 = vadd.f32 %v4696_v61, %v9817_v45 }
 0x734   : > { %v4900_v35 = vadd.f32 %v9572_v54, %v4861_v62  ;;  %v5259_v50 = vpack.c.bf16 %v5232_v2, %v5231_v15  ;;  %v5164_v3 = vmul.f32 %v7402_v28, %v5163_v42  ;;  %v4698_v31 = vpop.f32.mrf.mxu1 }
 0x735   : > { %v4897_v15 = vadd.f32 %v9589_v18, %v4858_v33 }
 0x736   : > { %v7406_v19 = vpop.eup %7405  ;;  %v6622_v63 = vmul.f32 -1.442695, %v4900_v35  ;;  %5348 = vmatmul.bf16.gmra.mxu3 %v5259_v50  ;;  %v5165_v54 = vadd.f32 %v7402_v28, %v5164_v3 }
 0x737   : > { %v7408_v8 = vpop.eup %7407  ;;  %v9876_v34 = vadd.f32 1.0, %v7406_v19 }
 0x738   : > { %v5177_v1 = vmul.f32 %v7408_v8, %v9862_v0  ;;  %7409 = vpow2.f32 %v6622_v63  ;;  %v5169_v40 = vsel %vm5168_vm1, %v7402_v28, %v5165_v54  ;;  %vm5182_vm3 = vweird.f32 %v7408_v8 }
 0x739   : > { %7411 = vrcp.f32 %v9876_v34  ;;  %v5174_v30 = vsel %vm5171_vm7, %v5173_v12, %v5169_v40  ;;  %vm5183_vm5 = vmor %vm5181_vm4, %vm5182_vm3  ;;  %v4860_v0 = vadd.f32 %v4698_v31, %v9836_v16  ;;  %v5202_v50 = vand.u32 2147483648, %v9876_v34  ;;  %v6931_v40 = vld [vmem:[%s10065_s9 + $0x38] sm:$0xff] }
 0x73a   : > { %7413 = vtanh.f32 %v4893_v20  ;;  %v5178_v55 = vsub.f32 1.0, %v5177_v1  ;;  %vm5196_vm9 = vweird.f32 %v9876_v34  ;;  %v5200_v45 = vand.u32 2147483647, %v9876_v34  ;;  %5613 = vmatpush.bf16.msra.mxu1 %v6931_v40 }
 0x73b   : > { %7415 = vtanh.f32 %v4895_v14  ;;  %v4899_v42 = vadd.f32 %v9589_v18, %v4860_v0  ;;  %v5203_v63 = vor.u32 1.1754944e-38, %v5202_v50  ;;  %v6930_v0 = vld [vmem:[%s10065_s9 + $0x30] sm:$0xff] }
 0x73c   : > { %v5179_v41 = vmul.f32 %v7408_v8, %v5178_v55  ;;  %vm5201_vm12 = vcmp.eq.f32.partialorder %v5200_v45, 8.507059e+37 }
 0x73e   : > { %v7410_v37 = vpop.eup %7409  ;;  %v5180_v53 = vadd.f32 %v7408_v8, %v5179_v41  ;;  %v5263_v41 = vld [vmem:[#allocation8 + $0x3] ss:$4 sm:$0x3]  ;;  %5614 = vmatpush.bf16.msra.mxu1 %v6930_v0 }
 0x73f   : > { %v7412_v24 = vpop.eup %7411  ;;  %v4980_v11 = vadd.f32 1.0, %v7410_v37  ;;  %v9900_v12 = vperm.slane %v5263_v41, 0  ;;  %v10231_v37 = vld [vmem:[#allocation35_spill] sm:$0xff] }
 0x740   : > { %v7414_v6 = vpop.eup %7413  ;;  %v5192_v25 = vmul.f32 %v7412_v24, %v9876_v34  ;;  %v5184_v28 = vsel %vm5183_vm5, %v7408_v8, %v5180_v53  ;;  %vm5197_vm8 = vweird.f32 %v7412_v24  ;;  %v10232_v53 = vld [vmem:[#allocation36_spill] sm:$0xff] }
 0x741   : > { %v7416_v56 = vpop.eup %7415  ;;  %7417 = vrcp.f32 %v4980_v11  ;;  %v5189_v5 = vsel %vm5186_vm6, %v5188_v59, %v5184_v28  ;;  %v5233_v22 = vmul.f32 %v7414_v6, %v5174_v30  ;;  %vm5198_vm10 = vmor %vm5196_vm9, %vm5197_vm8  ;;  %v5217_v16 = vand.u32 2147483648, %v4980_v11  ;;  %v10234_v30 = vld [vmem:[#allocation32_spill] sm:$0xff] }
 0x742   : > { %v5234_v7 = vmul.f32 %v7416_v56, %v5189_v5  ;;  %v5193_v21 = vsub.f32 1.0, %v5192_v25  ;;  %7419 = vtanh.f32 %v4897_v15  ;;  %v5215_v61 = vand.u32 2147483647, %v4980_v11 }
 0x743   : > { %7421 = vtanh.f32 %v4899_v42  ;;  %vm5211_vm13 = vweird.f32 %v4980_v11  ;;  %v5218_v14 = vor.u32 1.1754944e-38, %v5217_v16  ;;  %v4235_v6 = vadd.f32 %v9491_v49, %v9485_v26  ;;  %v10235_v49 = vld [vmem:[#allocation37_spill] sm:$0xff] }
 0x744   : > { %v5260_v48 = vpack.c.bf16 %v5234_v7, %v5233_v22  ;;  %v5194_v62 = vmul.f32 %v7412_v24, %v5193_v21  ;;  %vm5216_vm2 = vcmp.eq.f32.partialorder %v5215_v61, 8.507059e+37  ;;  %v3049_v15 = vadd.f32 %v10235_v49, %v10231_v37 }
 0x746   : > { %5353 = vmatmul.bf16.gmra.mxu3 %v5260_v48  ;;  %v5195_v35 = vadd.f32 %v7412_v24, %v5194_v62 }
 0x747   : > { %v7418_v2 = vpop.eup %7417 }
 0x748   : > { %v5207_v58 = vmul.f32 %v7418_v2, %v4980_v11  ;;  %v5199_v19 = vsel %vm5198_vm10, %v7412_v24, %v5195_v35  ;;  %vm5212_vm11 = vweird.f32 %v7418_v2  ;;  %v7420_v34 = vpop.eup %7419  ;;  %v3044_v24 = vadd.f32 %v10232_v53, %v10231_v37  ;;  %v10233_v11 = vld [vmem:[#allocation25_spill] sm:$0xff]  ;;  %v6928_v53 = vld [vmem:[%s10065_s9 + $0x20] sm:$0xff] }
 0x749   : > { %v5204_v8 = vsel %vm5201_vm12, %v5203_v63, %v5199_v19  ;;  %vm5213_vm14 = vmor %vm5211_vm13, %vm5212_vm11  ;;  %v7422_v54 = vpop.eup %7421  ;;  %v1869_v59 = vadd.f32 %v10234_v30, %v10233_v11  ;;  %v6929_v63 = vld [vmem:[%s10065_s9 + $0x28] sm:$0xff] }
 0x74a   : > { %v5208_v3 = vsub.f32 1.0, %v5207_v58  ;;  %v5235_v23 = vmul.f32 %v7420_v34, %v5204_v8  ;;  %5615 = vmatpush.bf16.msra.mxu1 %v6929_v63 }
 0x74b   : > { %v3131_v31 = vadd.f32 %v3044_v24, %v1869_v59 }
 0x74c   : > { %v5209_v20 = vmul.f32 %v7418_v2, %v5208_v3 }
 0x74d   : > { %v4322_v56 = vadd.f32 %v4235_v6, %v3131_v31  ;;  %v10240_v6 = vld [vmem:[#allocation23_spill] sm:$0xff] }
 0x74e   : > { %v5210_v18 = vadd.f32 %v7418_v2, %v5209_v20  ;;  %5616 = vmatpush.bf16.msra.mxu1 %v6928_v53  ;;  %v10245_v53 = vld [vmem:[#allocation42_spill] sm:$0xff] }
 0x750   : > { %v5214_v1 = vsel %vm5213_vm14, %v7418_v2, %v5210_v18  ;;  %v10236_v2 = vld [vmem:[#allocation33_spill] sm:$0xff] }
 0x751   : > { %v5219_v44 = vsel %vm5216_vm2, %v5218_v14, %v5214_v1  ;;  %v1874_v42 = vadd.f32 %v10236_v2, %v10233_v11  ;;  %v10238_v14 = vld [vmem:[#allocation34_spill] sm:$0xff] }
 0x752   : > { %v5236_v55 = vmul.f32 %v7422_v54, %v5219_v44  ;;  %v1879_v34 = vadd.f32 %v10238_v14, %v10233_v11  ;;  %v10242_v2 = vld [vmem:[#allocation26_spill] sm:$0xff] }
 0x753   : > { %v3133_v35 = vadd.f32 %v3049_v15, %v1874_v42  ;;  %v1889_v42 = vadd.f32 %v10242_v2, %v10233_v11 }
 0x754   : > { %v5261_v39 = vpack.c.bf16 %v5236_v55, %v5235_v23 }
 0x756   : > { %5358 = vmatmul.bf16.gmra.mxu3 %v5261_v39 }
 0x769   : > { %v5324_v27 = vpop.f32.mrf.mxu3 }
 0x76a   : > { %v5325_v25 = vadd.f32 %v5324_v27, %v9900_v12 }
 0x76c   : > { %v5364_v5 = vadd.f32 %v5325_v25, %v9489_v60  ;;  %v4240_v60 = vadd.f32 %v9503_v4, %v9485_v26  ;;  %v10237_v4 = vld [vmem:[#allocation38_spill] sm:$0xff]  ;;  %v1884_v25 = vadd.f32 %v10240_v6, %v10233_v11 }
 0x76d   : > { %v3054_v8 = vadd.f32 %v10237_v4, %v10231_v37  ;;  %v10244_v4 = vld [vmem:[#allocation27_spill] sm:$0xff] }
 0x76e   : > { %v5380_v7 = vmax.f32 %v5364_v5, 0.0  ;;  %v4324_v45 = vadd.f32 %v4240_v60, %v3133_v35 }
 0x76f   : > { %v3135_v54 = vadd.f32 %v3054_v8, %v1879_v34  ;;  %v1894_v8 = vadd.f32 %v10244_v4, %v10233_v11 }
 0x771   : > { %v5326_v28 = vpop.f32.mrf.mxu3 }
 0x772   : > { %v5327_v33 = vadd.f32 %v5326_v28, %v9900_v12 }
 0x774   : > { %v5365_v22 = vadd.f32 %v5327_v33, %v4322_v56 }
 0x776   : > { %v5381_v21 = vmax.f32 %v5365_v22, 0.0 }
 0x778   : > { %v5412_v48 = vpack.c.bf16 %v5381_v21, %v5380_v7 }
 0x779   : > { %v5329_v62 = vpop.f32.mrf.mxu3 }
 0x77a   : > { %5480 = vmatmul.bf16.vlgmr.msra.gmra.mxu0 %v5412_v48  ;;  %v5330_v58 = vadd.f32 %v5329_v62, %v9900_v12  ;;  %v6927_v48 = vld [vmem:[%s10065_s9 + $0x18] sm:$0xff] }
 0x77b   : > { %5617 = vmatpush.bf16.msra.mxu1 %v6927_v48 }
 0x77c   : > { %v5366_v3 = vadd.f32 %v5330_v58, %v9501_v38  ;;  %v4245_v38 = vadd.f32 %v9513_v36, %v9485_v26  ;;  %v10239_v36 = vld [vmem:[#allocation39_spill] sm:$0xff] }
 0x77d   : > { %v3059_v59 = vadd.f32 %v10239_v36, %v10231_v37  ;;  %v4265_v36 = vadd.f32 %v9553_v51, %v9485_v26  ;;  %v10248_v51 = vld [vmem:[#allocation24_spill] sm:$0xff] }
 0x77e   : > { %v5382_v20 = vmax.f32 %v5366_v3, 0.0  ;;  %v4326_v23 = vadd.f32 %v4245_v38, %v3135_v54  ;;  %v1904_v48 = vadd.f32 %v10248_v51, %v10233_v11 }
 0x77f   : > { %v3137_v28 = vadd.f32 %v3059_v59, %v1884_v25 }
 0x781   : > { %v5331_v50 = vpop.f32.mrf.mxu3 }
 0x782   : > { %v5332_v16 = vadd.f32 %v5331_v50, %v9900_v12 }
 0x784   : > { %v5367_v19 = vadd.f32 %v5332_v16, %v4324_v45 }
 0x786   : > { %v5383_v61 = vmax.f32 %v5367_v19, 0.0 }
 0x788   : > { %v5413_v18 = vpack.c.bf16 %v5383_v61, %v5382_v20  ;;  %v6926_v61 = vld [vmem:[%s10065_s9 + $0x10] sm:$0xff] }
 0x789   : > { %v5334_v43 = vpop.f32.mrf.mxu3  ;;  %5618 = vmatpush.bf16.msra.mxu1 %v6926_v61 }
 0x78a   : > { %5485 = vmatmul.bf16.gmra.mxu0 %v5413_v18  ;;  %v5335_v1 = vadd.f32 %v5334_v43, %v9900_v12 }
 0x78c   : > { %v5368_v55 = vadd.f32 %v5335_v1, %v9511_v13  ;;  %v4250_v13 = vadd.f32 %v9523_v46, %v9485_v26  ;;  %v10241_v46 = vld [vmem:[#allocation40_spill] sm:$0xff] }
 0x78d   : > { %v3064_v15 = vadd.f32 %v10241_v46, %v10231_v37 }
 0x78e   : > { %v5384_v41 = vmax.f32 %v5368_v55, 0.0  ;;  %v4328_v5 = vadd.f32 %v4250_v13, %v3137_v28 }
 0x78f   : > { %v3139_v58 = vadd.f32 %v3064_v15, %v1889_v42 }
 0x791   : > { %v5336_v44 = vpop.f32.mrf.mxu3 }
 0x792   : > { %v5337_v39 = vadd.f32 %v5336_v44, %v9900_v12 }
 0x794   : > { %v5369_v40 = vadd.f32 %v5337_v39, %v4326_v23 }
 0x796   : > { %v5385_v27 = vmax.f32 %v5369_v40, 0.0  ;;  %v6925_v40 = vld [vmem:[%s10065_s9 + $0x8] sm:$0xff] }
 0x797   : > { %5619 = vmatpush.bf16.msra.mxu1 %v6925_v40 }
 0x798   : > { %v5414_v24 = vpack.c.bf16 %v5385_v27, %v5384_v41 }
 0x799   : > { %v5339_v30 = vpop.f32.mrf.mxu3 }
 0x79a   : > { %5490 = vmatmul.bf16.gmra.mxu0 %v5414_v24  ;;  %v5340_v31 = vadd.f32 %v5339_v30, %v9900_v12  ;;  %v10246_v24 = vld [vmem:[#allocation30_spill] sm:$0xff] }
 0x79b   : > { %v1899_v30 = vadd.f32 %v10246_v24, %v10233_v11  ;;  %v7037_v11 = vld [vmem:[%s10064_s8] ss:$0 sm:$0xff] }
 0x79c   : > { %v5370_v33 = vadd.f32 %v5340_v31, %v9521_v57  ;;  %v4255_v57 = vadd.f32 %v9533_v47, %v9485_v26  ;;  %v10243_v47 = vld [vmem:[#allocation41_spill] sm:$0xff] }
 0x79d   : > { %v3069_v43 = vadd.f32 %v10243_v47, %v10231_v37 }
 0x79e   : > { %v5386_v21 = vmax.f32 %v5370_v33, 0.0  ;;  %v4330_v50 = vadd.f32 %v4255_v57, %v3139_v58 }
 0x79f   : > { %v3141_v34 = vadd.f32 %v3069_v43, %v1894_v8 }
 0x7a1   : > { %v5341_v56 = vpop.f32.mrf.mxu3 }
 0x7a2   : > { %v5342_v22 = vadd.f32 %v5341_v56, %v9900_v12 }
 0x7a4   : > { %v5371_v7 = vadd.f32 %v5342_v22, %v4328_v5 }
 0x7a6   : > { %v5387_v0 = vmax.f32 %v5371_v7, 0.0 }
 0x7a8   : > { %v5415_v62 = vpack.c.bf16 %v5387_v0, %v5386_v21  ;;  %v10247_v21 = vld [vmem:[#allocation43_spill] sm:$0xff] }
 0x7a9   : > { %v5344_v49 = vpop.f32.mrf.mxu3  ;;  %v3079_v0 = vadd.f32 %v10247_v21, %v10231_v37 }
 0x7aa   : > { %5495 = vmatmul.bf16.gmra.mxu0 %v5415_v62  ;;  %v5345_v60 = vadd.f32 %v5344_v49, %v9900_v12  ;;  %v4270_v62 = vadd.f32 %v9567_v32, %v9485_v26 }
 0x7ac   : > { %v5372_v45 = vadd.f32 %v5345_v60, %v9531_v29  ;;  %v4260_v29 = vadd.f32 %v9543_v17, %v9485_v26  ;;  %v6924_v17 = vld [vmem:[%s10065_s9] sm:$0xff] }
 0x7ad   : > { %5620 = vmatpush.bf16.msra.mxu1 %v6924_v17 }
 0x7ae   : > { %v5388_v19 = vmax.f32 %v5372_v45, 0.0  ;;  %v4332_v1 = vadd.f32 %v4260_v29, %v3141_v34 }
 0x7b1   : > { %v5346_v35 = vpop.f32.mrf.mxu3 }
 0x7b2   : > { %v5347_v3 = vadd.f32 %v5346_v35, %v9900_v12 }
 0x7b4   : > { %v5373_v16 = vadd.f32 %v5347_v3, %v4330_v50 }
 0x7b6   : > { %v5389_v20 = vmax.f32 %v5373_v16, 0.0 }
 0x7b8   : > { %v5416_v63 = vpack.c.bf16 %v5389_v20, %v5388_v19 }
 0x7b9   : > { %v5349_v18 = vpop.f32.mrf.mxu3 }
 0x7ba   : > { %5500 = vmatmul.bf16.gmra.mxu0 %v5416_v63  ;;  %v5350_v14 = vadd.f32 %v5349_v18, %v9900_v12 }
 0x7bc   : > { %v5374_v54 = vadd.f32 %v5350_v14, %v9541_v10  ;;  %v3074_v10 = vadd.f32 %v10245_v53, %v10231_v37 }
 0x7be   : > { %v5390_v55 = vmax.f32 %v5374_v54, 0.0  ;;  %v3143_v6 = vadd.f32 %v3074_v10, %v1899_v30 }
 0x7c0   : > { %v4334_v13 = vadd.f32 %v4265_v36, %v3143_v6 }
 0x7c1   : > { %v5351_v38 = vpop.f32.mrf.mxu3 }
 0x7c2   : > { %v5352_v44 = vadd.f32 %v5351_v38, %v9900_v12 }
 0x7c4   : > { %v5375_v23 = vadd.f32 %v5352_v44, %v4332_v1 }
 0x7c6   : > { %v5391_v39 = vmax.f32 %v5375_v23, 0.0 }
 0x7c8   : > { %v5417_v41 = vpack.c.bf16 %v5391_v39, %v5390_v55 }
 0x7c9   : > { %v5354_v27 = vpop.f32.mrf.mxu3 }
 0x7ca   : > { %5505 = vmatmul.bf16.gmra.mxu0 %v5417_v41  ;;  %v5355_v59 = vadd.f32 %v5354_v27, %v9900_v12 }
 0x7cc   : > { %v5376_v31 = vadd.f32 %v5355_v59, %v9551_v9  ;;  %v3145_v9 = vadd.f32 %v3079_v0, %v1904_v48 }
 0x7ce   : > { %v5392_v5 = vmax.f32 %v5376_v31, 0.0  ;;  %v4336_v15 = vadd.f32 %v4270_v62, %v3145_v9 }
 0x7d1   : > { %v5356_v25 = vpop.f32.mrf.mxu3 }
 0x7d2   : > { %v5357_v28 = vadd.f32 %v5356_v25, %v9900_v12 }
 0x7d4   : > { %v5377_v56 = vadd.f32 %v5357_v28, %v4334_v13 }
 0x7d6   : > { %v5393_v33 = vmax.f32 %v5377_v56, 0.0 }
 0x7d8   : > { %v5418_v22 = vpack.c.bf16 %v5393_v33, %v5392_v5 }
 0x7d9   : > { %v5359_v7 = vpop.f32.mrf.mxu3 }
 0x7da   : > { %5510 = vmatmul.bf16.gmra.mxu0 %v5418_v22  ;;  %v5360_v49 = vadd.f32 %v5359_v7, %v9900_v12 }
 0x7dc   : > { %v5378_v2 = vadd.f32 %v5360_v49, %v9561_v52 }
 0x7de   : > { %v5394_v60 = vmax.f32 %v5378_v2, 0.0 }
 0x7e1   : > { %v5361_v46 = vpop.f32.mrf.mxu3 }
 0x7e2   : > { %v5362_v42 = vadd.f32 %v5361_v46, %v9900_v12 }
 0x7e4   : > { %v5379_v57 = vadd.f32 %v5362_v42, %v4336_v15  ;;  %v7038_v15 = vld [vmem:[%s10066_s10] ss:$0 sm:$0xff] }
 0x7e6   : > { %v5395_v58 = vmax.f32 %v5379_v57, 0.0 }
 0x7e8   : > { %v5419_v35 = vpack.c.bf16 %v5395_v58, %v5394_v60 }
 0x7ea   : > { %5515 = vmatmul.bf16.gmra.mxu0 %v5419_v35 }
 0x7f7   : > { %v5481_v37 = vpop.f32.mrf.mxu0 }
 0x7f8   : > { %v5482_v26 = vadd.f32 %v7037_v11, %v5481_v37 }
 0x7fa   : > { %v5521_v45 = vmax.f32 %v5482_v26, 0.0 }
 0x7ff   : > { %v5483_v32 = vpop.f32.mrf.mxu0 }
 0x800   : > { %v5484_v50 = vadd.f32 %v7037_v11, %v5483_v32 }
 0x802   : > { %v5522_v3 = vmax.f32 %v5484_v50, 0.0 }
 0x804   : > { %v5553_v16 = vpack.c.bf16 %v5522_v3, %v5521_v45 }
 0x806   : > { %5621 = vmatmul.bf16.vlgmr.msra.gmra.mxu1 %v5553_v16 }
 0x807   : > { %v5486_v52 = vpop.f32.mrf.mxu0 }
 0x808   : > { %v5487_v19 = vadd.f32 %v7037_v11, %v5486_v52 }
 0x80a   : > { %v5523_v61 = vmax.f32 %v5487_v19, 0.0 }
 0x80f   : > { %v5488_v12 = vpop.f32.mrf.mxu0 }
 0x810   : > { %v5489_v20 = vadd.f32 %v7037_v11, %v5488_v12 }
 0x812   : > { %v5524_v63 = vmax.f32 %v5489_v20, 0.0 }
 0x814   : > { %v5554_v18 = vpack.c.bf16 %v5524_v63, %v5523_v61 }
 0x816   : > { %5626 = vmatmul.bf16.gmra.mxu1 %v5554_v18 }
 0x817   : > { %v5491_v47 = vpop.f32.mrf.mxu0 }
 0x818   : > { %v5492_v43 = vadd.f32 %v7037_v11, %v5491_v47 }
 0x81a   : > { %v5525_v29 = vmax.f32 %v5492_v43, 0.0 }
 0x81f   : > { %v5493_v4 = vpop.f32.mrf.mxu0 }
 0x820   : > { %v5494_v8 = vadd.f32 %v7037_v11, %v5493_v4 }
 0x822   : > { %v5526_v14 = vmax.f32 %v5494_v8, 0.0 }
 0x824   : > { %v5555_v34 = vpack.c.bf16 %v5526_v14, %v5525_v29 }
 0x826   : > { %5631 = vmatmul.bf16.gmra.mxu1 %v5555_v34 }
 0x827   : > { %v5496_v38 = vpop.f32.mrf.mxu0 }
 0x828   : > { %v5497_v1 = vadd.f32 %v7037_v11, %v5496_v38 }
 0x82a   : > { %v5527_v23 = vmax.f32 %v5497_v1, 0.0 }
 0x82f   : > { %v5498_v54 = vpop.f32.mrf.mxu0 }
 0x830   : > { %v5499_v44 = vadd.f32 %v7037_v11, %v5498_v54 }
 0x832   : > { %v5528_v55 = vmax.f32 %v5499_v44, 0.0 }
 0x834   : > { %v5556_v39 = vpack.c.bf16 %v5528_v55, %v5527_v23 }
 0x836   : > { %5636 = vmatmul.bf16.gmra.mxu1 %v5556_v39 }
 0x837   : > { %v5501_v40 = vpop.f32.mrf.mxu0 }
 0x838   : > { %v5502_v41 = vadd.f32 %v7037_v11, %v5501_v40 }
 0x83a   : > { %v5529_v53 = vmax.f32 %v5502_v41, 0.0 }
 0x83f   : > { %v5503_v27 = vpop.f32.mrf.mxu0 }
 0x840   : > { %v5504_v17 = vadd.f32 %v7037_v11, %v5503_v27 }
 0x842   : > { %v5530_v10 = vmax.f32 %v5504_v17, 0.0 }
 0x844   : > { %v5557_v24 = vpack.c.bf16 %v5530_v10, %v5529_v53 }
 0x846   : > { %5641 = vmatmul.bf16.gmra.mxu1 %v5557_v24 }
 0x847   : > { %v5506_v30 = vpop.f32.mrf.mxu0 }
 0x848   : > { %v5507_v36 = vadd.f32 %v7037_v11, %v5506_v30 }
 0x84a   : > { %v5531_v25 = vmax.f32 %v5507_v36, 0.0 }
 0x84f   : > { %v5508_v59 = vpop.f32.mrf.mxu0 }
 0x850   : > { %v5509_v6 = vadd.f32 %v7037_v11, %v5508_v59 }
 0x852   : > { %v5532_v13 = vmax.f32 %v5509_v6, 0.0 }
 0x854   : > { %v5558_v31 = vpack.c.bf16 %v5532_v13, %v5531_v25 }
 0x856   : > { %5646 = vmatmul.bf16.gmra.mxu1 %v5558_v31 }
 0x857   : > { %v5511_v28 = vpop.f32.mrf.mxu0 }
 0x858   : > { %v5512_v56 = vadd.f32 %v7037_v11, %v5511_v28 }
 0x85a   : > { %v5533_v22 = vmax.f32 %v5512_v56, 0.0 }
 0x85f   : > { %v5513_v5 = vpop.f32.mrf.mxu0 }
 0x860   : > { %v5514_v33 = vadd.f32 %v7037_v11, %v5513_v5 }
 0x862   : > { %v5534_v7 = vmax.f32 %v5514_v33, 0.0 }
 0x864   : > { %v5559_v21 = vpack.c.bf16 %v5534_v7, %v5533_v22 }
 0x866   : > { %5651 = vmatmul.bf16.gmra.mxu1 %v5559_v21 }
 0x867   : > { %v5516_v0 = vpop.f32.mrf.mxu0 }
 0x868   : > { %v5517_v51 = vadd.f32 %v7037_v11, %v5516_v0 }
 0x86a   : > { %v5535_v49 = vmax.f32 %v5517_v51, 0.0 }
 0x86f   : > { %v5518_v48 = vpop.f32.mrf.mxu0 }
 0x870   : > { %v5519_v62 = vadd.f32 %v7037_v11, %v5518_v48 }
 0x872   : > { %v5536_v9 = vmax.f32 %v5519_v62, 0.0 }
 0x874   : > { %v5560_v46 = vpack.c.bf16 %v5536_v9, %v5535_v49 }
 0x876   : > { %5656 = vmatmul.bf16.gmra.mxu1 %v5560_v46 }
 0x883   : > { %v5622_v2 = vpop.f32.mrf.mxu1 }
 0x884   : > { %v5623_v42 = vadd.f32 %v7038_v15, %v5622_v2 }
 0x886   : > { %5662 = vst [vmem:[%s10004_s19] sm:$0xff] %v5623_v42 }
 0x88b   : > { %v5624_v57 = vpop.f32.mrf.mxu1 }
 0x88c   : > { %v5625_v60 = vadd.f32 %v7038_v15, %v5624_v57 }
 0x88e   : > { %5663 = vst [vmem:[%s10004_s19 + $0x8] sm:$0xff] %v5625_v60 }
 0x893   : > { %v5627_v58 = vpop.f32.mrf.mxu1 }
 0x894   : > { %v5628_v35 = vadd.f32 %v7038_v15, %v5627_v58 }
 0x896   : > { %5664 = vst [vmem:[%s10004_s19 + $0x10] sm:$0xff] %v5628_v35 }
 0x89b   : > { %v5629_v37 = vpop.f32.mrf.mxu1 }
 0x89c   : > { %v5630_v11 = vadd.f32 %v7038_v15, %v5629_v37 }
 0x89e   : > { %5665 = vst [vmem:[%s10004_s19 + $0x18] sm:$0xff] %v5630_v11 }
 0x8a3   : > { %v5632_v26 = vpop.f32.mrf.mxu1 }
 0x8a4   : > { %v5633_v32 = vadd.f32 %v7038_v15, %v5632_v26 }
 0x8a6   : > { %5666 = vst [vmem:[%s10004_s19 + $0x20] sm:$0xff] %v5633_v32 }
 0x8ab   : > { %v5634_v50 = vpop.f32.mrf.mxu1 }
 0x8ac   : > { %v5635_v45 = vadd.f32 %v7038_v15, %v5634_v50 }
 0x8ae   : > { %5667 = vst [vmem:[%s10004_s19 + $0x28] sm:$0xff] %v5635_v45 }
 0x8b3   : > { %v5637_v3 = vpop.f32.mrf.mxu1 }
 0x8b4   : > { %v5638_v16 = vadd.f32 %v7038_v15, %v5637_v3 }
 0x8b6   : > { %5668 = vst [vmem:[%s10004_s19 + $0x30] sm:$0xff] %v5638_v16 }
 0x8bb   : > { %v5639_v52 = vpop.f32.mrf.mxu1 }
 0x8bc   : > { %v5640_v19 = vadd.f32 %v7038_v15, %v5639_v52 }
 0x8be   : > { %5669 = vst [vmem:[%s10004_s19 + $0x38] sm:$0xff] %v5640_v19 }
 0x8c3   : > { %v5642_v12 = vpop.f32.mrf.mxu1 }
 0x8c4   : > { %v5643_v20 = vadd.f32 %v7038_v15, %v5642_v12 }
 0x8c6   : > { %5670 = vst [vmem:[%s10004_s19 + $0x40] sm:$0xff] %v5643_v20 }
 0x8cb   : > { %v5644_v61 = vpop.f32.mrf.mxu1 }
 0x8cc   : > { %v5645_v63 = vadd.f32 %v7038_v15, %v5644_v61 }
 0x8ce   : > { %5671 = vst [vmem:[%s10004_s19 + $0x48] sm:$0xff] %v5645_v63 }
 0x8d3   : > { %v5647_v18 = vpop.f32.mrf.mxu1 }
 0x8d4   : > { %v5648_v47 = vadd.f32 %v7038_v15, %v5647_v18 }
 0x8d6   : > { %5672 = vst [vmem:[%s10004_s19 + $0x50] sm:$0xff] %v5648_v47 }
 0x8db   : > { %v5649_v43 = vpop.f32.mrf.mxu1 }
 0x8dc   : > { %v5650_v4 = vadd.f32 %v7038_v15, %v5649_v43 }
 0x8de   : > { %5673 = vst [vmem:[%s10004_s19 + $0x58] sm:$0xff] %v5650_v4 }
 0x8e3   : > { %v5652_v8 = vpop.f32.mrf.mxu1 }
 0x8e4   : > { %v5653_v29 = vadd.f32 %v7038_v15, %v5652_v8 }
 0x8e6   : > { %5674 = vst [vmem:[%s10004_s19 + $0x60] sm:$0xff] %v5653_v29 }
 0x8eb   : > { %v5654_v14 = vpop.f32.mrf.mxu1 }
 0x8ec   : > { %v5655_v34 = vadd.f32 %v7038_v15, %v5654_v14 }
 0x8ee   : > { %5675 = vst [vmem:[%s10004_s19 + $0x68] sm:$0xff] %v5655_v34 }
 0x8f3   : > { %v5657_v38 = vpop.f32.mrf.mxu1 }
 0x8f4   : > { %v5658_v1 = vadd.f32 %v7038_v15, %v5657_v38 }
 0x8f6   : > { %5676 = vst [vmem:[%s10004_s19 + $0x70] sm:$0xff] %v5658_v1 }
 0x8fb   : > { %v5659_v54 = vpop.f32.mrf.mxu1 }
 0x8fc   : > { %v5660_v44 = vadd.f32 %v7038_v15, %v5659_v54 }
 0x8fe   : > { %5677 = vst [vmem:[%s10004_s19 + $0x78] sm:$0xff] %v5660_v44 }
 0x8ff   : > { %7571 = shalt.err (!%p7568_p8)
}
 0x900   : > { %s7628_s22 = smov 128   ;;  %s7629_s24 = smov 8  }
 0x901   : > { %6966 = dma.vmem_to_hbm [thread:$0]  (%p7728_p5), %s5692_s26, 2048, %s5694_s28, %s5679_s29, %s7628_s22, %s7628_s22, %s7629_s24  }
 0x902 PF: > { %s10249_s13 = sld [smem:[#allocation17_spill]] }
 0x903   : > { %s10250_s3 = sld [smem:[#allocation15_spill]] }
 0x908   : > { %p6993_p9 = scmp.ge.s32.totalorder %s10249_s13, 2 }
 0x909   : > { %s5708_s1 = sand.u32 1, %s10250_s3  }
 0x90a   : > { %p6982_p10 = pnand %p6993_p9, %p7732_p6  ;;  %s5709_s17 = scalar_lea.sflag [#allocation4], %s5708_s1 }
 0x90c   : > { %p6983_p11 = pneg %p6982_p10 }
 0x90e   : > { %7601 = dma.done.wait (%p6983_p11), %s5709_s17, 2048  }
 0x90f   : > { %7603 = vsyncadd (%p6983_p11), %s5709_s17, 4294965248  ;;  %s10252_s20 = sld [smem:[#allocation18_spill]]  ;;  %s10255_s17 = smov %s7610_s18 }
 0x910   : > { %s10253_s23 = sld [smem:[#allocation16_spill]] }
 0x911   : > { %s10254_s19 = sld [smem:[#allocation19_spill]] }
 0x915   : > { %p24_p12 = scmp.ge.s32.totalorder %s10252_s20, 4  }
 0x916   : > { %s10256_s18 = smov %s10253_s23 }
 0x917   :  { %26 = sbr.rel (!%p24_p12) target bundleno = 9 (0x9), region = 128 }
 0x91c   :  { %5715 = vsyncpa [#allocation3], 1 }
 0x91d   :  { %5717 = vsyncpa [#allocation3 + $0x1], 1 }
 0x91e   :  { %5718 = vsyncpa [#allocation6], 1 }
 0x91f   :  { %5719 = vsyncpa [#allocation9], 1 }
 0x920   :  { %5720 = vsyncpa [#allocation4], 1 }
 0x921   :  { %5722 = vsyncpa [#allocation4 + $0x1], 1 }

</bundles_post_ra>
